<compile_context>
chip_gen: v7x
topology: tpu7x:2x2x1
jax: 0.10.0
libtpu: 0.0.40
codegen_flags: <defaults>
</compile_context>

<pallas_src>
import functools

import jax
import jax.numpy as jnp
from jax.experimental import pallas as pl
from jax.experimental.pallas import tpu as pltpu


_BLOCK_B = 8  # sequences processed per grid step (batch is padded to a multiple)


def coordinate_kernel(
    x_ref, mask_ref,
    wih_ref, ball_ref, whhf_ref, whhb_ref,
    wh1_ref, bh1_ref, wh2_ref,
    scores_ref, idx_ref,
    gates_ref, ctx_ref,
):
    T, Bb, D = x_ref.shape
    H = whhf_ref.shape[0]
    TB = T * Bb

    # ---- hoisted input projection: both directions + biases in one matmul ----
    x2 = x_ref[...].reshape(TB, D)                       # (T*Bb, D), time-major rows
    gates_ref[...] = (
        jnp.dot(x2, wih_ref[...], preferred_element_type=jnp.float32)
        + ball_ref[...])                                 # (T*Bb, 8H)

    mask3 = mask_ref[...]                                # (T, Bb, 1)
    mask_col = mask3.reshape(TB, 1)                      # (T*Bb, 1)

    whh_f = whhf_ref[...]
    whh_b = whhb_ref[...]

    def step(t, h, c, gate_lo, whh):
        base = pl.multiple_of(t * Bb, Bb)
        g = (gates_ref[pl.ds(base, Bb), gate_lo:gate_lo + 4 * H]
             + jnp.dot(h, whh, preferred_element_type=jnp.float32))
        i_g = jax.nn.sigmoid(g[:, 0:H])
        f_g = jax.nn.sigmoid(g[:, H:2 * H])
        g_g = jnp.tanh(g[:, 2 * H:3 * H])
        o_g = jax.nn.sigmoid(g[:, 3 * H:4 * H])
        c_n = f_g * c + i_g * g_g
        h_n = o_g * jnp.tanh(c_n)
        m = mask_ref[t]                                  # (Bb, 1)
        h = m * h_n + (1.0 - m) * h                      # carry state over padding
        c = m * c_n + (1.0 - m) * c
        return base, h, c, m

    unroll = bool(T <= 16)

    def fwd_body(t, carry):
        h, c = carry
        base, h, c, m = step(t, h, c, 0, whh_f)
        ctx_ref[pl.ds(base, Bb), 0:H] = h * m            # padded steps output 0
        return (h, c)

    def bwd_body(i, carry):
        h, c = carry
        t = T - 1 - i
        base, h, c, m = step(t, h, c, 4 * H, whh_b)
        ctx_ref[pl.ds(base, Bb), H:2 * H] = h * m
        return (h, c)

    z = jnp.zeros((Bb, H), jnp.float32)
    jax.lax.fori_loop(0, T, fwd_body, (z, z), unroll=unroll)
    jax.lax.fori_loop(0, T, bwd_body, (z, z), unroll=unroll)

    # ---- fused heads ----
    ctx = ctx_ref[...]                                   # (T*Bb, 2H)
    pre = (jnp.dot(ctx, wh1_ref[...], preferred_element_type=jnp.float32)
           + bh1_ref[...])                               # (T*Bb, 3H): [start|end|p(+pad)]
    se_tmp = jnp.tanh(pre[:, 0:2 * H]) * mask_col        # (T*Bb, 2H)
    logits = jnp.dot(se_tmp, wh2_ref[...],
                     preferred_element_type=jnp.float32)  # (T*Bb, 2): [start, end]
    logits = jnp.where(mask_col == 0.0, jnp.float32(-1e30), logits)
    logits3 = logits.reshape(T, Bb, 2)

    mx = jnp.max(logits3, axis=0, keepdims=True)
    ex = jnp.exp(logits3 - mx)
    denom = jnp.sum(ex, axis=0, keepdims=True)
    sm = ex * pl.reciprocal(denom, approx=True)
    score = sm * mask3                                   # (T, Bb, 2)

    p_val = jax.nn.sigmoid(pre[:, 2 * H:2 * H + 1]) * mask_col
    p3 = p_val.reshape(T, Bb, 1)

    scores_ref[...] = jnp.concatenate([p3, score], axis=-1)   # (T, Bb, 3)

    # first-occurrence argmax over time per (batch, head)
    iota = jax.lax.broadcasted_iota(jnp.int32, (T, Bb, 2), 0)
    smax = jnp.max(score, axis=0, keepdims=True)
    cand = jnp.where(score == smax, iota, jnp.int32(T))
    idx_ref[...] = jnp.min(cand, axis=0)                 # (Bb, 2) int32


def init_params(key, input_size, hidden_size):
    D, H = input_size, hidden_size
    ks = jax.random.split(key, 16)
    r = lambda k, shp: 0.1 * jax.random.normal(k, shp, jnp.float32)
    # nn.LSTM(bidirectional) parameter shapes (gate order i, f, g, o)
    W_ih_f = r(ks[0], (4 * H, D)); W_hh_f = r(ks[1], (4 * H, H))
    b_ih_f = r(ks[2], (4 * H,));   b_hh_f = r(ks[3], (4 * H,))
    W_ih_b = r(ks[4], (4 * H, D)); W_hh_b = r(ks[5], (4 * H, H))
    b_ih_b = r(ks[6], (4 * H,));   b_hh_b = r(ks[7], (4 * H,))
    W_s1 = r(ks[8], (H, 2 * H));   b_s1 = r(ks[9], (H,))
    W_s2 = r(ks[10], (1, H))
    W_e1 = r(ks[11], (H, 2 * H));  b_e1 = r(ks[12], (H,))
    W_e2 = r(ks[13], (1, H))
    W_p = r(ks[14], (1, 2 * H));   b_p = r(ks[15], (1,))
    # kernel-friendly (transposed) layouts
    return dict(
        wih_f=W_ih_f.T, whh_f=W_hh_f.T, b_f=(b_ih_f + b_hh_f).reshape(1, 4 * H),
        wih_b=W_ih_b.T, whh_b=W_hh_b.T, b_b=(b_ih_b + b_hh_b).reshape(1, 4 * H),
        ws1=W_s1.T, bs1=b_s1.reshape(1, H), ws2=W_s2.T,
        we1=W_e1.T, be1=b_e1.reshape(1, H), we2=W_e2.T,
        wp=W_p.T, bp=b_p.reshape(1, 1),
    )


def _fuse_params(params):
    H = params["whh_f"].shape[0]
    # both LSTM directions' input weights / biases, fused for one matmul
    wih = jnp.concatenate([params["wih_f"], params["wih_b"]], axis=1)   # (D, 8H)
    ball = jnp.concatenate([params["b_f"], params["b_b"]], axis=1)      # (1, 8H)
    # fused first-layer head weights: [start | end | perceptron(padded to H cols)]
    wp_pad = jnp.concatenate(
        [params["wp"], jnp.zeros((2 * H, H - 1), jnp.float32)], axis=1)
    wh1 = jnp.concatenate([params["ws1"], params["we1"], wp_pad], axis=1)   # (2H, 3H)
    bp_pad = jnp.concatenate(
        [params["bp"], jnp.zeros((1, H - 1), jnp.float32)], axis=1)
    bh1 = jnp.concatenate([params["bs1"], params["be1"], bp_pad], axis=1)   # (1, 3H)
    # fused second-layer head weight (block diagonal)
    zH = jnp.zeros((H, 1), jnp.float32)
    wh2 = jnp.concatenate(
        [jnp.concatenate([params["ws2"], zH], axis=0),
         jnp.concatenate([zH, params["we2"]], axis=0)], axis=1)             # (2H, 2)
    return (wih, ball, params["whh_f"], params["whh_b"], wh1, bh1, wh2)


@jax.jit
def coordinate_forward(fusion, video_mask, params):
    B, T, D = fusion.shape
    H = params["whh_f"].shape[0]
    weights = _fuse_params(params)

    Bb = _BLOCK_B
    B_pad = ((B + Bb - 1) // Bb) * Bb
    pad = B_pad - B
    fusion = jnp.pad(fusion.astype(jnp.float32), ((0, pad), (0, 0), (0, 0)))
    vmask = jnp.pad(video_mask.astype(jnp.float32), ((0, pad), (0, 0)))

    # time-major layouts so the recurrence reads contiguous (Bb, ...) slabs
    x_t = jnp.transpose(fusion, (1, 0, 2))               # (T, B_pad, D)
    mask3 = jnp.transpose(vmask, (1, 0))[:, :, None]     # (T, B_pad, 1)

    grid = (B_pad // Bb,)

    def w_spec(w):
        return pl.BlockSpec(w.shape, lambda b: (0, 0))   # invariant weight block

    in_specs = ([pl.BlockSpec((T, Bb, D), lambda b: (0, b, 0)),
                 pl.BlockSpec((T, Bb, 1), lambda b: (0, b, 0))]
                + [w_spec(w) for w in weights])

    out_shape = (jax.ShapeDtypeStruct((T, B_pad, 3), jnp.float32),
                 jax.ShapeDtypeStruct((B_pad, 2), jnp.int32))
    out_specs = [pl.BlockSpec((T, Bb, 3), lambda b: (0, b, 0)),
                 pl.BlockSpec((Bb, 2), lambda b: (b, 0))]

    scores, idx = pl.pallas_call(
        coordinate_kernel,
        out_shape=out_shape,
        grid_spec=pltpu.PrefetchScalarGridSpec(
            num_scalar_prefetch=0,
            grid=grid,
            in_specs=in_specs,
            out_specs=out_specs,
            scratch_shapes=[pltpu.VMEM((T * Bb, 8 * H), jnp.float32),  # input gates
                            pltpu.VMEM((T * Bb, 2 * H), jnp.float32)],  # [hf | hb]
        ),
        compiler_params=pltpu.CompilerParams(
            dimension_semantics=("parallel",)),
    )(x_t, mask3, *weights)

    p = jnp.transpose(scores[:, :B, 0], (1, 0))          # (B, T)
    s = jnp.transpose(scores[:, :B, 1], (1, 0))
    e = jnp.transpose(scores[:, :B, 2], (1, 0))
    # (p, start_score, end_score, argmax(start), argmax(end))
    return (p, s, e, idx[:B, 0], idx[:B, 1])


if __name__ == "__main__":
    B, T, D, H = 2, 8, 32, 32   # batch, seq, input_size, hidden_size
    key = jax.random.PRNGKey(0)
    kx, kp = jax.random.split(key)

    fusion = jax.random.normal(kx, (B, T, D), dtype=jnp.float32)
    lengths = jnp.array([T, 5], dtype=jnp.int32)
    video_mask = (jnp.arange(T)[None, :] < lengths[:, None]).astype(jnp.float32)

    params = init_params(kp, D, H)

    outs = coordinate_forward(fusion, video_mask, params)
    jax.block_until_ready(outs)
    print("KERNEL_OK")
</pallas_src>

<mosaic_0001>
module attributes {stable_mosaic.version = 11 : i64} {
  func.func @coordinate_kernel(%arg0: i32, %arg1: memref<8x8x32xf32, #tpu.memory_space<vmem>>, %arg2: memref<8x8x1xf32, #tpu.memory_space<vmem>>, %arg3: memref<32x256xf32, #tpu.memory_space<vmem>>, %arg4: memref<1x256xf32, #tpu.memory_space<vmem>>, %arg5: memref<32x128xf32, #tpu.memory_space<vmem>>, %arg6: memref<32x128xf32, #tpu.memory_space<vmem>>, %arg7: memref<64x96xf32, #tpu.memory_space<vmem>>, %arg8: memref<1x96xf32, #tpu.memory_space<vmem>>, %arg9: memref<64x2xf32, #tpu.memory_space<vmem>>, %arg10: memref<8x8x3xf32, #tpu.memory_space<vmem>>, %arg11: memref<8x2xi32, #tpu.memory_space<vmem>>, %arg12: memref<64x256xf32, #tpu.memory_space<vmem>>, %arg13: memref<64x64xf32, #tpu.memory_space<vmem>>) attributes {dimension_semantics = [#tpu.dimension_semantics<parallel>], iteration_bounds = array<i64: 1>, scalar_prefetch = 0 : i64, scratch_operands = 2 : i64, tpu.core_type = #tpu.core_type<tc>, window_params = [{transform_indices = @transform_0, window_bounds = array<i64: 8, 8, 32>}, {transform_indices = @transform_1, window_bounds = array<i64: 8, 8, 1>}, {pipeline_mode = #tpu.pipeline_mode<synchronous>, transform_indices = @transform_2, window_bounds = array<i64: 32, 256>}, {pipeline_mode = #tpu.pipeline_mode<synchronous>, transform_indices = @transform_3, window_bounds = array<i64: 1, 256>}, {pipeline_mode = #tpu.pipeline_mode<synchronous>, transform_indices = @transform_4, window_bounds = array<i64: 32, 128>}, {pipeline_mode = #tpu.pipeline_mode<synchronous>, transform_indices = @transform_5, window_bounds = array<i64: 32, 128>}, {pipeline_mode = #tpu.pipeline_mode<synchronous>, transform_indices = @transform_6, window_bounds = array<i64: 64, 96>}, {pipeline_mode = #tpu.pipeline_mode<synchronous>, transform_indices = @transform_7, window_bounds = array<i64: 1, 96>}, {pipeline_mode = #tpu.pipeline_mode<synchronous>, transform_indices = @transform_8, window_bounds = array<i64: 64, 2>}, {transform_indices = @transform_9, window_bounds = array<i64: 8, 8, 3>}, {transform_indices = @transform_10, window_bounds = array<i64: 8, 2>}]} {
    %c0 = arith.constant 0 : index
    %c0_0 = arith.constant 0 : index
    %c0_1 = arith.constant 0 : index
    %0 = vector.load %arg1[%c0, %c0_0, %c0_1] : memref<8x8x32xf32, #tpu.memory_space<vmem>>, vector<8x8x32xf32>
    %1 = vector.shape_cast %0 : vector<8x8x32xf32> to vector<64x32xf32>
    %c0_2 = arith.constant 0 : index
    %c0_3 = arith.constant 0 : index
    %2 = vector.load %arg3[%c0_2, %c0_3] : memref<32x256xf32, #tpu.memory_space<vmem>>, vector<32x256xf32>
    %cst = arith.constant dense<0.000000e+00> : vector<64x256xf32>
    %3 = tpu.matmul %1, %2, %cst {dimension_numbers = #tpu.dot_dimension_numbers<[1], [0], [0], [1], [0, 0, 1, 1], [], []>} : vector<64x32xf32>, vector<32x256xf32>, vector<64x256xf32> -> vector<64x256xf32>
    %c0_4 = arith.constant 0 : index
    %c0_5 = arith.constant 0 : index
    %4 = vector.load %arg4[%c0_4, %c0_5] : memref<1x256xf32, #tpu.memory_space<vmem>>, vector<1x256xf32>
    %5 = vector.broadcast %4 : vector<1x256xf32> to vector<64x256xf32>
    %6 = arith.addf %3, %5 : vector<64x256xf32>
    %c0_6 = arith.constant 0 : index
    %c0_7 = arith.constant 0 : index
    %7 = vector.load %arg12[%c0_6, %c0_7] : memref<64x256xf32, #tpu.memory_space<vmem>>, vector<64x256xf32>
    tpu.vector_store %arg12[%c0_6, %c0_7], %6 {strides = array<i32>} : memref<64x256xf32, #tpu.memory_space<vmem>>, vector<64x256xf32>,
    %c0_8 = arith.constant 0 : index
    %c0_9 = arith.constant 0 : index
    %c0_10 = arith.constant 0 : index
    %8 = vector.load %arg2[%c0_8, %c0_9, %c0_10] : memref<8x8x1xf32, #tpu.memory_space<vmem>>, vector<8x8x1xf32>
    %9 = vector.shape_cast %8 : vector<8x8x1xf32> to vector<64x1xf32>
    %c0_11 = arith.constant 0 : index
    %c0_12 = arith.constant 0 : index
    %10 = vector.load %arg5[%c0_11, %c0_12] : memref<32x128xf32, #tpu.memory_space<vmem>>, vector<32x128xf32>
    %c0_13 = arith.constant 0 : index
    %c0_14 = arith.constant 0 : index
    %11 = vector.load %arg6[%c0_13, %c0_14] : memref<32x128xf32, #tpu.memory_space<vmem>>, vector<32x128xf32>
    %cst_15 = arith.constant 0.000000e+00 : f32
    %12 = vector.broadcast %cst_15 : f32 to vector<8x32xf32>
    %c0_i32 = arith.constant 0 : i32
    %c8_i32 = arith.constant 8 : i32
    %13 = arith.muli %c0_i32, %c8_i32 : i32
    %14 = tpu.assume_multiple %13, 8 : i32
    %15 = arith.index_cast %14 : i32 to index
    %c0_16 = arith.constant 0 : index
    %16 = vector.load %arg12[%15, %c0_16] : memref<64x256xf32, #tpu.memory_space<vmem>>, vector<8x128xf32>
    %cst_17 = arith.constant dense<0.000000e+00> : vector<8x128xf32>
    %17 = tpu.matmul %12, %10, %cst_17 {dimension_numbers = #tpu.dot_dimension_numbers<[1], [0], [0], [1], [0, 0, 1, 1], [], []>} : vector<8x32xf32>, vector<32x128xf32>, vector<8x128xf32> -> vector<8x128xf32>
    %18 = arith.addf %16, %17 : vector<8x128xf32>
    %19 = vector.extract_strided_slice %18 {offsets = [0, 0], sizes = [8, 32], strides = [1, 1]} : vector<8x128xf32> to vector<8x32xf32>
    %20 = arith.negf %19 : vector<8x32xf32>
    %21 = math.exp %20 : vector<8x32xf32>
    %cst_18 = arith.constant 1.000000e+00 : f32
    %22 = vector.broadcast %cst_18 : f32 to vector<8x32xf32>
    %23 = arith.addf %22, %21 : vector<8x32xf32>
    %24 = arith.divf %22, %23 : vector<8x32xf32>
    %25 = vector.extract_strided_slice %18 {offsets = [0, 32], sizes = [8, 32], strides = [1, 1]} : vector<8x128xf32> to vector<8x32xf32>
    %26 = arith.negf %25 : vector<8x32xf32>
    %27 = math.exp %26 : vector<8x32xf32>
    %cst_19 = arith.constant 1.000000e+00 : f32
    %28 = vector.broadcast %cst_19 : f32 to vector<8x32xf32>
    %29 = arith.addf %28, %27 : vector<8x32xf32>
    %30 = arith.divf %28, %29 : vector<8x32xf32>
    %31 = vector.extract_strided_slice %18 {offsets = [0, 64], sizes = [8, 32], strides = [1, 1]} : vector<8x128xf32> to vector<8x32xf32>
    %32 = math.tanh %31 : vector<8x32xf32>
    %33 = vector.extract_strided_slice %18 {offsets = [0, 96], sizes = [8, 32], strides = [1, 1]} : vector<8x128xf32> to vector<8x32xf32>
    %34 = arith.negf %33 : vector<8x32xf32>
    %35 = math.exp %34 : vector<8x32xf32>
    %cst_20 = arith.constant 1.000000e+00 : f32
    %36 = vector.broadcast %cst_20 : f32 to vector<8x32xf32>
    %37 = arith.addf %36, %35 : vector<8x32xf32>
    %38 = arith.divf %36, %37 : vector<8x32xf32>
    %39 = arith.mulf %30, %12 : vector<8x32xf32>
    %40 = arith.mulf %24, %32 : vector<8x32xf32>
    %41 = arith.addf %39, %40 : vector<8x32xf32>
    %42 = math.tanh %41 : vector<8x32xf32>
    %43 = arith.mulf %38, %42 : vector<8x32xf32>
    %44 = arith.index_cast %c0_i32 : i32 to index
    %c0_21 = arith.constant 0 : index
    %c0_22 = arith.constant 0 : index
    %45 = vector.load %arg2[%44, %c0_21, %c0_22] : memref<8x8x1xf32, #tpu.memory_space<vmem>>, vector<1x8x1xf32>
    %46 = vector.shape_cast %45 : vector<1x8x1xf32> to vector<8x1xf32>
    %47 = vector.broadcast %46 : vector<8x1xf32> to vector<8x32xf32>
    %48 = arith.mulf %47, %43 : vector<8x32xf32>
    %cst_23 = arith.constant 1.000000e+00 : f32
    %49 = vector.broadcast %cst_23 : f32 to vector<8x1xf32>
    %50 = arith.subf %49, %46 : vector<8x1xf32>
    %51 = vector.broadcast %50 : vector<8x1xf32> to vector<8x32xf32>
    %52 = arith.mulf %51, %12 : vector<8x32xf32>
    %53 = arith.addf %48, %52 : vector<8x32xf32>
    %54 = vector.broadcast %46 : vector<8x1xf32> to vector<8x32xf32>
    %55 = arith.mulf %54, %41 : vector<8x32xf32>
    %cst_24 = arith.constant 1.000000e+00 : f32
    %56 = vector.broadcast %cst_24 : f32 to vector<8x1xf32>
    %57 = arith.subf %56, %46 : vector<8x1xf32>
    %58 = vector.broadcast %57 : vector<8x1xf32> to vector<8x32xf32>
    %59 = arith.mulf %58, %12 : vector<8x32xf32>
    %60 = arith.addf %55, %59 : vector<8x32xf32>
    %61 = vector.broadcast %46 : vector<8x1xf32> to vector<8x32xf32>
    %62 = arith.mulf %53, %61 : vector<8x32xf32>
    %63 = arith.index_cast %14 : i32 to index
    %c0_25 = arith.constant 0 : index
    %64 = vector.load %arg13[%63, %c0_25] : memref<64x64xf32, #tpu.memory_space<vmem>>, vector<8x32xf32>
    tpu.vector_store %arg13[%63, %c0_25], %62 {strides = array<i32>} : memref<64x64xf32, #tpu.memory_space<vmem>>, vector<8x32xf32>,
    %c1_i32 = arith.constant 1 : i32
    %c8_i32_26 = arith.constant 8 : i32
    %65 = arith.muli %c1_i32, %c8_i32_26 : i32
    %66 = tpu.assume_multiple %65, 8 : i32
    %67 = arith.index_cast %66 : i32 to index
    %c0_27 = arith.constant 0 : index
    %68 = vector.load %arg12[%67, %c0_27] : memref<64x256xf32, #tpu.memory_space<vmem>>, vector<8x128xf32>
    %cst_28 = arith.constant dense<0.000000e+00> : vector<8x128xf32>
    %69 = tpu.matmul %53, %10, %cst_28 {dimension_numbers = #tpu.dot_dimension_numbers<[1], [0], [0], [1], [0, 0, 1, 1], [], []>} : vector<8x32xf32>, vector<32x128xf32>, vector<8x128xf32> -> vector<8x128xf32>
    %70 = arith.addf %68, %69 : vector<8x128xf32>
    %71 = vector.extract_strided_slice %70 {offsets = [0, 0], sizes = [8, 32], strides = [1, 1]} : vector<8x128xf32> to vector<8x32xf32>
    %72 = arith.negf %71 : vector<8x32xf32>
    %73 = math.exp %72 : vector<8x32xf32>
    %cst_29 = arith.constant 1.000000e+00 : f32
    %74 = vector.broadcast %cst_29 : f32 to vector<8x32xf32>
    %75 = arith.addf %74, %73 : vector<8x32xf32>
    %76 = arith.divf %74, %75 : vector<8x32xf32>
    %77 = vector.extract_strided_slice %70 {offsets = [0, 32], sizes = [8, 32], strides = [1, 1]} : vector<8x128xf32> to vector<8x32xf32>
    %78 = arith.negf %77 : vector<8x32xf32>
    %79 = math.exp %78 : vector<8x32xf32>
    %cst_30 = arith.constant 1.000000e+00 : f32
    %80 = vector.broadcast %cst_30 : f32 to vector<8x32xf32>
    %81 = arith.addf %80, %79 : vector<8x32xf32>
    %82 = arith.divf %80, %81 : vector<8x32xf32>
    %83 = vector.extract_strided_slice %70 {offsets = [0, 64], sizes = [8, 32], strides = [1, 1]} : vector<8x128xf32> to vector<8x32xf32>
    %84 = math.tanh %83 : vector<8x32xf32>
    %85 = vector.extract_strided_slice %70 {offsets = [0, 96], sizes = [8, 32], strides = [1, 1]} : vector<8x128xf32> to vector<8x32xf32>
    %86 = arith.negf %85 : vector<8x32xf32>
    %87 = math.exp %86 : vector<8x32xf32>
    %cst_31 = arith.constant 1.000000e+00 : f32
    %88 = vector.broadcast %cst_31 : f32 to vector<8x32xf32>
    %89 = arith.addf %88, %87 : vector<8x32xf32>
    %90 = arith.divf %88, %89 : vector<8x32xf32>
    %91 = arith.mulf %82, %60 : vector<8x32xf32>
    %92 = arith.mulf %76, %84 : vector<8x32xf32>
    %93 = arith.addf %91, %92 : vector<8x32xf32>
    %94 = math.tanh %93 : vector<8x32xf32>
    %95 = arith.mulf %90, %94 : vector<8x32xf32>
    %96 = arith.index_cast %c1_i32 : i32 to index
    %c0_32 = arith.constant 0 : index
    %c0_33 = arith.constant 0 : index
    %97 = vector.load %arg2[%96, %c0_32, %c0_33] : memref<8x8x1xf32, #tpu.memory_space<vmem>>, vector<1x8x1xf32>
    %98 = vector.shape_cast %97 : vector<1x8x1xf32> to vector<8x1xf32>
    %99 = vector.broadcast %98 : vector<8x1xf32> to vector<8x32xf32>
    %100 = arith.mulf %99, %95 : vector<8x32xf32>
    %cst_34 = arith.constant 1.000000e+00 : f32
    %101 = vector.broadcast %cst_34 : f32 to vector<8x1xf32>
    %102 = arith.subf %101, %98 : vector<8x1xf32>
    %103 = vector.broadcast %102 : vector<8x1xf32> to vector<8x32xf32>
    %104 = arith.mulf %103, %53 : vector<8x32xf32>
    %105 = arith.addf %100, %104 : vector<8x32xf32>
    %106 = vector.broadcast %98 : vector<8x1xf32> to vector<8x32xf32>
    %107 = arith.mulf %106, %93 : vector<8x32xf32>
    %cst_35 = arith.constant 1.000000e+00 : f32
    %108 = vector.broadcast %cst_35 : f32 to vector<8x1xf32>
    %109 = arith.subf %108, %98 : vector<8x1xf32>
    %110 = vector.broadcast %109 : vector<8x1xf32> to vector<8x32xf32>
    %111 = arith.mulf %110, %60 : vector<8x32xf32>
    %112 = arith.addf %107, %111 : vector<8x32xf32>
    %113 = vector.broadcast %98 : vector<8x1xf32> to vector<8x32xf32>
    %114 = arith.mulf %105, %113 : vector<8x32xf32>
    %115 = arith.index_cast %66 : i32 to index
    %c0_36 = arith.constant 0 : index
    %116 = vector.load %arg13[%115, %c0_36] : memref<64x64xf32, #tpu.memory_space<vmem>>, vector<8x32xf32>
    tpu.vector_store %arg13[%115, %c0_36], %114 {strides = array<i32>} : memref<64x64xf32, #tpu.memory_space<vmem>>, vector<8x32xf32>,
    %c2_i32 = arith.constant 2 : i32
    %c8_i32_37 = arith.constant 8 : i32
    %117 = arith.muli %c2_i32, %c8_i32_37 : i32
    %118 = tpu.assume_multiple %117, 8 : i32
    %119 = arith.index_cast %118 : i32 to index
    %c0_38 = arith.constant 0 : index
    %120 = vector.load %arg12[%119, %c0_38] : memref<64x256xf32, #tpu.memory_space<vmem>>, vector<8x128xf32>
    %cst_39 = arith.constant dense<0.000000e+00> : vector<8x128xf32>
    %121 = tpu.matmul %105, %10, %cst_39 {dimension_numbers = #tpu.dot_dimension_numbers<[1], [0], [0], [1], [0, 0, 1, 1], [], []>} : vector<8x32xf32>, vector<32x128xf32>, vector<8x128xf32> -> vector<8x128xf32>
    %122 = arith.addf %120, %121 : vector<8x128xf32>
    %123 = vector.extract_strided_slice %122 {offsets = [0, 0], sizes = [8, 32], strides = [1, 1]} : vector<8x128xf32> to vector<8x32xf32>
    %124 = arith.negf %123 : vector<8x32xf32>
    %125 = math.exp %124 : vector<8x32xf32>
    %cst_40 = arith.constant 1.000000e+00 : f32
    %126 = vector.broadcast %cst_40 : f32 to vector<8x32xf32>
    %127 = arith.addf %126, %125 : vector<8x32xf32>
    %128 = arith.divf %126, %127 : vector<8x32xf32>
    %129 = vector.extract_strided_slice %122 {offsets = [0, 32], sizes = [8, 32], strides = [1, 1]} : vector<8x128xf32> to vector<8x32xf32>
    %130 = arith.negf %129 : vector<8x32xf32>
    %131 = math.exp %130 : vector<8x32xf32>
    %cst_41 = arith.constant 1.000000e+00 : f32
    %132 = vector.broadcast %cst_41 : f32 to vector<8x32xf32>
    %133 = arith.addf %132, %131 : vector<8x32xf32>
    %134 = arith.divf %132, %133 : vector<8x32xf32>
    %135 = vector.extract_strided_slice %122 {offsets = [0, 64], sizes = [8, 32], strides = [1, 1]} : vector<8x128xf32> to vector<8x32xf32>
    %136 = math.tanh %135 : vector<8x32xf32>
    %137 = vector.extract_strided_slice %122 {offsets = [0, 96], sizes = [8, 32], strides = [1, 1]} : vector<8x128xf32> to vector<8x32xf32>
    %138 = arith.negf %137 : vector<8x32xf32>
    %139 = math.exp %138 : vector<8x32xf32>
    %cst_42 = arith.constant 1.000000e+00 : f32
    %140 = vector.broadcast %cst_42 : f32 to vector<8x32xf32>
    %141 = arith.addf %140, %139 : vector<8x32xf32>
    %142 = arith.divf %140, %141 : vector<8x32xf32>
    %143 = arith.mulf %134, %112 : vector<8x32xf32>
    %144 = arith.mulf %128, %136 : vector<8x32xf32>
    %145 = arith.addf %143, %144 : vector<8x32xf32>
    %146 = math.tanh %145 : vector<8x32xf32>
    %147 = arith.mulf %142, %146 : vector<8x32xf32>
    %148 = arith.index_cast %c2_i32 : i32 to index
    %c0_43 = arith.constant 0 : index
    %c0_44 = arith.constant 0 : index
    %149 = vector.load %arg2[%148, %c0_43, %c0_44] : memref<8x8x1xf32, #tpu.memory_space<vmem>>, vector<1x8x1xf32>
    %150 = vector.shape_cast %149 : vector<1x8x1xf32> to vector<8x1xf32>
    %151 = vector.broadcast %150 : vector<8x1xf32> to vector<8x32xf32>
    %152 = arith.mulf %151, %147 : vector<8x32xf32>
    %cst_45 = arith.constant 1.000000e+00 : f32
    %153 = vector.broadcast %cst_45 : f32 to vector<8x1xf32>
    %154 = arith.subf %153, %150 : vector<8x1xf32>
    %155 = vector.broadcast %154 : vector<8x1xf32> to vector<8x32xf32>
    %156 = arith.mulf %155, %105 : vector<8x32xf32>
    %157 = arith.addf %152, %156 : vector<8x32xf32>
    %158 = vector.broadcast %150 : vector<8x1xf32> to vector<8x32xf32>
    %159 = arith.mulf %158, %145 : vector<8x32xf32>
    %cst_46 = arith.constant 1.000000e+00 : f32
    %160 = vector.broadcast %cst_46 : f32 to vector<8x1xf32>
    %161 = arith.subf %160, %150 : vector<8x1xf32>
    %162 = vector.broadcast %161 : vector<8x1xf32> to vector<8x32xf32>
    %163 = arith.mulf %162, %112 : vector<8x32xf32>
    %164 = arith.addf %159, %163 : vector<8x32xf32>
    %165 = vector.broadcast %150 : vector<8x1xf32> to vector<8x32xf32>
    %166 = arith.mulf %157, %165 : vector<8x32xf32>
    %167 = arith.index_cast %118 : i32 to index
    %c0_47 = arith.constant 0 : index
    %168 = vector.load %arg13[%167, %c0_47] : memref<64x64xf32, #tpu.memory_space<vmem>>, vector<8x32xf32>
    tpu.vector_store %arg13[%167, %c0_47], %166 {strides = array<i32>} : memref<64x64xf32, #tpu.memory_space<vmem>>, vector<8x32xf32>,
    %c3_i32 = arith.constant 3 : i32
    %c8_i32_48 = arith.constant 8 : i32
    %169 = arith.muli %c3_i32, %c8_i32_48 : i32
    %170 = tpu.assume_multiple %169, 8 : i32
    %171 = arith.index_cast %170 : i32 to index
    %c0_49 = arith.constant 0 : index
    %172 = vector.load %arg12[%171, %c0_49] : memref<64x256xf32, #tpu.memory_space<vmem>>, vector<8x128xf32>
    %cst_50 = arith.constant dense<0.000000e+00> : vector<8x128xf32>
    %173 = tpu.matmul %157, %10, %cst_50 {dimension_numbers = #tpu.dot_dimension_numbers<[1], [0], [0], [1], [0, 0, 1, 1], [], []>} : vector<8x32xf32>, vector<32x128xf32>, vector<8x128xf32> -> vector<8x128xf32>
    %174 = arith.addf %172, %173 : vector<8x128xf32>
    %175 = vector.extract_strided_slice %174 {offsets = [0, 0], sizes = [8, 32], strides = [1, 1]} : vector<8x128xf32> to vector<8x32xf32>
    %176 = arith.negf %175 : vector<8x32xf32>
    %177 = math.exp %176 : vector<8x32xf32>
    %cst_51 = arith.constant 1.000000e+00 : f32
    %178 = vector.broadcast %cst_51 : f32 to vector<8x32xf32>
    %179 = arith.addf %178, %177 : vector<8x32xf32>
    %180 = arith.divf %178, %179 : vector<8x32xf32>
    %181 = vector.extract_strided_slice %174 {offsets = [0, 32], sizes = [8, 32], strides = [1, 1]} : vector<8x128xf32> to vector<8x32xf32>
    %182 = arith.negf %181 : vector<8x32xf32>
    %183 = math.exp %182 : vector<8x32xf32>
    %cst_52 = arith.constant 1.000000e+00 : f32
    %184 = vector.broadcast %cst_52 : f32 to vector<8x32xf32>
    %185 = arith.addf %184, %183 : vector<8x32xf32>
    %186 = arith.divf %184, %185 : vector<8x32xf32>
    %187 = vector.extract_strided_slice %174 {offsets = [0, 64], sizes = [8, 32], strides = [1, 1]} : vector<8x128xf32> to vector<8x32xf32>
    %188 = math.tanh %187 : vector<8x32xf32>
    %189 = vector.extract_strided_slice %174 {offsets = [0, 96], sizes = [8, 32], strides = [1, 1]} : vector<8x128xf32> to vector<8x32xf32>
    %190 = arith.negf %189 : vector<8x32xf32>
    %191 = math.exp %190 : vector<8x32xf32>
    %cst_53 = arith.constant 1.000000e+00 : f32
    %192 = vector.broadcast %cst_53 : f32 to vector<8x32xf32>
    %193 = arith.addf %192, %191 : vector<8x32xf32>
    %194 = arith.divf %192, %193 : vector<8x32xf32>
    %195 = arith.mulf %186, %164 : vector<8x32xf32>
    %196 = arith.mulf %180, %188 : vector<8x32xf32>
    %197 = arith.addf %195, %196 : vector<8x32xf32>
    %198 = math.tanh %197 : vector<8x32xf32>
    %199 = arith.mulf %194, %198 : vector<8x32xf32>
    %200 = arith.index_cast %c3_i32 : i32 to index
    %c0_54 = arith.constant 0 : index
    %c0_55 = arith.constant 0 : index
    %201 = vector.load %arg2[%200, %c0_54, %c0_55] : memref<8x8x1xf32, #tpu.memory_space<vmem>>, vector<1x8x1xf32>
    %202 = vector.shape_cast %201 : vector<1x8x1xf32> to vector<8x1xf32>
    %203 = vector.broadcast %202 : vector<8x1xf32> to vector<8x32xf32>
    %204 = arith.mulf %203, %199 : vector<8x32xf32>
    %cst_56 = arith.constant 1.000000e+00 : f32
    %205 = vector.broadcast %cst_56 : f32 to vector<8x1xf32>
    %206 = arith.subf %205, %202 : vector<8x1xf32>
    %207 = vector.broadcast %206 : vector<8x1xf32> to vector<8x32xf32>
    %208 = arith.mulf %207, %157 : vector<8x32xf32>
    %209 = arith.addf %204, %208 : vector<8x32xf32>
    %210 = vector.broadcast %202 : vector<8x1xf32> to vector<8x32xf32>
    %211 = arith.mulf %210, %197 : vector<8x32xf32>
    %cst_57 = arith.constant 1.000000e+00 : f32
    %212 = vector.broadcast %cst_57 : f32 to vector<8x1xf32>
    %213 = arith.subf %212, %202 : vector<8x1xf32>
    %214 = vector.broadcast %213 : vector<8x1xf32> to vector<8x32xf32>
    %215 = arith.mulf %214, %164 : vector<8x32xf32>
    %216 = arith.addf %211, %215 : vector<8x32xf32>
    %217 = vector.broadcast %202 : vector<8x1xf32> to vector<8x32xf32>
    %218 = arith.mulf %209, %217 : vector<8x32xf32>
    %219 = arith.index_cast %170 : i32 to index
    %c0_58 = arith.constant 0 : index
    %220 = vector.load %arg13[%219, %c0_58] : memref<64x64xf32, #tpu.memory_space<vmem>>, vector<8x32xf32>
    tpu.vector_store %arg13[%219, %c0_58], %218 {strides = array<i32>} : memref<64x64xf32, #tpu.memory_space<vmem>>, vector<8x32xf32>,
    %c4_i32 = arith.constant 4 : i32
    %c8_i32_59 = arith.constant 8 : i32
    %221 = arith.muli %c4_i32, %c8_i32_59 : i32
    %222 = tpu.assume_multiple %221, 8 : i32
    %223 = arith.index_cast %222 : i32 to index
    %c0_60 = arith.constant 0 : index
    %224 = vector.load %arg12[%223, %c0_60] : memref<64x256xf32, #tpu.memory_space<vmem>>, vector<8x128xf32>
    %cst_61 = arith.constant dense<0.000000e+00> : vector<8x128xf32>
    %225 = tpu.matmul %209, %10, %cst_61 {dimension_numbers = #tpu.dot_dimension_numbers<[1], [0], [0], [1], [0, 0, 1, 1], [], []>} : vector<8x32xf32>, vector<32x128xf32>, vector<8x128xf32> -> vector<8x128xf32>
    %226 = arith.addf %224, %225 : vector<8x128xf32>
    %227 = vector.extract_strided_slice %226 {offsets = [0, 0], sizes = [8, 32], strides = [1, 1]} : vector<8x128xf32> to vector<8x32xf32>
    %228 = arith.negf %227 : vector<8x32xf32>
    %229 = math.exp %228 : vector<8x32xf32>
    %cst_62 = arith.constant 1.000000e+00 : f32
    %230 = vector.broadcast %cst_62 : f32 to vector<8x32xf32>
    %231 = arith.addf %230, %229 : vector<8x32xf32>
    %232 = arith.divf %230, %231 : vector<8x32xf32>
    %233 = vector.extract_strided_slice %226 {offsets = [0, 32], sizes = [8, 32], strides = [1, 1]} : vector<8x128xf32> to vector<8x32xf32>
    %234 = arith.negf %233 : vector<8x32xf32>
    %235 = math.exp %234 : vector<8x32xf32>
    %cst_63 = arith.constant 1.000000e+00 : f32
    %236 = vector.broadcast %cst_63 : f32 to vector<8x32xf32>
    %237 = arith.addf %236, %235 : vector<8x32xf32>
    %238 = arith.divf %236, %237 : vector<8x32xf32>
    %239 = vector.extract_strided_slice %226 {offsets = [0, 64], sizes = [8, 32], strides = [1, 1]} : vector<8x128xf32> to vector<8x32xf32>
    %240 = math.tanh %239 : vector<8x32xf32>
    %241 = vector.extract_strided_slice %226 {offsets = [0, 96], sizes = [8, 32], strides = [1, 1]} : vector<8x128xf32> to vector<8x32xf32>
    %242 = arith.negf %241 : vector<8x32xf32>
    %243 = math.exp %242 : vector<8x32xf32>
    %cst_64 = arith.constant 1.000000e+00 : f32
    %244 = vector.broadcast %cst_64 : f32 to vector<8x32xf32>
    %245 = arith.addf %244, %243 : vector<8x32xf32>
    %246 = arith.divf %244, %245 : vector<8x32xf32>
    %247 = arith.mulf %238, %216 : vector<8x32xf32>
    %248 = arith.mulf %232, %240 : vector<8x32xf32>
    %249 = arith.addf %247, %248 : vector<8x32xf32>
    %250 = math.tanh %249 : vector<8x32xf32>
    %251 = arith.mulf %246, %250 : vector<8x32xf32>
    %252 = arith.index_cast %c4_i32 : i32 to index
    %c0_65 = arith.constant 0 : index
    %c0_66 = arith.constant 0 : index
    %253 = vector.load %arg2[%252, %c0_65, %c0_66] : memref<8x8x1xf32, #tpu.memory_space<vmem>>, vector<1x8x1xf32>
    %254 = vector.shape_cast %253 : vector<1x8x1xf32> to vector<8x1xf32>
    %255 = vector.broadcast %254 : vector<8x1xf32> to vector<8x32xf32>
    %256 = arith.mulf %255, %251 : vector<8x32xf32>
    %cst_67 = arith.constant 1.000000e+00 : f32
    %257 = vector.broadcast %cst_67 : f32 to vector<8x1xf32>
    %258 = arith.subf %257, %254 : vector<8x1xf32>
    %259 = vector.broadcast %258 : vector<8x1xf32> to vector<8x32xf32>
    %260 = arith.mulf %259, %209 : vector<8x32xf32>
    %261 = arith.addf %256, %260 : vector<8x32xf32>
    %262 = vector.broadcast %254 : vector<8x1xf32> to vector<8x32xf32>
    %263 = arith.mulf %262, %249 : vector<8x32xf32>
    %cst_68 = arith.constant 1.000000e+00 : f32
    %264 = vector.broadcast %cst_68 : f32 to vector<8x1xf32>
    %265 = arith.subf %264, %254 : vector<8x1xf32>
    %266 = vector.broadcast %265 : vector<8x1xf32> to vector<8x32xf32>
    %267 = arith.mulf %266, %216 : vector<8x32xf32>
    %268 = arith.addf %263, %267 : vector<8x32xf32>
    %269 = vector.broadcast %254 : vector<8x1xf32> to vector<8x32xf32>
    %270 = arith.mulf %261, %269 : vector<8x32xf32>
    %271 = arith.index_cast %222 : i32 to index
    %c0_69 = arith.constant 0 : index
    %272 = vector.load %arg13[%271, %c0_69] : memref<64x64xf32, #tpu.memory_space<vmem>>, vector<8x32xf32>
    tpu.vector_store %arg13[%271, %c0_69], %270 {strides = array<i32>} : memref<64x64xf32, #tpu.memory_space<vmem>>, vector<8x32xf32>,
    %c5_i32 = arith.constant 5 : i32
    %c8_i32_70 = arith.constant 8 : i32
    %273 = arith.muli %c5_i32, %c8_i32_70 : i32
    %274 = tpu.assume_multiple %273, 8 : i32
    %275 = arith.index_cast %274 : i32 to index
    %c0_71 = arith.constant 0 : index
    %276 = vector.load %arg12[%275, %c0_71] : memref<64x256xf32, #tpu.memory_space<vmem>>, vector<8x128xf32>
    %cst_72 = arith.constant dense<0.000000e+00> : vector<8x128xf32>
    %277 = tpu.matmul %261, %10, %cst_72 {dimension_numbers = #tpu.dot_dimension_numbers<[1], [0], [0], [1], [0, 0, 1, 1], [], []>} : vector<8x32xf32>, vector<32x128xf32>, vector<8x128xf32> -> vector<8x128xf32>
    %278 = arith.addf %276, %277 : vector<8x128xf32>
    %279 = vector.extract_strided_slice %278 {offsets = [0, 0], sizes = [8, 32], strides = [1, 1]} : vector<8x128xf32> to vector<8x32xf32>
    %280 = arith.negf %279 : vector<8x32xf32>
    %281 = math.exp %280 : vector<8x32xf32>
    %cst_73 = arith.constant 1.000000e+00 : f32
    %282 = vector.broadcast %cst_73 : f32 to vector<8x32xf32>
    %283 = arith.addf %282, %281 : vector<8x32xf32>
    %284 = arith.divf %282, %283 : vector<8x32xf32>
    %285 = vector.extract_strided_slice %278 {offsets = [0, 32], sizes = [8, 32], strides = [1, 1]} : vector<8x128xf32> to vector<8x32xf32>
    %286 = arith.negf %285 : vector<8x32xf32>
    %287 = math.exp %286 : vector<8x32xf32>
    %cst_74 = arith.constant 1.000000e+00 : f32
    %288 = vector.broadcast %cst_74 : f32 to vector<8x32xf32>
    %289 = arith.addf %288, %287 : vector<8x32xf32>
    %290 = arith.divf %288, %289 : vector<8x32xf32>
    %291 = vector.extract_strided_slice %278 {offsets = [0, 64], sizes = [8, 32], strides = [1, 1]} : vector<8x128xf32> to vector<8x32xf32>
    %292 = math.tanh %291 : vector<8x32xf32>
    %293 = vector.extract_strided_slice %278 {offsets = [0, 96], sizes = [8, 32], strides = [1, 1]} : vector<8x128xf32> to vector<8x32xf32>
    %294 = arith.negf %293 : vector<8x32xf32>
    %295 = math.exp %294 : vector<8x32xf32>
    %cst_75 = arith.constant 1.000000e+00 : f32
    %296 = vector.broadcast %cst_75 : f32 to vector<8x32xf32>
    %297 = arith.addf %296, %295 : vector<8x32xf32>
    %298 = arith.divf %296, %297 : vector<8x32xf32>
    %299 = arith.mulf %290, %268 : vector<8x32xf32>
    %300 = arith.mulf %284, %292 : vector<8x32xf32>
    %301 = arith.addf %299, %300 : vector<8x32xf32>
    %302 = math.tanh %301 : vector<8x32xf32>
    %303 = arith.mulf %298, %302 : vector<8x32xf32>
    %304 = arith.index_cast %c5_i32 : i32 to index
    %c0_76 = arith.constant 0 : index
    %c0_77 = arith.constant 0 : index
    %305 = vector.load %arg2[%304, %c0_76, %c0_77] : memref<8x8x1xf32, #tpu.memory_space<vmem>>, vector<1x8x1xf32>
    %306 = vector.shape_cast %305 : vector<1x8x1xf32> to vector<8x1xf32>
    %307 = vector.broadcast %306 : vector<8x1xf32> to vector<8x32xf32>
    %308 = arith.mulf %307, %303 : vector<8x32xf32>
    %cst_78 = arith.constant 1.000000e+00 : f32
    %309 = vector.broadcast %cst_78 : f32 to vector<8x1xf32>
    %310 = arith.subf %309, %306 : vector<8x1xf32>
    %311 = vector.broadcast %310 : vector<8x1xf32> to vector<8x32xf32>
    %312 = arith.mulf %311, %261 : vector<8x32xf32>
    %313 = arith.addf %308, %312 : vector<8x32xf32>
    %314 = vector.broadcast %306 : vector<8x1xf32> to vector<8x32xf32>
    %315 = arith.mulf %314, %301 : vector<8x32xf32>
    %cst_79 = arith.constant 1.000000e+00 : f32
    %316 = vector.broadcast %cst_79 : f32 to vector<8x1xf32>
    %317 = arith.subf %316, %306 : vector<8x1xf32>
    %318 = vector.broadcast %317 : vector<8x1xf32> to vector<8x32xf32>
    %319 = arith.mulf %318, %268 : vector<8x32xf32>
    %320 = arith.addf %315, %319 : vector<8x32xf32>
    %321 = vector.broadcast %306 : vector<8x1xf32> to vector<8x32xf32>
    %322 = arith.mulf %313, %321 : vector<8x32xf32>
    %323 = arith.index_cast %274 : i32 to index
    %c0_80 = arith.constant 0 : index
    %324 = vector.load %arg13[%323, %c0_80] : memref<64x64xf32, #tpu.memory_space<vmem>>, vector<8x32xf32>
    tpu.vector_store %arg13[%323, %c0_80], %322 {strides = array<i32>} : memref<64x64xf32, #tpu.memory_space<vmem>>, vector<8x32xf32>,
    %c6_i32 = arith.constant 6 : i32
    %c8_i32_81 = arith.constant 8 : i32
    %325 = arith.muli %c6_i32, %c8_i32_81 : i32
    %326 = tpu.assume_multiple %325, 8 : i32
    %327 = arith.index_cast %326 : i32 to index
    %c0_82 = arith.constant 0 : index
    %328 = vector.load %arg12[%327, %c0_82] : memref<64x256xf32, #tpu.memory_space<vmem>>, vector<8x128xf32>
    %cst_83 = arith.constant dense<0.000000e+00> : vector<8x128xf32>
    %329 = tpu.matmul %313, %10, %cst_83 {dimension_numbers = #tpu.dot_dimension_numbers<[1], [0], [0], [1], [0, 0, 1, 1], [], []>} : vector<8x32xf32>, vector<32x128xf32>, vector<8x128xf32> -> vector<8x128xf32>
    %330 = arith.addf %328, %329 : vector<8x128xf32>
    %331 = vector.extract_strided_slice %330 {offsets = [0, 0], sizes = [8, 32], strides = [1, 1]} : vector<8x128xf32> to vector<8x32xf32>
    %332 = arith.negf %331 : vector<8x32xf32>
    %333 = math.exp %332 : vector<8x32xf32>
    %cst_84 = arith.constant 1.000000e+00 : f32
    %334 = vector.broadcast %cst_84 : f32 to vector<8x32xf32>
    %335 = arith.addf %334, %333 : vector<8x32xf32>
    %336 = arith.divf %334, %335 : vector<8x32xf32>
    %337 = vector.extract_strided_slice %330 {offsets = [0, 32], sizes = [8, 32], strides = [1, 1]} : vector<8x128xf32> to vector<8x32xf32>
    %338 = arith.negf %337 : vector<8x32xf32>
    %339 = math.exp %338 : vector<8x32xf32>
    %cst_85 = arith.constant 1.000000e+00 : f32
    %340 = vector.broadcast %cst_85 : f32 to vector<8x32xf32>
    %341 = arith.addf %340, %339 : vector<8x32xf32>
    %342 = arith.divf %340, %341 : vector<8x32xf32>
    %343 = vector.extract_strided_slice %330 {offsets = [0, 64], sizes = [8, 32], strides = [1, 1]} : vector<8x128xf32> to vector<8x32xf32>
    %344 = math.tanh %343 : vector<8x32xf32>
    %345 = vector.extract_strided_slice %330 {offsets = [0, 96], sizes = [8, 32], strides = [1, 1]} : vector<8x128xf32> to vector<8x32xf32>
    %346 = arith.negf %345 : vector<8x32xf32>
    %347 = math.exp %346 : vector<8x32xf32>
    %cst_86 = arith.constant 1.000000e+00 : f32
    %348 = vector.broadcast %cst_86 : f32 to vector<8x32xf32>
    %349 = arith.addf %348, %347 : vector<8x32xf32>
    %350 = arith.divf %348, %349 : vector<8x32xf32>
    %351 = arith.mulf %342, %320 : vector<8x32xf32>
    %352 = arith.mulf %336, %344 : vector<8x32xf32>
    %353 = arith.addf %351, %352 : vector<8x32xf32>
    %354 = math.tanh %353 : vector<8x32xf32>
    %355 = arith.mulf %350, %354 : vector<8x32xf32>
    %356 = arith.index_cast %c6_i32 : i32 to index
    %c0_87 = arith.constant 0 : index
    %c0_88 = arith.constant 0 : index
    %357 = vector.load %arg2[%356, %c0_87, %c0_88] : memref<8x8x1xf32, #tpu.memory_space<vmem>>, vector<1x8x1xf32>
    %358 = vector.shape_cast %357 : vector<1x8x1xf32> to vector<8x1xf32>
    %359 = vector.broadcast %358 : vector<8x1xf32> to vector<8x32xf32>
    %360 = arith.mulf %359, %355 : vector<8x32xf32>
    %cst_89 = arith.constant 1.000000e+00 : f32
    %361 = vector.broadcast %cst_89 : f32 to vector<8x1xf32>
    %362 = arith.subf %361, %358 : vector<8x1xf32>
    %363 = vector.broadcast %362 : vector<8x1xf32> to vector<8x32xf32>
    %364 = arith.mulf %363, %313 : vector<8x32xf32>
    %365 = arith.addf %360, %364 : vector<8x32xf32>
    %366 = vector.broadcast %358 : vector<8x1xf32> to vector<8x32xf32>
    %367 = arith.mulf %366, %353 : vector<8x32xf32>
    %cst_90 = arith.constant 1.000000e+00 : f32
    %368 = vector.broadcast %cst_90 : f32 to vector<8x1xf32>
    %369 = arith.subf %368, %358 : vector<8x1xf32>
    %370 = vector.broadcast %369 : vector<8x1xf32> to vector<8x32xf32>
    %371 = arith.mulf %370, %320 : vector<8x32xf32>
    %372 = arith.addf %367, %371 : vector<8x32xf32>
    %373 = vector.broadcast %358 : vector<8x1xf32> to vector<8x32xf32>
    %374 = arith.mulf %365, %373 : vector<8x32xf32>
    %375 = arith.index_cast %326 : i32 to index
    %c0_91 = arith.constant 0 : index
    %376 = vector.load %arg13[%375, %c0_91] : memref<64x64xf32, #tpu.memory_space<vmem>>, vector<8x32xf32>
    tpu.vector_store %arg13[%375, %c0_91], %374 {strides = array<i32>} : memref<64x64xf32, #tpu.memory_space<vmem>>, vector<8x32xf32>,
    %c7_i32 = arith.constant 7 : i32
    %c8_i32_92 = arith.constant 8 : i32
    %377 = arith.muli %c7_i32, %c8_i32_92 : i32
    %378 = tpu.assume_multiple %377, 8 : i32
    %379 = arith.index_cast %378 : i32 to index
    %c0_93 = arith.constant 0 : index
    %380 = vector.load %arg12[%379, %c0_93] : memref<64x256xf32, #tpu.memory_space<vmem>>, vector<8x128xf32>
    %cst_94 = arith.constant dense<0.000000e+00> : vector<8x128xf32>
    %381 = tpu.matmul %365, %10, %cst_94 {dimension_numbers = #tpu.dot_dimension_numbers<[1], [0], [0], [1], [0, 0, 1, 1], [], []>} : vector<8x32xf32>, vector<32x128xf32>, vector<8x128xf32> -> vector<8x128xf32>
    %382 = arith.addf %380, %381 : vector<8x128xf32>
    %383 = vector.extract_strided_slice %382 {offsets = [0, 0], sizes = [8, 32], strides = [1, 1]} : vector<8x128xf32> to vector<8x32xf32>
    %384 = arith.negf %383 : vector<8x32xf32>
    %385 = math.exp %384 : vector<8x32xf32>
    %cst_95 = arith.constant 1.000000e+00 : f32
    %386 = vector.broadcast %cst_95 : f32 to vector<8x32xf32>
    %387 = arith.addf %386, %385 : vector<8x32xf32>
    %388 = arith.divf %386, %387 : vector<8x32xf32>
    %389 = vector.extract_strided_slice %382 {offsets = [0, 32], sizes = [8, 32], strides = [1, 1]} : vector<8x128xf32> to vector<8x32xf32>
    %390 = arith.negf %389 : vector<8x32xf32>
    %391 = math.exp %390 : vector<8x32xf32>
    %cst_96 = arith.constant 1.000000e+00 : f32
    %392 = vector.broadcast %cst_96 : f32 to vector<8x32xf32>
    %393 = arith.addf %392, %391 : vector<8x32xf32>
    %394 = arith.divf %392, %393 : vector<8x32xf32>
    %395 = vector.extract_strided_slice %382 {offsets = [0, 64], sizes = [8, 32], strides = [1, 1]} : vector<8x128xf32> to vector<8x32xf32>
    %396 = math.tanh %395 : vector<8x32xf32>
    %397 = vector.extract_strided_slice %382 {offsets = [0, 96], sizes = [8, 32], strides = [1, 1]} : vector<8x128xf32> to vector<8x32xf32>
    %398 = arith.negf %397 : vector<8x32xf32>
    %399 = math.exp %398 : vector<8x32xf32>
    %cst_97 = arith.constant 1.000000e+00 : f32
    %400 = vector.broadcast %cst_97 : f32 to vector<8x32xf32>
    %401 = arith.addf %400, %399 : vector<8x32xf32>
    %402 = arith.divf %400, %401 : vector<8x32xf32>
    %403 = arith.mulf %394, %372 : vector<8x32xf32>
    %404 = arith.mulf %388, %396 : vector<8x32xf32>
    %405 = arith.addf %403, %404 : vector<8x32xf32>
    %406 = math.tanh %405 : vector<8x32xf32>
    %407 = arith.mulf %402, %406 : vector<8x32xf32>
    %408 = arith.index_cast %c7_i32 : i32 to index
    %c0_98 = arith.constant 0 : index
    %c0_99 = arith.constant 0 : index
    %409 = vector.load %arg2[%408, %c0_98, %c0_99] : memref<8x8x1xf32, #tpu.memory_space<vmem>>, vector<1x8x1xf32>
    %410 = vector.shape_cast %409 : vector<1x8x1xf32> to vector<8x1xf32>
    %411 = vector.broadcast %410 : vector<8x1xf32> to vector<8x32xf32>
    %412 = arith.mulf %411, %407 : vector<8x32xf32>
    %cst_100 = arith.constant 1.000000e+00 : f32
    %413 = vector.broadcast %cst_100 : f32 to vector<8x1xf32>
    %414 = arith.subf %413, %410 : vector<8x1xf32>
    %415 = vector.broadcast %414 : vector<8x1xf32> to vector<8x32xf32>
    %416 = arith.mulf %415, %365 : vector<8x32xf32>
    %417 = arith.addf %412, %416 : vector<8x32xf32>
    %418 = vector.broadcast %410 : vector<8x1xf32> to vector<8x32xf32>
    %419 = arith.mulf %418, %405 : vector<8x32xf32>
    %cst_101 = arith.constant 1.000000e+00 : f32
    %420 = vector.broadcast %cst_101 : f32 to vector<8x1xf32>
    %421 = arith.subf %420, %410 : vector<8x1xf32>
    %422 = vector.broadcast %421 : vector<8x1xf32> to vector<8x32xf32>
    %423 = arith.mulf %422, %372 : vector<8x32xf32>
    %424 = arith.addf %419, %423 : vector<8x32xf32>
    %425 = vector.broadcast %410 : vector<8x1xf32> to vector<8x32xf32>
    %426 = arith.mulf %417, %425 : vector<8x32xf32>
    %427 = arith.index_cast %378 : i32 to index
    %c0_102 = arith.constant 0 : index
    %428 = vector.load %arg13[%427, %c0_102] : memref<64x64xf32, #tpu.memory_space<vmem>>, vector<8x32xf32>
    tpu.vector_store %arg13[%427, %c0_102], %426 {strides = array<i32>} : memref<64x64xf32, #tpu.memory_space<vmem>>, vector<8x32xf32>,
    %c8_i32_103 = arith.constant 8 : i32
    %c0_i32_104 = arith.constant 0 : i32
    %c7_i32_105 = arith.constant 7 : i32
    %429 = arith.subi %c7_i32_105, %c0_i32_104 : i32
    %c8_i32_106 = arith.constant 8 : i32
    %430 = arith.muli %429, %c8_i32_106 : i32
    %431 = tpu.assume_multiple %430, 8 : i32
    %432 = arith.index_cast %431 : i32 to index
    %c128 = arith.constant 128 : index
    %433 = vector.load %arg12[%432, %c128] : memref<64x256xf32, #tpu.memory_space<vmem>>, vector<8x128xf32>
    %cst_107 = arith.constant dense<0.000000e+00> : vector<8x128xf32>
    %434 = tpu.matmul %12, %11, %cst_107 {dimension_numbers = #tpu.dot_dimension_numbers<[1], [0], [0], [1], [0, 0, 1, 1], [], []>} : vector<8x32xf32>, vector<32x128xf32>, vector<8x128xf32> -> vector<8x128xf32>
    %435 = arith.addf %433, %434 : vector<8x128xf32>
    %436 = vector.extract_strided_slice %435 {offsets = [0, 0], sizes = [8, 32], strides = [1, 1]} : vector<8x128xf32> to vector<8x32xf32>
    %437 = arith.negf %436 : vector<8x32xf32>
    %438 = math.exp %437 : vector<8x32xf32>
    %cst_108 = arith.constant 1.000000e+00 : f32
    %439 = vector.broadcast %cst_108 : f32 to vector<8x32xf32>
    %440 = arith.addf %439, %438 : vector<8x32xf32>
    %441 = arith.divf %439, %440 : vector<8x32xf32>
    %442 = vector.extract_strided_slice %435 {offsets = [0, 32], sizes = [8, 32], strides = [1, 1]} : vector<8x128xf32> to vector<8x32xf32>
    %443 = arith.negf %442 : vector<8x32xf32>
    %444 = math.exp %443 : vector<8x32xf32>
    %cst_109 = arith.constant 1.000000e+00 : f32
    %445 = vector.broadcast %cst_109 : f32 to vector<8x32xf32>
    %446 = arith.addf %445, %444 : vector<8x32xf32>
    %447 = arith.divf %445, %446 : vector<8x32xf32>
    %448 = vector.extract_strided_slice %435 {offsets = [0, 64], sizes = [8, 32], strides = [1, 1]} : vector<8x128xf32> to vector<8x32xf32>
    %449 = math.tanh %448 : vector<8x32xf32>
    %450 = vector.extract_strided_slice %435 {offsets = [0, 96], sizes = [8, 32], strides = [1, 1]} : vector<8x128xf32> to vector<8x32xf32>
    %451 = arith.negf %450 : vector<8x32xf32>
    %452 = math.exp %451 : vector<8x32xf32>
    %cst_110 = arith.constant 1.000000e+00 : f32
    %453 = vector.broadcast %cst_110 : f32 to vector<8x32xf32>
    %454 = arith.addf %453, %452 : vector<8x32xf32>
    %455 = arith.divf %453, %454 : vector<8x32xf32>
    %456 = arith.mulf %447, %12 : vector<8x32xf32>
    %457 = arith.mulf %441, %449 : vector<8x32xf32>
    %458 = arith.addf %456, %457 : vector<8x32xf32>
    %459 = math.tanh %458 : vector<8x32xf32>
    %460 = arith.mulf %455, %459 : vector<8x32xf32>
    %461 = arith.index_cast %429 : i32 to index
    %c0_111 = arith.constant 0 : index
    %c0_112 = arith.constant 0 : index
    %462 = vector.load %arg2[%461, %c0_111, %c0_112] : memref<8x8x1xf32, #tpu.memory_space<vmem>>, vector<1x8x1xf32>
    %463 = vector.shape_cast %462 : vector<1x8x1xf32> to vector<8x1xf32>
    %464 = vector.broadcast %463 : vector<8x1xf32> to vector<8x32xf32>
    %465 = arith.mulf %464, %460 : vector<8x32xf32>
    %cst_113 = arith.constant 1.000000e+00 : f32
    %466 = vector.broadcast %cst_113 : f32 to vector<8x1xf32>
    %467 = arith.subf %466, %463 : vector<8x1xf32>
    %468 = vector.broadcast %467 : vector<8x1xf32> to vector<8x32xf32>
    %469 = arith.mulf %468, %12 : vector<8x32xf32>
    %470 = arith.addf %465, %469 : vector<8x32xf32>
    %471 = vector.broadcast %463 : vector<8x1xf32> to vector<8x32xf32>
    %472 = arith.mulf %471, %458 : vector<8x32xf32>
    %cst_114 = arith.constant 1.000000e+00 : f32
    %473 = vector.broadcast %cst_114 : f32 to vector<8x1xf32>
    %474 = arith.subf %473, %463 : vector<8x1xf32>
    %475 = vector.broadcast %474 : vector<8x1xf32> to vector<8x32xf32>
    %476 = arith.mulf %475, %12 : vector<8x32xf32>
    %477 = arith.addf %472, %476 : vector<8x32xf32>
    %478 = vector.broadcast %463 : vector<8x1xf32> to vector<8x32xf32>
    %479 = arith.mulf %470, %478 : vector<8x32xf32>
    %480 = arith.index_cast %431 : i32 to index
    %c32 = arith.constant 32 : index
    %481 = vector.load %arg13[%480, %c32] : memref<64x64xf32, #tpu.memory_space<vmem>>, vector<8x32xf32>
    tpu.vector_store %arg13[%480, %c32], %479 {strides = array<i32>} : memref<64x64xf32, #tpu.memory_space<vmem>>, vector<8x32xf32>,
    %c1_i32_115 = arith.constant 1 : i32
    %c7_i32_116 = arith.constant 7 : i32
    %482 = arith.subi %c7_i32_116, %c1_i32_115 : i32
    %c8_i32_117 = arith.constant 8 : i32
    %483 = arith.muli %482, %c8_i32_117 : i32
    %484 = tpu.assume_multiple %483, 8 : i32
    %485 = arith.index_cast %484 : i32 to index
    %c128_118 = arith.constant 128 : index
    %486 = vector.load %arg12[%485, %c128_118] : memref<64x256xf32, #tpu.memory_space<vmem>>, vector<8x128xf32>
    %cst_119 = arith.constant dense<0.000000e+00> : vector<8x128xf32>
    %487 = tpu.matmul %470, %11, %cst_119 {dimension_numbers = #tpu.dot_dimension_numbers<[1], [0], [0], [1], [0, 0, 1, 1], [], []>} : vector<8x32xf32>, vector<32x128xf32>, vector<8x128xf32> -> vector<8x128xf32>
    %488 = arith.addf %486, %487 : vector<8x128xf32>
    %489 = vector.extract_strided_slice %488 {offsets = [0, 0], sizes = [8, 32], strides = [1, 1]} : vector<8x128xf32> to vector<8x32xf32>
    %490 = arith.negf %489 : vector<8x32xf32>
    %491 = math.exp %490 : vector<8x32xf32>
    %cst_120 = arith.constant 1.000000e+00 : f32
    %492 = vector.broadcast %cst_120 : f32 to vector<8x32xf32>
    %493 = arith.addf %492, %491 : vector<8x32xf32>
    %494 = arith.divf %492, %493 : vector<8x32xf32>
    %495 = vector.extract_strided_slice %488 {offsets = [0, 32], sizes = [8, 32], strides = [1, 1]} : vector<8x128xf32> to vector<8x32xf32>
    %496 = arith.negf %495 : vector<8x32xf32>
    %497 = math.exp %496 : vector<8x32xf32>
    %cst_121 = arith.constant 1.000000e+00 : f32
    %498 = vector.broadcast %cst_121 : f32 to vector<8x32xf32>
    %499 = arith.addf %498, %497 : vector<8x32xf32>
    %500 = arith.divf %498, %499 : vector<8x32xf32>
    %501 = vector.extract_strided_slice %488 {offsets = [0, 64], sizes = [8, 32], strides = [1, 1]} : vector<8x128xf32> to vector<8x32xf32>
    %502 = math.tanh %501 : vector<8x32xf32>
    %503 = vector.extract_strided_slice %488 {offsets = [0, 96], sizes = [8, 32], strides = [1, 1]} : vector<8x128xf32> to vector<8x32xf32>
    %504 = arith.negf %503 : vector<8x32xf32>
    %505 = math.exp %504 : vector<8x32xf32>
    %cst_122 = arith.constant 1.000000e+00 : f32
    %506 = vector.broadcast %cst_122 : f32 to vector<8x32xf32>
    %507 = arith.addf %506, %505 : vector<8x32xf32>
    %508 = arith.divf %506, %507 : vector<8x32xf32>
    %509 = arith.mulf %500, %477 : vector<8x32xf32>
    %510 = arith.mulf %494, %502 : vector<8x32xf32>
    %511 = arith.addf %509, %510 : vector<8x32xf32>
    %512 = math.tanh %511 : vector<8x32xf32>
    %513 = arith.mulf %508, %512 : vector<8x32xf32>
    %514 = arith.index_cast %482 : i32 to index
    %c0_123 = arith.constant 0 : index
    %c0_124 = arith.constant 0 : index
    %515 = vector.load %arg2[%514, %c0_123, %c0_124] : memref<8x8x1xf32, #tpu.memory_space<vmem>>, vector<1x8x1xf32>
    %516 = vector.shape_cast %515 : vector<1x8x1xf32> to vector<8x1xf32>
    %517 = vector.broadcast %516 : vector<8x1xf32> to vector<8x32xf32>
    %518 = arith.mulf %517, %513 : vector<8x32xf32>
    %cst_125 = arith.constant 1.000000e+00 : f32
    %519 = vector.broadcast %cst_125 : f32 to vector<8x1xf32>
    %520 = arith.subf %519, %516 : vector<8x1xf32>
    %521 = vector.broadcast %520 : vector<8x1xf32> to vector<8x32xf32>
    %522 = arith.mulf %521, %470 : vector<8x32xf32>
    %523 = arith.addf %518, %522 : vector<8x32xf32>
    %524 = vector.broadcast %516 : vector<8x1xf32> to vector<8x32xf32>
    %525 = arith.mulf %524, %511 : vector<8x32xf32>
    %cst_126 = arith.constant 1.000000e+00 : f32
    %526 = vector.broadcast %cst_126 : f32 to vector<8x1xf32>
    %527 = arith.subf %526, %516 : vector<8x1xf32>
    %528 = vector.broadcast %527 : vector<8x1xf32> to vector<8x32xf32>
    %529 = arith.mulf %528, %477 : vector<8x32xf32>
    %530 = arith.addf %525, %529 : vector<8x32xf32>
    %531 = vector.broadcast %516 : vector<8x1xf32> to vector<8x32xf32>
    %532 = arith.mulf %523, %531 : vector<8x32xf32>
    %533 = arith.index_cast %484 : i32 to index
    %c32_127 = arith.constant 32 : index
    %534 = vector.load %arg13[%533, %c32_127] : memref<64x64xf32, #tpu.memory_space<vmem>>, vector<8x32xf32>
    tpu.vector_store %arg13[%533, %c32_127], %532 {strides = array<i32>} : memref<64x64xf32, #tpu.memory_space<vmem>>, vector<8x32xf32>,
    %c2_i32_128 = arith.constant 2 : i32
    %c7_i32_129 = arith.constant 7 : i32
    %535 = arith.subi %c7_i32_129, %c2_i32_128 : i32
    %c8_i32_130 = arith.constant 8 : i32
    %536 = arith.muli %535, %c8_i32_130 : i32
    %537 = tpu.assume_multiple %536, 8 : i32
    %538 = arith.index_cast %537 : i32 to index
    %c128_131 = arith.constant 128 : index
    %539 = vector.load %arg12[%538, %c128_131] : memref<64x256xf32, #tpu.memory_space<vmem>>, vector<8x128xf32>
    %cst_132 = arith.constant dense<0.000000e+00> : vector<8x128xf32>
    %540 = tpu.matmul %523, %11, %cst_132 {dimension_numbers = #tpu.dot_dimension_numbers<[1], [0], [0], [1], [0, 0, 1, 1], [], []>} : vector<8x32xf32>, vector<32x128xf32>, vector<8x128xf32> -> vector<8x128xf32>
    %541 = arith.addf %539, %540 : vector<8x128xf32>
    %542 = vector.extract_strided_slice %541 {offsets = [0, 0], sizes = [8, 32], strides = [1, 1]} : vector<8x128xf32> to vector<8x32xf32>
    %543 = arith.negf %542 : vector<8x32xf32>
    %544 = math.exp %543 : vector<8x32xf32>
    %cst_133 = arith.constant 1.000000e+00 : f32
    %545 = vector.broadcast %cst_133 : f32 to vector<8x32xf32>
    %546 = arith.addf %545, %544 : vector<8x32xf32>
    %547 = arith.divf %545, %546 : vector<8x32xf32>
    %548 = vector.extract_strided_slice %541 {offsets = [0, 32], sizes = [8, 32], strides = [1, 1]} : vector<8x128xf32> to vector<8x32xf32>
    %549 = arith.negf %548 : vector<8x32xf32>
    %550 = math.exp %549 : vector<8x32xf32>
    %cst_134 = arith.constant 1.000000e+00 : f32
    %551 = vector.broadcast %cst_134 : f32 to vector<8x32xf32>
    %552 = arith.addf %551, %550 : vector<8x32xf32>
    %553 = arith.divf %551, %552 : vector<8x32xf32>
    %554 = vector.extract_strided_slice %541 {offsets = [0, 64], sizes = [8, 32], strides = [1, 1]} : vector<8x128xf32> to vector<8x32xf32>
    %555 = math.tanh %554 : vector<8x32xf32>
    %556 = vector.extract_strided_slice %541 {offsets = [0, 96], sizes = [8, 32], strides = [1, 1]} : vector<8x128xf32> to vector<8x32xf32>
    %557 = arith.negf %556 : vector<8x32xf32>
    %558 = math.exp %557 : vector<8x32xf32>
    %cst_135 = arith.constant 1.000000e+00 : f32
    %559 = vector.broadcast %cst_135 : f32 to vector<8x32xf32>
    %560 = arith.addf %559, %558 : vector<8x32xf32>
    %561 = arith.divf %559, %560 : vector<8x32xf32>
    %562 = arith.mulf %553, %530 : vector<8x32xf32>
    %563 = arith.mulf %547, %555 : vector<8x32xf32>
    %564 = arith.addf %562, %563 : vector<8x32xf32>
    %565 = math.tanh %564 : vector<8x32xf32>
    %566 = arith.mulf %561, %565 : vector<8x32xf32>
    %567 = arith.index_cast %535 : i32 to index
    %c0_136 = arith.constant 0 : index
    %c0_137 = arith.constant 0 : index
    %568 = vector.load %arg2[%567, %c0_136, %c0_137] : memref<8x8x1xf32, #tpu.memory_space<vmem>>, vector<1x8x1xf32>
    %569 = vector.shape_cast %568 : vector<1x8x1xf32> to vector<8x1xf32>
    %570 = vector.broadcast %569 : vector<8x1xf32> to vector<8x32xf32>
    %571 = arith.mulf %570, %566 : vector<8x32xf32>
    %cst_138 = arith.constant 1.000000e+00 : f32
    %572 = vector.broadcast %cst_138 : f32 to vector<8x1xf32>
    %573 = arith.subf %572, %569 : vector<8x1xf32>
    %574 = vector.broadcast %573 : vector<8x1xf32> to vector<8x32xf32>
    %575 = arith.mulf %574, %523 : vector<8x32xf32>
    %576 = arith.addf %571, %575 : vector<8x32xf32>
    %577 = vector.broadcast %569 : vector<8x1xf32> to vector<8x32xf32>
    %578 = arith.mulf %577, %564 : vector<8x32xf32>
    %cst_139 = arith.constant 1.000000e+00 : f32
    %579 = vector.broadcast %cst_139 : f32 to vector<8x1xf32>
    %580 = arith.subf %579, %569 : vector<8x1xf32>
    %581 = vector.broadcast %580 : vector<8x1xf32> to vector<8x32xf32>
    %582 = arith.mulf %581, %530 : vector<8x32xf32>
    %583 = arith.addf %578, %582 : vector<8x32xf32>
    %584 = vector.broadcast %569 : vector<8x1xf32> to vector<8x32xf32>
    %585 = arith.mulf %576, %584 : vector<8x32xf32>
    %586 = arith.index_cast %537 : i32 to index
    %c32_140 = arith.constant 32 : index
    %587 = vector.load %arg13[%586, %c32_140] : memref<64x64xf32, #tpu.memory_space<vmem>>, vector<8x32xf32>
    tpu.vector_store %arg13[%586, %c32_140], %585 {strides = array<i32>} : memref<64x64xf32, #tpu.memory_space<vmem>>, vector<8x32xf32>,
    %c3_i32_141 = arith.constant 3 : i32
    %c7_i32_142 = arith.constant 7 : i32
    %588 = arith.subi %c7_i32_142, %c3_i32_141 : i32
    %c8_i32_143 = arith.constant 8 : i32
    %589 = arith.muli %588, %c8_i32_143 : i32
    %590 = tpu.assume_multiple %589, 8 : i32
    %591 = arith.index_cast %590 : i32 to index
    %c128_144 = arith.constant 128 : index
    %592 = vector.load %arg12[%591, %c128_144] : memref<64x256xf32, #tpu.memory_space<vmem>>, vector<8x128xf32>
    %cst_145 = arith.constant dense<0.000000e+00> : vector<8x128xf32>
    %593 = tpu.matmul %576, %11, %cst_145 {dimension_numbers = #tpu.dot_dimension_numbers<[1], [0], [0], [1], [0, 0, 1, 1], [], []>} : vector<8x32xf32>, vector<32x128xf32>, vector<8x128xf32> -> vector<8x128xf32>
    %594 = arith.addf %592, %593 : vector<8x128xf32>
    %595 = vector.extract_strided_slice %594 {offsets = [0, 0], sizes = [8, 32], strides = [1, 1]} : vector<8x128xf32> to vector<8x32xf32>
    %596 = arith.negf %595 : vector<8x32xf32>
    %597 = math.exp %596 : vector<8x32xf32>
    %cst_146 = arith.constant 1.000000e+00 : f32
    %598 = vector.broadcast %cst_146 : f32 to vector<8x32xf32>
    %599 = arith.addf %598, %597 : vector<8x32xf32>
    %600 = arith.divf %598, %599 : vector<8x32xf32>
    %601 = vector.extract_strided_slice %594 {offsets = [0, 32], sizes = [8, 32], strides = [1, 1]} : vector<8x128xf32> to vector<8x32xf32>
    %602 = arith.negf %601 : vector<8x32xf32>
    %603 = math.exp %602 : vector<8x32xf32>
    %cst_147 = arith.constant 1.000000e+00 : f32
    %604 = vector.broadcast %cst_147 : f32 to vector<8x32xf32>
    %605 = arith.addf %604, %603 : vector<8x32xf32>
    %606 = arith.divf %604, %605 : vector<8x32xf32>
    %607 = vector.extract_strided_slice %594 {offsets = [0, 64], sizes = [8, 32], strides = [1, 1]} : vector<8x128xf32> to vector<8x32xf32>
    %608 = math.tanh %607 : vector<8x32xf32>
    %609 = vector.extract_strided_slice %594 {offsets = [0, 96], sizes = [8, 32], strides = [1, 1]} : vector<8x128xf32> to vector<8x32xf32>
    %610 = arith.negf %609 : vector<8x32xf32>
    %611 = math.exp %610 : vector<8x32xf32>
    %cst_148 = arith.constant 1.000000e+00 : f32
    %612 = vector.broadcast %cst_148 : f32 to vector<8x32xf32>
    %613 = arith.addf %612, %611 : vector<8x32xf32>
    %614 = arith.divf %612, %613 : vector<8x32xf32>
    %615 = arith.mulf %606, %583 : vector<8x32xf32>
    %616 = arith.mulf %600, %608 : vector<8x32xf32>
    %617 = arith.addf %615, %616 : vector<8x32xf32>
    %618 = math.tanh %617 : vector<8x32xf32>
    %619 = arith.mulf %614, %618 : vector<8x32xf32>
    %620 = arith.index_cast %588 : i32 to index
    %c0_149 = arith.constant 0 : index
    %c0_150 = arith.constant 0 : index
    %621 = vector.load %arg2[%620, %c0_149, %c0_150] : memref<8x8x1xf32, #tpu.memory_space<vmem>>, vector<1x8x1xf32>
    %622 = vector.shape_cast %621 : vector<1x8x1xf32> to vector<8x1xf32>
    %623 = vector.broadcast %622 : vector<8x1xf32> to vector<8x32xf32>
    %624 = arith.mulf %623, %619 : vector<8x32xf32>
    %cst_151 = arith.constant 1.000000e+00 : f32
    %625 = vector.broadcast %cst_151 : f32 to vector<8x1xf32>
    %626 = arith.subf %625, %622 : vector<8x1xf32>
    %627 = vector.broadcast %626 : vector<8x1xf32> to vector<8x32xf32>
    %628 = arith.mulf %627, %576 : vector<8x32xf32>
    %629 = arith.addf %624, %628 : vector<8x32xf32>
    %630 = vector.broadcast %622 : vector<8x1xf32> to vector<8x32xf32>
    %631 = arith.mulf %630, %617 : vector<8x32xf32>
    %cst_152 = arith.constant 1.000000e+00 : f32
    %632 = vector.broadcast %cst_152 : f32 to vector<8x1xf32>
    %633 = arith.subf %632, %622 : vector<8x1xf32>
    %634 = vector.broadcast %633 : vector<8x1xf32> to vector<8x32xf32>
    %635 = arith.mulf %634, %583 : vector<8x32xf32>
    %636 = arith.addf %631, %635 : vector<8x32xf32>
    %637 = vector.broadcast %622 : vector<8x1xf32> to vector<8x32xf32>
    %638 = arith.mulf %629, %637 : vector<8x32xf32>
    %639 = arith.index_cast %590 : i32 to index
    %c32_153 = arith.constant 32 : index
    %640 = vector.load %arg13[%639, %c32_153] : memref<64x64xf32, #tpu.memory_space<vmem>>, vector<8x32xf32>
    tpu.vector_store %arg13[%639, %c32_153], %638 {strides = array<i32>} : memref<64x64xf32, #tpu.memory_space<vmem>>, vector<8x32xf32>,
    %c4_i32_154 = arith.constant 4 : i32
    %c7_i32_155 = arith.constant 7 : i32
    %641 = arith.subi %c7_i32_155, %c4_i32_154 : i32
    %c8_i32_156 = arith.constant 8 : i32
    %642 = arith.muli %641, %c8_i32_156 : i32
    %643 = tpu.assume_multiple %642, 8 : i32
    %644 = arith.index_cast %643 : i32 to index
    %c128_157 = arith.constant 128 : index
    %645 = vector.load %arg12[%644, %c128_157] : memref<64x256xf32, #tpu.memory_space<vmem>>, vector<8x128xf32>
    %cst_158 = arith.constant dense<0.000000e+00> : vector<8x128xf32>
    %646 = tpu.matmul %629, %11, %cst_158 {dimension_numbers = #tpu.dot_dimension_numbers<[1], [0], [0], [1], [0, 0, 1, 1], [], []>} : vector<8x32xf32>, vector<32x128xf32>, vector<8x128xf32> -> vector<8x128xf32>
    %647 = arith.addf %645, %646 : vector<8x128xf32>
    %648 = vector.extract_strided_slice %647 {offsets = [0, 0], sizes = [8, 32], strides = [1, 1]} : vector<8x128xf32> to vector<8x32xf32>
    %649 = arith.negf %648 : vector<8x32xf32>
    %650 = math.exp %649 : vector<8x32xf32>
    %cst_159 = arith.constant 1.000000e+00 : f32
    %651 = vector.broadcast %cst_159 : f32 to vector<8x32xf32>
    %652 = arith.addf %651, %650 : vector<8x32xf32>
    %653 = arith.divf %651, %652 : vector<8x32xf32>
    %654 = vector.extract_strided_slice %647 {offsets = [0, 32], sizes = [8, 32], strides = [1, 1]} : vector<8x128xf32> to vector<8x32xf32>
    %655 = arith.negf %654 : vector<8x32xf32>
    %656 = math.exp %655 : vector<8x32xf32>
    %cst_160 = arith.constant 1.000000e+00 : f32
    %657 = vector.broadcast %cst_160 : f32 to vector<8x32xf32>
    %658 = arith.addf %657, %656 : vector<8x32xf32>
    %659 = arith.divf %657, %658 : vector<8x32xf32>
    %660 = vector.extract_strided_slice %647 {offsets = [0, 64], sizes = [8, 32], strides = [1, 1]} : vector<8x128xf32> to vector<8x32xf32>
    %661 = math.tanh %660 : vector<8x32xf32>
    %662 = vector.extract_strided_slice %647 {offsets = [0, 96], sizes = [8, 32], strides = [1, 1]} : vector<8x128xf32> to vector<8x32xf32>
    %663 = arith.negf %662 : vector<8x32xf32>
    %664 = math.exp %663 : vector<8x32xf32>
    %cst_161 = arith.constant 1.000000e+00 : f32
    %665 = vector.broadcast %cst_161 : f32 to vector<8x32xf32>
    %666 = arith.addf %665, %664 : vector<8x32xf32>
    %667 = arith.divf %665, %666 : vector<8x32xf32>
    %668 = arith.mulf %659, %636 : vector<8x32xf32>
    %669 = arith.mulf %653, %661 : vector<8x32xf32>
    %670 = arith.addf %668, %669 : vector<8x32xf32>
    %671 = math.tanh %670 : vector<8x32xf32>
    %672 = arith.mulf %667, %671 : vector<8x32xf32>
    %673 = arith.index_cast %641 : i32 to index
    %c0_162 = arith.constant 0 : index
    %c0_163 = arith.constant 0 : index
    %674 = vector.load %arg2[%673, %c0_162, %c0_163] : memref<8x8x1xf32, #tpu.memory_space<vmem>>, vector<1x8x1xf32>
    %675 = vector.shape_cast %674 : vector<1x8x1xf32> to vector<8x1xf32>
    %676 = vector.broadcast %675 : vector<8x1xf32> to vector<8x32xf32>
    %677 = arith.mulf %676, %672 : vector<8x32xf32>
    %cst_164 = arith.constant 1.000000e+00 : f32
    %678 = vector.broadcast %cst_164 : f32 to vector<8x1xf32>
    %679 = arith.subf %678, %675 : vector<8x1xf32>
    %680 = vector.broadcast %679 : vector<8x1xf32> to vector<8x32xf32>
    %681 = arith.mulf %680, %629 : vector<8x32xf32>
    %682 = arith.addf %677, %681 : vector<8x32xf32>
    %683 = vector.broadcast %675 : vector<8x1xf32> to vector<8x32xf32>
    %684 = arith.mulf %683, %670 : vector<8x32xf32>
    %cst_165 = arith.constant 1.000000e+00 : f32
    %685 = vector.broadcast %cst_165 : f32 to vector<8x1xf32>
    %686 = arith.subf %685, %675 : vector<8x1xf32>
    %687 = vector.broadcast %686 : vector<8x1xf32> to vector<8x32xf32>
    %688 = arith.mulf %687, %636 : vector<8x32xf32>
    %689 = arith.addf %684, %688 : vector<8x32xf32>
    %690 = vector.broadcast %675 : vector<8x1xf32> to vector<8x32xf32>
    %691 = arith.mulf %682, %690 : vector<8x32xf32>
    %692 = arith.index_cast %643 : i32 to index
    %c32_166 = arith.constant 32 : index
    %693 = vector.load %arg13[%692, %c32_166] : memref<64x64xf32, #tpu.memory_space<vmem>>, vector<8x32xf32>
    tpu.vector_store %arg13[%692, %c32_166], %691 {strides = array<i32>} : memref<64x64xf32, #tpu.memory_space<vmem>>, vector<8x32xf32>,
    %c5_i32_167 = arith.constant 5 : i32
    %c7_i32_168 = arith.constant 7 : i32
    %694 = arith.subi %c7_i32_168, %c5_i32_167 : i32
    %c8_i32_169 = arith.constant 8 : i32
    %695 = arith.muli %694, %c8_i32_169 : i32
    %696 = tpu.assume_multiple %695, 8 : i32
    %697 = arith.index_cast %696 : i32 to index
    %c128_170 = arith.constant 128 : index
    %698 = vector.load %arg12[%697, %c128_170] : memref<64x256xf32, #tpu.memory_space<vmem>>, vector<8x128xf32>
    %cst_171 = arith.constant dense<0.000000e+00> : vector<8x128xf32>
    %699 = tpu.matmul %682, %11, %cst_171 {dimension_numbers = #tpu.dot_dimension_numbers<[1], [0], [0], [1], [0, 0, 1, 1], [], []>} : vector<8x32xf32>, vector<32x128xf32>, vector<8x128xf32> -> vector<8x128xf32>
    %700 = arith.addf %698, %699 : vector<8x128xf32>
    %701 = vector.extract_strided_slice %700 {offsets = [0, 0], sizes = [8, 32], strides = [1, 1]} : vector<8x128xf32> to vector<8x32xf32>
    %702 = arith.negf %701 : vector<8x32xf32>
    %703 = math.exp %702 : vector<8x32xf32>
    %cst_172 = arith.constant 1.000000e+00 : f32
    %704 = vector.broadcast %cst_172 : f32 to vector<8x32xf32>
    %705 = arith.addf %704, %703 : vector<8x32xf32>
    %706 = arith.divf %704, %705 : vector<8x32xf32>
    %707 = vector.extract_strided_slice %700 {offsets = [0, 32], sizes = [8, 32], strides = [1, 1]} : vector<8x128xf32> to vector<8x32xf32>
    %708 = arith.negf %707 : vector<8x32xf32>
    %709 = math.exp %708 : vector<8x32xf32>
    %cst_173 = arith.constant 1.000000e+00 : f32
    %710 = vector.broadcast %cst_173 : f32 to vector<8x32xf32>
    %711 = arith.addf %710, %709 : vector<8x32xf32>
    %712 = arith.divf %710, %711 : vector<8x32xf32>
    %713 = vector.extract_strided_slice %700 {offsets = [0, 64], sizes = [8, 32], strides = [1, 1]} : vector<8x128xf32> to vector<8x32xf32>
    %714 = math.tanh %713 : vector<8x32xf32>
    %715 = vector.extract_strided_slice %700 {offsets = [0, 96], sizes = [8, 32], strides = [1, 1]} : vector<8x128xf32> to vector<8x32xf32>
    %716 = arith.negf %715 : vector<8x32xf32>
    %717 = math.exp %716 : vector<8x32xf32>
    %cst_174 = arith.constant 1.000000e+00 : f32
    %718 = vector.broadcast %cst_174 : f32 to vector<8x32xf32>
    %719 = arith.addf %718, %717 : vector<8x32xf32>
    %720 = arith.divf %718, %719 : vector<8x32xf32>
    %721 = arith.mulf %712, %689 : vector<8x32xf32>
    %722 = arith.mulf %706, %714 : vector<8x32xf32>
    %723 = arith.addf %721, %722 : vector<8x32xf32>
    %724 = math.tanh %723 : vector<8x32xf32>
    %725 = arith.mulf %720, %724 : vector<8x32xf32>
    %726 = arith.index_cast %694 : i32 to index
    %c0_175 = arith.constant 0 : index
    %c0_176 = arith.constant 0 : index
    %727 = vector.load %arg2[%726, %c0_175, %c0_176] : memref<8x8x1xf32, #tpu.memory_space<vmem>>, vector<1x8x1xf32>
    %728 = vector.shape_cast %727 : vector<1x8x1xf32> to vector<8x1xf32>
    %729 = vector.broadcast %728 : vector<8x1xf32> to vector<8x32xf32>
    %730 = arith.mulf %729, %725 : vector<8x32xf32>
    %cst_177 = arith.constant 1.000000e+00 : f32
    %731 = vector.broadcast %cst_177 : f32 to vector<8x1xf32>
    %732 = arith.subf %731, %728 : vector<8x1xf32>
    %733 = vector.broadcast %732 : vector<8x1xf32> to vector<8x32xf32>
    %734 = arith.mulf %733, %682 : vector<8x32xf32>
    %735 = arith.addf %730, %734 : vector<8x32xf32>
    %736 = vector.broadcast %728 : vector<8x1xf32> to vector<8x32xf32>
    %737 = arith.mulf %736, %723 : vector<8x32xf32>
    %cst_178 = arith.constant 1.000000e+00 : f32
    %738 = vector.broadcast %cst_178 : f32 to vector<8x1xf32>
    %739 = arith.subf %738, %728 : vector<8x1xf32>
    %740 = vector.broadcast %739 : vector<8x1xf32> to vector<8x32xf32>
    %741 = arith.mulf %740, %689 : vector<8x32xf32>
    %742 = arith.addf %737, %741 : vector<8x32xf32>
    %743 = vector.broadcast %728 : vector<8x1xf32> to vector<8x32xf32>
    %744 = arith.mulf %735, %743 : vector<8x32xf32>
    %745 = arith.index_cast %696 : i32 to index
    %c32_179 = arith.constant 32 : index
    %746 = vector.load %arg13[%745, %c32_179] : memref<64x64xf32, #tpu.memory_space<vmem>>, vector<8x32xf32>
    tpu.vector_store %arg13[%745, %c32_179], %744 {strides = array<i32>} : memref<64x64xf32, #tpu.memory_space<vmem>>, vector<8x32xf32>,
    %c6_i32_180 = arith.constant 6 : i32
    %c7_i32_181 = arith.constant 7 : i32
    %747 = arith.subi %c7_i32_181, %c6_i32_180 : i32
    %c8_i32_182 = arith.constant 8 : i32
    %748 = arith.muli %747, %c8_i32_182 : i32
    %749 = tpu.assume_multiple %748, 8 : i32
    %750 = arith.index_cast %749 : i32 to index
    %c128_183 = arith.constant 128 : index
    %751 = vector.load %arg12[%750, %c128_183] : memref<64x256xf32, #tpu.memory_space<vmem>>, vector<8x128xf32>
    %cst_184 = arith.constant dense<0.000000e+00> : vector<8x128xf32>
    %752 = tpu.matmul %735, %11, %cst_184 {dimension_numbers = #tpu.dot_dimension_numbers<[1], [0], [0], [1], [0, 0, 1, 1], [], []>} : vector<8x32xf32>, vector<32x128xf32>, vector<8x128xf32> -> vector<8x128xf32>
    %753 = arith.addf %751, %752 : vector<8x128xf32>
    %754 = vector.extract_strided_slice %753 {offsets = [0, 0], sizes = [8, 32], strides = [1, 1]} : vector<8x128xf32> to vector<8x32xf32>
    %755 = arith.negf %754 : vector<8x32xf32>
    %756 = math.exp %755 : vector<8x32xf32>
    %cst_185 = arith.constant 1.000000e+00 : f32
    %757 = vector.broadcast %cst_185 : f32 to vector<8x32xf32>
    %758 = arith.addf %757, %756 : vector<8x32xf32>
    %759 = arith.divf %757, %758 : vector<8x32xf32>
    %760 = vector.extract_strided_slice %753 {offsets = [0, 32], sizes = [8, 32], strides = [1, 1]} : vector<8x128xf32> to vector<8x32xf32>
    %761 = arith.negf %760 : vector<8x32xf32>
    %762 = math.exp %761 : vector<8x32xf32>
    %cst_186 = arith.constant 1.000000e+00 : f32
    %763 = vector.broadcast %cst_186 : f32 to vector<8x32xf32>
    %764 = arith.addf %763, %762 : vector<8x32xf32>
    %765 = arith.divf %763, %764 : vector<8x32xf32>
    %766 = vector.extract_strided_slice %753 {offsets = [0, 64], sizes = [8, 32], strides = [1, 1]} : vector<8x128xf32> to vector<8x32xf32>
    %767 = math.tanh %766 : vector<8x32xf32>
    %768 = vector.extract_strided_slice %753 {offsets = [0, 96], sizes = [8, 32], strides = [1, 1]} : vector<8x128xf32> to vector<8x32xf32>
    %769 = arith.negf %768 : vector<8x32xf32>
    %770 = math.exp %769 : vector<8x32xf32>
    %cst_187 = arith.constant 1.000000e+00 : f32
    %771 = vector.broadcast %cst_187 : f32 to vector<8x32xf32>
    %772 = arith.addf %771, %770 : vector<8x32xf32>
    %773 = arith.divf %771, %772 : vector<8x32xf32>
    %774 = arith.mulf %765, %742 : vector<8x32xf32>
    %775 = arith.mulf %759, %767 : vector<8x32xf32>
    %776 = arith.addf %774, %775 : vector<8x32xf32>
    %777 = math.tanh %776 : vector<8x32xf32>
    %778 = arith.mulf %773, %777 : vector<8x32xf32>
    %779 = arith.index_cast %747 : i32 to index
    %c0_188 = arith.constant 0 : index
    %c0_189 = arith.constant 0 : index
    %780 = vector.load %arg2[%779, %c0_188, %c0_189] : memref<8x8x1xf32, #tpu.memory_space<vmem>>, vector<1x8x1xf32>
    %781 = vector.shape_cast %780 : vector<1x8x1xf32> to vector<8x1xf32>
    %782 = vector.broadcast %781 : vector<8x1xf32> to vector<8x32xf32>
    %783 = arith.mulf %782, %778 : vector<8x32xf32>
    %cst_190 = arith.constant 1.000000e+00 : f32
    %784 = vector.broadcast %cst_190 : f32 to vector<8x1xf32>
    %785 = arith.subf %784, %781 : vector<8x1xf32>
    %786 = vector.broadcast %785 : vector<8x1xf32> to vector<8x32xf32>
    %787 = arith.mulf %786, %735 : vector<8x32xf32>
    %788 = arith.addf %783, %787 : vector<8x32xf32>
    %789 = vector.broadcast %781 : vector<8x1xf32> to vector<8x32xf32>
    %790 = arith.mulf %789, %776 : vector<8x32xf32>
    %cst_191 = arith.constant 1.000000e+00 : f32
    %791 = vector.broadcast %cst_191 : f32 to vector<8x1xf32>
    %792 = arith.subf %791, %781 : vector<8x1xf32>
    %793 = vector.broadcast %792 : vector<8x1xf32> to vector<8x32xf32>
    %794 = arith.mulf %793, %742 : vector<8x32xf32>
    %795 = arith.addf %790, %794 : vector<8x32xf32>
    %796 = vector.broadcast %781 : vector<8x1xf32> to vector<8x32xf32>
    %797 = arith.mulf %788, %796 : vector<8x32xf32>
    %798 = arith.index_cast %749 : i32 to index
    %c32_192 = arith.constant 32 : index
    %799 = vector.load %arg13[%798, %c32_192] : memref<64x64xf32, #tpu.memory_space<vmem>>, vector<8x32xf32>
    tpu.vector_store %arg13[%798, %c32_192], %797 {strides = array<i32>} : memref<64x64xf32, #tpu.memory_space<vmem>>, vector<8x32xf32>,
    %c7_i32_193 = arith.constant 7 : i32
    %c7_i32_194 = arith.constant 7 : i32
    %800 = arith.subi %c7_i32_194, %c7_i32_193 : i32
    %c8_i32_195 = arith.constant 8 : i32
    %801 = arith.muli %800, %c8_i32_195 : i32
    %802 = tpu.assume_multiple %801, 8 : i32
    %803 = arith.index_cast %802 : i32 to index
    %c128_196 = arith.constant 128 : index
    %804 = vector.load %arg12[%803, %c128_196] : memref<64x256xf32, #tpu.memory_space<vmem>>, vector<8x128xf32>
    %cst_197 = arith.constant dense<0.000000e+00> : vector<8x128xf32>
    %805 = tpu.matmul %788, %11, %cst_197 {dimension_numbers = #tpu.dot_dimension_numbers<[1], [0], [0], [1], [0, 0, 1, 1], [], []>} : vector<8x32xf32>, vector<32x128xf32>, vector<8x128xf32> -> vector<8x128xf32>
    %806 = arith.addf %804, %805 : vector<8x128xf32>
    %807 = vector.extract_strided_slice %806 {offsets = [0, 0], sizes = [8, 32], strides = [1, 1]} : vector<8x128xf32> to vector<8x32xf32>
    %808 = arith.negf %807 : vector<8x32xf32>
    %809 = math.exp %808 : vector<8x32xf32>
    %cst_198 = arith.constant 1.000000e+00 : f32
    %810 = vector.broadcast %cst_198 : f32 to vector<8x32xf32>
    %811 = arith.addf %810, %809 : vector<8x32xf32>
    %812 = arith.divf %810, %811 : vector<8x32xf32>
    %813 = vector.extract_strided_slice %806 {offsets = [0, 32], sizes = [8, 32], strides = [1, 1]} : vector<8x128xf32> to vector<8x32xf32>
    %814 = arith.negf %813 : vector<8x32xf32>
    %815 = math.exp %814 : vector<8x32xf32>
    %cst_199 = arith.constant 1.000000e+00 : f32
    %816 = vector.broadcast %cst_199 : f32 to vector<8x32xf32>
    %817 = arith.addf %816, %815 : vector<8x32xf32>
    %818 = arith.divf %816, %817 : vector<8x32xf32>
    %819 = vector.extract_strided_slice %806 {offsets = [0, 64], sizes = [8, 32], strides = [1, 1]} : vector<8x128xf32> to vector<8x32xf32>
    %820 = math.tanh %819 : vector<8x32xf32>
    %821 = vector.extract_strided_slice %806 {offsets = [0, 96], sizes = [8, 32], strides = [1, 1]} : vector<8x128xf32> to vector<8x32xf32>
    %822 = arith.negf %821 : vector<8x32xf32>
    %823 = math.exp %822 : vector<8x32xf32>
    %cst_200 = arith.constant 1.000000e+00 : f32
    %824 = vector.broadcast %cst_200 : f32 to vector<8x32xf32>
    %825 = arith.addf %824, %823 : vector<8x32xf32>
    %826 = arith.divf %824, %825 : vector<8x32xf32>
    %827 = arith.mulf %818, %795 : vector<8x32xf32>
    %828 = arith.mulf %812, %820 : vector<8x32xf32>
    %829 = arith.addf %827, %828 : vector<8x32xf32>
    %830 = math.tanh %829 : vector<8x32xf32>
    %831 = arith.mulf %826, %830 : vector<8x32xf32>
    %832 = arith.index_cast %800 : i32 to index
    %c0_201 = arith.constant 0 : index
    %c0_202 = arith.constant 0 : index
    %833 = vector.load %arg2[%832, %c0_201, %c0_202] : memref<8x8x1xf32, #tpu.memory_space<vmem>>, vector<1x8x1xf32>
    %834 = vector.shape_cast %833 : vector<1x8x1xf32> to vector<8x1xf32>
    %835 = vector.broadcast %834 : vector<8x1xf32> to vector<8x32xf32>
    %836 = arith.mulf %835, %831 : vector<8x32xf32>
    %cst_203 = arith.constant 1.000000e+00 : f32
    %837 = vector.broadcast %cst_203 : f32 to vector<8x1xf32>
    %838 = arith.subf %837, %834 : vector<8x1xf32>
    %839 = vector.broadcast %838 : vector<8x1xf32> to vector<8x32xf32>
    %840 = arith.mulf %839, %788 : vector<8x32xf32>
    %841 = arith.addf %836, %840 : vector<8x32xf32>
    %842 = vector.broadcast %834 : vector<8x1xf32> to vector<8x32xf32>
    %843 = arith.mulf %842, %829 : vector<8x32xf32>
    %cst_204 = arith.constant 1.000000e+00 : f32
    %844 = vector.broadcast %cst_204 : f32 to vector<8x1xf32>
    %845 = arith.subf %844, %834 : vector<8x1xf32>
    %846 = vector.broadcast %845 : vector<8x1xf32> to vector<8x32xf32>
    %847 = arith.mulf %846, %795 : vector<8x32xf32>
    %848 = arith.addf %843, %847 : vector<8x32xf32>
    %849 = vector.broadcast %834 : vector<8x1xf32> to vector<8x32xf32>
    %850 = arith.mulf %841, %849 : vector<8x32xf32>
    %851 = arith.index_cast %802 : i32 to index
    %c32_205 = arith.constant 32 : index
    %852 = vector.load %arg13[%851, %c32_205] : memref<64x64xf32, #tpu.memory_space<vmem>>, vector<8x32xf32>
    tpu.vector_store %arg13[%851, %c32_205], %850 {strides = array<i32>} : memref<64x64xf32, #tpu.memory_space<vmem>>, vector<8x32xf32>,
    %c8_i32_206 = arith.constant 8 : i32
    %c0_207 = arith.constant 0 : index
    %c0_208 = arith.constant 0 : index
    %853 = vector.load %arg13[%c0_207, %c0_208] : memref<64x64xf32, #tpu.memory_space<vmem>>, vector<64x64xf32>
    %c0_209 = arith.constant 0 : index
    %c0_210 = arith.constant 0 : index
    %854 = vector.load %arg7[%c0_209, %c0_210] : memref<64x96xf32, #tpu.memory_space<vmem>>, vector<64x96xf32>
    %cst_211 = arith.constant dense<0.000000e+00> : vector<64x96xf32>
    %855 = tpu.matmul %853, %854, %cst_211 {dimension_numbers = #tpu.dot_dimension_numbers<[1], [0], [0], [1], [0, 0, 1, 1], [], []>} : vector<64x64xf32>, vector<64x96xf32>, vector<64x96xf32> -> vector<64x96xf32>
    %c0_212 = arith.constant 0 : index
    %c0_213 = arith.constant 0 : index
    %856 = vector.load %arg8[%c0_212, %c0_213] : memref<1x96xf32, #tpu.memory_space<vmem>>, vector<1x96xf32>
    %857 = vector.broadcast %856 : vector<1x96xf32> to vector<64x96xf32>
    %858 = arith.addf %855, %857 : vector<64x96xf32>
    %859 = vector.extract_strided_slice %858 {offsets = [0, 0], sizes = [64, 64], strides = [1, 1]} : vector<64x96xf32> to vector<64x64xf32>
    %860 = math.tanh %859 : vector<64x64xf32>
    %861 = vector.broadcast %9 : vector<64x1xf32> to vector<64x64xf32>
    %862 = arith.mulf %860, %861 : vector<64x64xf32>
    %c0_214 = arith.constant 0 : index
    %c0_215 = arith.constant 0 : index
    %863 = vector.load %arg9[%c0_214, %c0_215] : memref<64x2xf32, #tpu.memory_space<vmem>>, vector<64x2xf32>
    %cst_216 = arith.constant dense<0.000000e+00> : vector<64x2xf32>
    %864 = tpu.matmul %862, %863, %cst_216 {dimension_numbers = #tpu.dot_dimension_numbers<[1], [0], [0], [1], [0, 0, 1, 1], [], []>} : vector<64x64xf32>, vector<64x2xf32>, vector<64x2xf32> -> vector<64x2xf32>
    %cst_217 = arith.constant 0.000000e+00 : f32
    %865 = vector.broadcast %cst_217 : f32 to vector<64x1xf32>
    %866 = arith.cmpf oeq, %9, %865 : vector<64x1xf32>
    %cst_218 = arith.constant -1.000000e+30 : f32
    %867 = vector.shape_cast %866 : vector<64x1xi1> to vector<64x1xi1>
    %868 = vector.broadcast %867 : vector<64x1xi1> to vector<64x2xi1>
    %869 = vector.broadcast %cst_218 : f32 to vector<64x2xf32>
    %870 = arith.select %868, %869, %864 : vector<64x2xi1>, vector<64x2xf32>
    %871 = vector.shape_cast %870 : vector<64x2xf32> to vector<8x8x2xf32>
    %cst_219 = arith.constant dense<0xFF800000> : vector<8x2xf32>
    %872 = vector.multi_reduction <maximumf>, %871, %cst_219 [0] : vector<8x8x2xf32> to vector<8x2xf32>
    %873 = vector.shape_cast %872 : vector<8x2xf32> to vector<1x8x2xf32>
    %874 = vector.broadcast %873 : vector<1x8x2xf32> to vector<8x8x2xf32>
    %875 = arith.subf %871, %874 : vector<8x8x2xf32>
    %876 = math.exp %875 : vector<8x8x2xf32>
    %cst_220 = arith.constant dense<0.000000e+00> : vector<8x2xf32>
    %877 = vector.multi_reduction <add>, %876, %cst_220 [0] : vector<8x8x2xf32> to vector<8x2xf32>
    %878 = vector.shape_cast %877 : vector<8x2xf32> to vector<1x8x2xf32>
    %879 = tpu.reciprocal %878 {approx = true} : vector<1x8x2xf32> -> vector<1x8x2xf32>
    %880 = vector.broadcast %879 : vector<1x8x2xf32> to vector<8x8x2xf32>
    %881 = arith.mulf %876, %880 : vector<8x8x2xf32>
    %882 = vector.broadcast %8 : vector<8x8x1xf32> to vector<8x8x2xf32>
    %883 = arith.mulf %881, %882 : vector<8x8x2xf32>
    %884 = vector.extract_strided_slice %858 {offsets = [0, 64], sizes = [64, 1], strides = [1, 1]} : vector<64x96xf32> to vector<64x1xf32>
    %885 = arith.negf %884 : vector<64x1xf32>
    %886 = math.exp %885 : vector<64x1xf32>
    %cst_221 = arith.constant 1.000000e+00 : f32
    %887 = vector.broadcast %cst_221 : f32 to vector<64x1xf32>
    %888 = arith.addf %887, %886 : vector<64x1xf32>
    %889 = arith.divf %887, %888 : vector<64x1xf32>
    %890 = arith.mulf %889, %9 : vector<64x1xf32>
    %891 = vector.shape_cast %890 : vector<64x1xf32> to vector<8x8x1xf32>
    %892 = tpu.concatenate %891, %883 in 2 : vector<8x8x1xf32>, vector<8x8x2xf32> -> vector<8x8x3xf32>
    %c0_222 = arith.constant 0 : index
    %c0_223 = arith.constant 0 : index
    %c0_224 = arith.constant 0 : index
    %893 = vector.load %arg10[%c0_222, %c0_223, %c0_224] : memref<8x8x3xf32, #tpu.memory_space<vmem>>, vector<8x8x3xf32>
    tpu.vector_store %arg10[%c0_222, %c0_223, %c0_224], %892 {strides = array<i32>} : memref<8x8x3xf32, #tpu.memory_space<vmem>>, vector<8x8x3xf32>,
    %894 = tpu.iota {dimensions = array<i32: 0>} : vector<8x8x2xi32>
    %cst_225 = arith.constant dense<0xFF800000> : vector<8x2xf32>
    %895 = vector.multi_reduction <maximumf>, %883, %cst_225 [0] : vector<8x8x2xf32> to vector<8x2xf32>
    %896 = vector.shape_cast %895 : vector<8x2xf32> to vector<1x8x2xf32>
    %897 = vector.broadcast %896 : vector<1x8x2xf32> to vector<8x8x2xf32>
    %898 = arith.cmpf oeq, %883, %897 : vector<8x8x2xf32>
    %c8_i32_226 = arith.constant 8 : i32
    %899 = vector.broadcast %c8_i32_226 : i32 to vector<8x8x2xi32>
    %900 = arith.select %898, %894, %899 : vector<8x8x2xi1>, vector<8x8x2xi32>
    %cst_227 = arith.constant dense<2147483647> : vector<8x2xi32>
    %901 = vector.multi_reduction <minsi>, %900, %cst_227 [0] : vector<8x8x2xi32> to vector<8x2xi32>
    %c0_228 = arith.constant 0 : index
    %c0_229 = arith.constant 0 : index
    %902 = vector.load %arg11[%c0_228, %c0_229] : memref<8x2xi32, #tpu.memory_space<vmem>>, vector<8x2xi32>
    tpu.vector_store %arg11[%c0_228, %c0_229], %901 {strides = array<i32>} : memref<8x2xi32, #tpu.memory_space<vmem>>, vector<8x2xi32>,
    return
  }
  func.func @transform_0(%arg0: i32) -> (i32, i32, i32) {
    %c0_i32 = arith.constant 0 : i32
    %c0_i32_0 = arith.constant 0 : i32
    %c0_i32_1 = arith.constant 0 : i32
    return %c0_i32, %arg0, %c0_i32_0 : i32, i32, i32
  }
  func.func @transform_1(%arg0: i32) -> (i32, i32, i32) {
    %c0_i32 = arith.constant 0 : i32
    %c0_i32_0 = arith.constant 0 : i32
    %c0_i32_1 = arith.constant 0 : i32
    return %c0_i32, %arg0, %c0_i32_0 : i32, i32, i32
  }
  func.func @transform_2(%arg0: i32) -> (i32, i32) {
    %c0_i32 = arith.constant 0 : i32
    %c0_i32_0 = arith.constant 0 : i32
    %c0_i32_1 = arith.constant 0 : i32
    return %c0_i32, %c0_i32_0 : i32, i32
  }
  func.func @transform_3(%arg0: i32) -> (i32, i32) {
    %c0_i32 = arith.constant 0 : i32
    %c0_i32_0 = arith.constant 0 : i32
    %c0_i32_1 = arith.constant 0 : i32
    return %c0_i32, %c0_i32_0 : i32, i32
  }
  func.func @transform_4(%arg0: i32) -> (i32, i32) {
    %c0_i32 = arith.constant 0 : i32
    %c0_i32_0 = arith.constant 0 : i32
    %c0_i32_1 = arith.constant 0 : i32
    return %c0_i32, %c0_i32_0 : i32, i32
  }
  func.func @transform_5(%arg0: i32) -> (i32, i32) {
    %c0_i32 = arith.constant 0 : i32
    %c0_i32_0 = arith.constant 0 : i32
    %c0_i32_1 = arith.constant 0 : i32
    return %c0_i32, %c0_i32_0 : i32, i32
  }
  func.func @transform_6(%arg0: i32) -> (i32, i32) {
    %c0_i32 = arith.constant 0 : i32
    %c0_i32_0 = arith.constant 0 : i32
    %c0_i32_1 = arith.constant 0 : i32
    return %c0_i32, %c0_i32_0 : i32, i32
  }
  func.func @transform_7(%arg0: i32) -> (i32, i32) {
    %c0_i32 = arith.constant 0 : i32
    %c0_i32_0 = arith.constant 0 : i32
    %c0_i32_1 = arith.constant 0 : i32
    return %c0_i32, %c0_i32_0 : i32, i32
  }
  func.func @transform_8(%arg0: i32) -> (i32, i32) {
    %c0_i32 = arith.constant 0 : i32
    %c0_i32_0 = arith.constant 0 : i32
    %c0_i32_1 = arith.constant 0 : i32
    return %c0_i32, %c0_i32_0 : i32, i32
  }
  func.func @transform_9(%arg0: i32) -> (i32, i32, i32) {
    %c0_i32 = arith.constant 0 : i32
    %c0_i32_0 = arith.constant 0 : i32
    %c0_i32_1 = arith.constant 0 : i32
    return %c0_i32, %arg0, %c0_i32_0 : i32, i32, i32
  }
  func.func @transform_10(%arg0: i32) -> (i32, i32) {
    %c0_i32 = arith.constant 0 : i32
    %c0_i32_0 = arith.constant 0 : i32
    return %arg0, %c0_i32 : i32, i32
  }
}

</mosaic_0001>

<bundles_post_ra>
// kernel: coordinate_forward.1
= control target key start
LH: loop header
LB: loop body
LE: loop exit
PB: predicated region body
PF: predicated region fallthrough
CT: control target
= control target key end

     0   :  { %v3724_v3 = vmov 0.0|0.0   ;;  %v3725_v4 = vmov 0.0   ;;  %vm3726_vm0 = vmmov 0   ;;  %vm62_vm1 = vcmask 261120   ;;  %s3728_s21 = smov 64   ;;  %s4698_s2 = inlined_call_operand.vmem [shape: f32[32,256], index: 2, kind: input, shape index: {}]   ;;  %s4699_s4 = inlined_call_operand.vmem [shape: f32[32,128], index: 4, kind: input, shape index: {}]   ;;  %s4700_s0 = inlined_call_operand.vmem [shape: f32[8,8,32], index: 0, kind: input, shape index: {}]   ;;  %s4701_s1 = inlined_call_operand.vmem [shape: f32[8,8,1], index: 1, kind: input, shape index: {}]   ;;  %s4702_s3 = inlined_call_operand.vmem [shape: f32[1,256], index: 3, kind: input, shape index: {}]   ;;  %s4703_s5 = inlined_call_operand.vmem [shape: f32[32,128], index: 5, kind: input, shape index: {}]   ;;  %s4704_s6 = inlined_call_operand.vmem [shape: f32[64,96], index: 6, kind: input, shape index: {}]   ;;  %s4705_s8 = inlined_call_operand.vmem [shape: f32[64,2], index: 8, kind: input, shape index: {}]   ;;  %s4706_s7 = inlined_call_operand.vmem [shape: f32[1,96], index: 7, kind: input, shape index: {}]   ;;  %s4707_s10 = inlined_call_operand.vmem [shape: s32[8,2], index: 10, kind: output, shape index: {1}]   ;;  %s4708_s9 = inlined_call_operand.vmem [shape: f32[8,8,3], index: 9, kind: output, shape index: {0}]  }
   0x1   :  { %v43_v0 = vld [vmem:[%s4698_s2 + $0x8] sm:$0xff]  ;;  %v45_v1 = vld [vmem:[%s4698_s2 + $0x18] sm:$0xff]  ;;  %v42_v2 = vld [vmem:[%s4698_s2] sm:$0xff]  ;;  %3390 = vmatprep.subr.bf16.mxu1 %v3724_v3  ;;  %151 = vmatprep.mubr.f32.mxu0 %v3725_v4  ;;  %v3727_v21 = vmov 0   ;;  %v52_v24 = vlaneseq  ;;  %vm1382_vm2 = vcmask 523520   ;;  %vm2279_vm11 = vcmask 523264  }
   0x2   :  { %v3382_v5 = vpack.c.bf16 %v45_v1, %v43_v0  ;;  %v44_v6 = vld [vmem:[%s4698_s2 + $0x10] sm:$0xff]  ;;  %v224_v7 = vld [vmem:[%s4699_s4] sm:$0xff]  ;;  %v225_v8 = vld [vmem:[%s4699_s4 + $0x8] sm:$0xff]  ;;  %3158 = vmatprep.mubr.msk.f32.mxu1 %vm3726_vm0, %v3725_v4  ;;  %3526 = vset.pattern.permute.xlu1 %v3727_v21 }
   0x3   :  { %v3384_v9 = vpack.c.bf16 %v44_v6, %v42_v2  ;;  %v3809_v10 = vpack.c.bf16 %v225_v8, %v224_v7  ;;  %v47_v11 = vld [vmem:[%s4698_s2 + $0x28] sm:$0xff]  ;;  %v49_v12 = vld [vmem:[%s4698_s2 + $0x38] sm:$0xff]  ;;  %v46_v13 = vld [vmem:[%s4698_s2 + $0x20] sm:$0xff]  ;;  %3527 = vset.pattern.permute.xlu0 %v3727_v21  ;;  %v3857_v25 = vshrl.u32 %v52_v24, 7 }
   0x4   :  { %3383 = vmatprep.subr.bf16.mxu0 %v3382_v5  ;;  %v3386_v14 = vpack.c.bf16 %v49_v12, %v47_v11  ;;  %v48_v15 = vld [vmem:[%s4698_s2 + $0x30] sm:$0xff]  ;;  %v227_v17 = vld [vmem:[%s4699_s4 + $0x18] sm:$0xff]  ;;  %v34_v20 = vld [vmem:[%s4700_s0] sm:$0xff] }
   0x5   :  { %v226_v16 = vld [vmem:[%s4699_s4 + $0x10] sm:$0xff]  ;;  %3385 = vmatpush1.bf16.msra.mxu0 %v3384_v9  ;;  %3392 = vmatpush3.bf16.msra.mxu1 %v3809_v10  ;;  %v3388_v18 = vpack.c.bf16 %v48_v15, %v46_v13  ;;  %v334_v22 = vld [vmem:[%s4701_s1] sm:$0xff]  ;;  %v54_v26 = vsub.s32 0, %v3857_v25  ;;  %v35_v45 = vld [vmem:[%s4700_s0 + $0x8] sm:$0xff] }
   0x6   :  { %v3830_v19 = vpack.c.bf16 %v227_v17, %v226_v16  ;;  %3387 = vmatprep.subr.bf16.mxu0 %v3386_v14  ;;  %3393 = vmatprep.subr.bf16.mxu1 %v3724_v3  ;;  %v341_v23 = vsub.f32 1.0, %v334_v22  ;;  %v3863_v27 = vld [vmem:[%s4702_s3] sm:$0x3]  ;;  %s3729_s3 = smov 32   ;;  %v2972_v62 = vld [vmem:[%s4701_s1 + $0x8] sm:$0xff]  ;;  %v36_v14 = vld [vmem:[%s4700_s0 + $0x10] sm:$0xff] }
   0x7   :  { %337 = vperm.xlu1 %3526, %v334_v22   ;;  %v3866_v28 = vrot.slane %v3863_v27, %v54_v26  ;;  %v469_v7 = vsub.f32 1.0, %v2972_v62 }
   0x9   :  { %3389 = vmatpush1.bf16.msra.mxu0 %v3388_v18  ;;  %3395 = vmatpush3.bf16.msra.mxu1 %v3830_v19 }
   0xa   :  { %3396 = vmatprep.subr.bf16.mxu1 %v3724_v3  ;;  %3414 = vmatprep.subr.bf16.mxu0 %v3724_v3 }
   0xb   :  { %344 = vperm.xlu1 %3526, %v341_v23  }
   0xc   :  { %2961 = vmatmul.mubr.msk.f32.vlgmr.msra.gmra.mrb[0].mxu0 %vm62_vm1, %v34_v20  ;;  %3159 = vmatmul.mubr.f32.vlgmr.msra.gmra.mrb[0].mxu1 %v3725_v4 }
   0xd   :  { %3398 = vmatpush3.bf16.msra.mxu1 %v3809_v10  ;;  %157 = vmatprep.mubr.f32.mxu0 %v3725_v4 }
   0xe   :  { %3399 = vmatprep.subr.bf16.mxu1 %v3724_v3  ;;  %3169 = vmatprep.mubr.msk.f32.mxu1 %vm3726_vm0, %v3725_v4 }
   0xf   :  { %3416 = vmatpush3.bf16.msra.mxu0 %v3809_v10 }
  0x10   :  { %3417 = vmatprep.subr.bf16.mxu0 %v3724_v3  ;;  %2962 = vmatmul.mubr.msk.f32.gmra.mrb[2].mxu0 %vm62_vm1, %v35_v45 }
  0x11   :  { %3401 = vmatpush3.bf16.msra.mxu1 %v3830_v19  ;;  %163 = vmatprep.mubr.f32.mxu0 %v3725_v4 }
  0x12   :  { %3402 = vmatprep.subr.bf16.mxu1 %v3724_v3 }
  0x13   :  { %3419 = vmatpush3.bf16.msra.mxu0 %v3830_v19 }
  0x14   :  { %3426 = vmatprep.subr.bf16.mxu0 %v3724_v3  ;;  %2963 = vmatmul.mubr.msk.f32.gmra.mrb[4].mxu0 %vm62_vm1, %v36_v14 }
  0x15   :  { %169 = vmatprep.mubr.f32.mxu0 %v3725_v4 }
  0x86   :  { %v3879_v47 = vpop.permute.xlu1 %337 }
  0x8a   :  { %v345_v48 = vpop.permute.xlu1 %344 }
  0x8b   :  { %v347_v51 = vmul.f32 0.0, %v345_v48 }
  0xdf   :  { %v153_v29 = vpop.f32.mrb[0].mxu0  ;;  %v305_v30 = vpop.f32.mrb[0].mxu1 }
  0xe0   :  { %v154_v31 = vadd.f32 %v153_v29, %v3866_v28  ;;  %v3869_v32 = vpop.f32.mrb[1].mxu0  ;;  %v3160_v33 = vpop.f32.mrb[1].mxu1 }
  0xe2   :  { %v309_v34 = vadd.f32 %v305_v30, %v154_v31 }
  0xe3   :  { %v159_v54 = vpop.f32.mrb[2].mxu0 }
  0xe4   :  { %3528 = vtanh.f32 %v309_v34  ;;  %v2969_v36 = vmul.f32 -1.442695, %v309_v34  ;;  %v3886_v55 = vpop.f32.mrb[3].mxu0  ;;  %v160_v57 = vadd.f32 %v159_v54, %v3866_v28 }
  0xe6   :  { %3530 = vpow2.f32 %v2969_v36 }
  0xe7   :  { %v165_v26 = vpop.f32.mrb[4].mxu0 }
  0xe8   :  { %v3916_v29 = vpop.f32.mrb[5].mxu0  ;;  %v166_v31 = vadd.f32 %v165_v26, %v3866_v28 }
  0xee   :  { %v3529_v35 = vpop.eup %3528 }
  0xef   :  { %319 = vrot.lane.b32.xlu0 %v3529_v35, %s3728_s21 }
  0xf0   :  { %v3531_v37 = vpop.eup %3530 }
  0xf1   :  { %v313_v38 = vadd.f32 1.0, %v3531_v37  ;;  %v3930_v37 = vld [vmem:[%s4701_s1 + $0x10] sm:$0xff] }
  0xf3   :  { %3532 = vrcp.f32 %v313_v38 }
  0xfd   :  { %v3533_v39 = vpop.eup %3532 }
  0xfe   :  { %v317_v42 = vmul.f32 0.0, %v3533_v39 }
 0x161   :  { %v320_v40 = vpop.permute.xlu0 %319 }
 0x162   :  { %v322_v41 = vmul.f32 %v3533_v39, %v320_v40 }
 0x164   :  { %324 = vrot.lane.b32.xlu0 %v322_v41, %s3729_s3 }
 0x1d6   :  { %v325_v43 = vpop.permute.xlu0 %324 }
 0x1d7   :  { %v327_v44 = vadd.f32 %v325_v43, %v317_v42 }
 0x1d9   :  { %3534 = vtanh.f32 %v327_v44  ;;  %v349_v8 = vmul.f32 %v3879_v47, %v327_v44  ;;  %v599_v44 = vsub.f32 1.0, %v3930_v37 }
 0x1db   :  { %v350_v9 = vadd.f32 %v349_v8, %v347_v51 }
 0x1e3   :  { %v3535_v46 = vpop.eup %3534 }
 0x1e4   :  { %330 = vrot.lane.b32.xlu0 %v3535_v46, %s3728_s21 }
 0x256   :  { %v331_v49 = vpop.permute.xlu0 %330 }
 0x257   :  { %v333_v50 = vmul.f32 %v3533_v39, %v331_v49 }
 0x259   :  { %v340_v52 = vmul.f32 %v3879_v47, %v333_v50 }
 0x25b   :  { %v3882_v53 = vadd.f32 %v347_v51, %v340_v52  ;;  %v37_v52 = vld [vmem:[%s4700_s0 + $0x18] sm:$0xff] }
 0x25c   :  { %2964 = vmatmul.mubr.msk.f32.gmra.mrb[6].mxu0 %vm62_vm1, %v37_v52 }
 0x25d   :  { %362 = vrot.lane.b32.xlu1 %v3882_v53, %s3729_s3  ;;  %175 = vmatprep.mubr.f32.mxu0 %v3725_v4 }
 0x2cf   :  { %v363_v56 = vpop.permute.xlu1 %362 }
 0x2d0   :  { %3170 = vmatmul.mubr.msk.f32.vlgmr.msra.gmra.mrb[2].mxu1 %vm62_vm1, %v363_v56 }
 0x2d1   :  { %3404 = vmatpush3.bf16.msra.mxu1 %v3809_v10  ;;  %3180 = vmatprep.mubr.msk.f32.mxu1 %vm3726_vm0, %v3725_v4 }
 0x2d2   :  { %3405 = vmatprep.subr.bf16.mxu1 %v3724_v3 }
 0x2d5   :  { %3407 = vmatpush3.bf16.msra.mxu1 %v3830_v19 }
 0x2d6   :  { %3408 = vmatprep.subr.bf16.mxu1 %v3724_v3 }
 0x3a3   :  { %v432_v58 = vpop.f32.mrb[2].mxu1 }
 0x3a4   :  { %v436_v59 = vadd.f32 %v432_v58, %v160_v57  ;;  %v3171_v60 = vpop.f32.mrb[3].mxu1 }
 0x3a6   :  { %3536 = vtanh.f32 %v436_v59  ;;  %v2971_v63 = vmul.f32 -1.442695, %v436_v59 }
 0x3a8   :  { %3538 = vpow2.f32 %v2971_v63  ;;  %v171_v63 = vpop.f32.mrb[6].mxu0 }
 0x3b0   :  { %v3537_v61 = vpop.eup %3536 }
 0x3b1   :  { %446 = vrot.lane.b32.xlu0 %v3537_v61, %s3728_s21 }
 0x3b2   :  { %v3539_v0 = vpop.eup %3538 }
 0x3b3   :  { %v440_v1 = vadd.f32 1.0, %v3539_v0  ;;  %v3952_v0 = vpop.f32.mrb[7].mxu0 }
 0x3b5   :  { %465 = vperm.xlu0 %3527, %v2972_v62   ;;  %3540 = vrcp.f32 %v440_v1 }
 0x3bf   :  { %v3541_v2 = vpop.eup %3540 }
 0x3c0   :  { %v444_v11 = vmul.f32 %v3541_v2, %v350_v9 }
 0x423   :  { %v447_v5 = vpop.permute.xlu0 %446 }
 0x424   :  { %v449_v6 = vmul.f32 %v3541_v2, %v447_v5 }
 0x426   :  { %451 = vrot.lane.b32.xlu1 %v449_v6, %s3729_s3 }
 0x42a   :  { %472 = vperm.xlu1 %3526, %v469_v7  }
 0x434   :  { %v3908_v20 = vpop.permute.xlu0 %465 }
 0x498   :  { %v452_v12 = vpop.permute.xlu1 %451 }
 0x499   :  { %v454_v13 = vadd.f32 %v452_v12, %v444_v11 }
 0x49b   :  { %3542 = vtanh.f32 %v454_v13  ;;  %v477_v46 = vmul.f32 %v3908_v20, %v454_v13 }
 0x4a5   :  { %v3543_v15 = vpop.eup %3542 }
 0x4a6   :  { %457 = vrot.lane.b32.xlu1 %v3543_v15, %s3728_s21 }
 0x4a9   :  { %v473_v16 = vpop.permute.xlu1 %472 }
 0x4aa   :  { %v475_v22 = vmul.f32 %v473_v16, %v3882_v53  ;;  %v478_v45 = vmul.f32 %v473_v16, %v350_v9  ;;  %v3966_v9 = vld [vmem:[%s4701_s1 + $0x18] sm:$0xff] }
 0x4ac   :  { %v479_v48 = vadd.f32 %v478_v45, %v477_v46 }
 0x518   :  { %v458_v17 = vpop.permute.xlu1 %457 }
 0x519   :  { %v460_v18 = vmul.f32 %v3541_v2, %v458_v17  ;;  %v172_v2 = vadd.f32 %v171_v63, %v3866_v28  ;;  %v729_v17 = vsub.f32 1.0, %v3966_v9 }
 0x51b   :  { %v468_v23 = vmul.f32 %v3908_v20, %v460_v18 }
 0x51d   :  { %v3912_v24 = vadd.f32 %v475_v22, %v468_v23 }
 0x51f   :  { %492 = vrot.lane.b32.xlu0 %v3912_v24, %s3729_s3 }
 0x591   :  { %v493_v30 = vpop.permute.xlu0 %492 }
 0x592   :  { %3181 = vmatmul.mubr.msk.f32.vlgmr.msra.gmra.mrb[4].mxu1 %vm62_vm1, %v493_v30 }
 0x593   :  { %3410 = vmatpush3.bf16.msra.mxu1 %v3809_v10  ;;  %3191 = vmatprep.mubr.msk.f32.mxu1 %vm3726_vm0, %v3725_v4 }
 0x594   :  { %3411 = vmatprep.subr.bf16.mxu1 %v3724_v3 }
 0x597   :  { %3413 = vmatpush3.bf16.msra.mxu1 %v3830_v19 }
 0x598   :  { %3420 = vmatprep.subr.bf16.mxu1 %v3724_v3 }
 0x665   :  { %v562_v33 = vpop.f32.mrb[4].mxu1 }
 0x666   :  { %v566_v34 = vadd.f32 %v562_v33, %v166_v31  ;;  %v3182_v35 = vpop.f32.mrb[5].mxu1  ;;  %v38_v33 = vld [vmem:[%s4700_s0 + $0x20] sm:$0xff] }
 0x667   :  { %2965 = vmatmul.mubr.msk.f32.gmra.mrb[8].mxu0 %vm62_vm1, %v38_v33 }
 0x668   :  { %3544 = vtanh.f32 %v566_v34  ;;  %v2974_v38 = vmul.f32 -1.442695, %v566_v34  ;;  %181 = vmatprep.mubr.f32.mxu0 %v3725_v4  ;;  %v39_v34 = vld [vmem:[%s4700_s0 + $0x28] sm:$0xff] }
 0x66a   :  { %3546 = vpow2.f32 %v2974_v38  ;;  %v41_v38 = vld [vmem:[%s4700_s0 + $0x38] sm:$0xff] }
 0x66b   :  { %2966 = vmatmul.mubr.msk.f32.gmra.mrb[10].mxu0 %vm62_vm1, %v39_v34 }
 0x66c   :  { %187 = vmatprep.mubr.f32.mxu0 %v3725_v4 }
 0x672   :  { %v3545_v36 = vpop.eup %3544 }
 0x673   :  { %576 = vrot.lane.b32.xlu1 %v3545_v36, %s3728_s21  ;;  %v40_v36 = vld [vmem:[%s4700_s0 + $0x30] sm:$0xff] }
 0x674   :  { %v3547_v39 = vpop.eup %3546  ;;  %2967 = vmatmul.mubr.msk.f32.gmra.mrb[12].mxu0 %vm62_vm1, %v40_v36 }
 0x675   :  { %v570_v40 = vadd.f32 1.0, %v3547_v39  ;;  %193 = vmatprep.mubr.f32.mxu0 %v3725_v4 }
 0x677   :  { %595 = vperm.xlu1 %3526, %v3930_v37   ;;  %3548 = vrcp.f32 %v570_v40 }
 0x678   :  { %2968 = vmatmul.mubr.msk.f32.gmra.mrb[14].mxu0 %vm62_vm1, %v41_v38 }
 0x679   :  { %3202 = vmatprep.mubr.msk.f32.mxu0 %vm3726_vm0, %v3725_v4 }
 0x681   :  { %v3549_v41 = vpop.eup %3548 }
 0x682   :  { %v574_v49 = vmul.f32 %v3549_v41, %v479_v48 }
 0x6e5   :  { %v577_v42 = vpop.permute.xlu1 %576 }
 0x6e6   :  { %v579_v43 = vmul.f32 %v3549_v41, %v577_v42 }
 0x6e8   :  { %581 = vrot.lane.b32.xlu0 %v579_v43, %s3729_s3 }
 0x6ec   :  { %602 = vperm.xlu0 %3527, %v599_v44  }
 0x6f6   :  { %v3944_v56 = vpop.permute.xlu1 %595 }
 0x75a   :  { %v582_v50 = vpop.permute.xlu0 %581 }
 0x75b   :  { %v584_v51 = vadd.f32 %v582_v50, %v574_v49 }
 0x75d   :  { %3550 = vtanh.f32 %v584_v51  ;;  %v607_v22 = vmul.f32 %v3944_v56, %v584_v51 }
 0x767   :  { %v3551_v54 = vpop.eup %3550 }
 0x768   :  { %587 = vrot.lane.b32.xlu1 %v3551_v54, %s3728_s21 }
 0x76b   :  { %v603_v57 = vpop.permute.xlu0 %602 }
 0x76c   :  { %v605_v60 = vmul.f32 %v603_v57, %v3912_v24  ;;  %v608_v18 = vmul.f32 %v603_v57, %v479_v48  ;;  %v177_v48 = vpop.f32.mrb[8].mxu0 }
 0x76d   :  { %v4004_v49 = vpop.f32.mrb[9].mxu0 }
 0x76e   :  { %v609_v23 = vadd.f32 %v608_v18, %v607_v22  ;;  %v183_v50 = vpop.f32.mrb[10].mxu0 }
 0x76f   :  { %v4006_v51 = vpop.f32.mrb[11].mxu0 }
 0x770   :  { %v4008_v52 = vpop.f32.mrb[12].mxu0 }
 0x771   :  { %v4010_v54 = vpop.f32.mrb[13].mxu0 }
 0x772   :  { %v4012_v57 = vpop.f32.mrb[14].mxu0 }
 0x7da   :  { %v588_v58 = vpop.permute.xlu1 %587 }
 0x7db   :  { %v590_v59 = vmul.f32 %v3549_v41, %v588_v58  ;;  %v4014_v58 = vpop.f32.mrb[15].mxu0 }
 0x7dd   :  { %v598_v61 = vmul.f32 %v3944_v56, %v590_v59 }
 0x7df   :  { %v3948_v62 = vadd.f32 %v605_v60, %v598_v61  ;;  %v178_v60 = vadd.f32 %v177_v48, %v3866_v28 }
 0x7e1   :  { %622 = vrot.lane.b32.xlu0 %v3948_v62, %s3729_s3 }
 0x853   :  { %v623_v1 = vpop.permute.xlu0 %622 }
 0x854   :  { %3192 = vmatmul.mubr.msk.f32.vlgmr.msra.gmra.mrb[6].mxu1 %vm62_vm1, %v623_v1 }
 0x855   :  { %3422 = vmatpush3.bf16.msra.mxu1 %v3809_v10  ;;  %3213 = vmatprep.mubr.msk.f32.mxu1 %vm3726_vm0, %v3725_v4 }
 0x856   :  { %3423 = vmatprep.subr.bf16.mxu1 %v3724_v3 }
 0x859   :  { %3425 = vmatpush3.bf16.msra.mxu1 %v3830_v19 }
 0x85a   :  { %3432 = vmatprep.subr.bf16.mxu1 %v3724_v3 }
 0x927   :  { %v692_v5 = vpop.f32.mrb[6].mxu1 }
 0x928   :  { %v696_v6 = vadd.f32 %v692_v5, %v172_v2  ;;  %v3193_v7 = vpop.f32.mrb[7].mxu1  ;;  %v4028_v5 = vld [vmem:[%s4701_s1 + $0x20] sm:$0xff] }
 0x92a   :  { %3552 = vtanh.f32 %v696_v6  ;;  %v2977_v11 = vmul.f32 -1.442695, %v696_v6 }
 0x92c   :  { %3554 = vpow2.f32 %v2977_v11 }
 0x934   :  { %v3553_v8 = vpop.eup %3552 }
 0x935   :  { %706 = vrot.lane.b32.xlu1 %v3553_v8, %s3728_s21 }
 0x936   :  { %v3555_v12 = vpop.eup %3554 }
 0x937   :  { %v700_v13 = vadd.f32 1.0, %v3555_v12 }
 0x939   :  { %725 = vperm.xlu1 %3526, %v3966_v9   ;;  %3556 = vrcp.f32 %v700_v13 }
 0x943   :  { %v3557_v14 = vpop.eup %3556 }
 0x944   :  { %v704_v26 = vmul.f32 %v3557_v14, %v609_v23 }
 0x9a7   :  { %v707_v15 = vpop.permute.xlu1 %706 }
 0x9a8   :  { %v709_v16 = vmul.f32 %v3557_v14, %v707_v15 }
 0x9aa   :  { %711 = vrot.lane.b32.xlu0 %v709_v16, %s3729_s3 }
 0x9ae   :  { %732 = vperm.xlu0 %3527, %v729_v17  }
 0x9b8   :  { %v3996_v39 = vpop.permute.xlu1 %725 }
 0xa1c   :  { %v712_v30 = vpop.permute.xlu0 %711 }
 0xa1d   :  { %v714_v31 = vadd.f32 %v712_v30, %v704_v26 }
 0xa1f   :  { %3558 = vtanh.f32 %v714_v31  ;;  %v737_v16 = vmul.f32 %v3996_v39, %v714_v31 }
 0xa29   :  { %v3559_v35 = vpop.eup %3558 }
 0xa2a   :  { %717 = vrot.lane.b32.xlu1 %v3559_v35, %s3728_s21 }
 0xa2d   :  { %v733_v40 = vpop.permute.xlu0 %732 }
 0xa2e   :  { %v735_v43 = vmul.f32 %v733_v40, %v3948_v62  ;;  %v738_v15 = vmul.f32 %v733_v40, %v609_v23  ;;  %v184_v40 = vadd.f32 %v183_v50, %v3866_v28 }
 0xa30   :  { %v739_v18 = vadd.f32 %v738_v15, %v737_v16 }
 0xa9c   :  { %v718_v41 = vpop.permute.xlu1 %717 }
 0xa9d   :  { %v720_v42 = vmul.f32 %v3557_v14, %v718_v41  ;;  %v859_v14 = vsub.f32 1.0, %v4028_v5 }
 0xa9f   :  { %v728_v45 = vmul.f32 %v3996_v39, %v720_v42 }
 0xaa1   :  { %v4000_v46 = vadd.f32 %v735_v43, %v728_v45 }
 0xaa3   :  { %752 = vrot.lane.b32.xlu0 %v4000_v46, %s3729_s3 }
 0xb15   :  { %v753_v59 = vpop.permute.xlu0 %752 }
 0xb16   :  { %3203 = vmatmul.mubr.msk.f32.vlgmr.msra.gmra.mrb[16].mxu0 %vm62_vm1, %v753_v59 }
 0xb17   :  { %3428 = vmatpush3.bf16.msra.mxu0 %v3809_v10  ;;  %3224 = vmatprep.mubr.msk.f32.mxu0 %vm3726_vm0, %v3725_v4 }
 0xb18   :  { %3429 = vmatprep.subr.bf16.mxu0 %v3724_v3 }
 0xb1b   :  { %3431 = vmatpush3.bf16.msra.mxu0 %v3830_v19 }
 0xb1c   :  { %3438 = vmatprep.subr.bf16.mxu0 %v3724_v3 }
 0xbe9   :  { %v822_v61 = vpop.f32.mrb[16].mxu0 }
 0xbea   :  { %v826_v63 = vadd.f32 %v822_v61, %v178_v60  ;;  %v3204_v1 = vpop.f32.mrb[17].mxu0 }
 0xbec   :  { %3560 = vtanh.f32 %v826_v63  ;;  %v2980_v6 = vmul.f32 -1.442695, %v826_v63 }
 0xbee   :  { %3562 = vpow2.f32 %v2980_v6 }
 0xbf6   :  { %v3561_v2 = vpop.eup %3560 }
 0xbf7   :  { %836 = vrot.lane.b32.xlu1 %v3561_v2, %s3728_s21 }
 0xbf8   :  { %v3563_v7 = vpop.eup %3562 }
 0xbf9   :  { %v830_v8 = vadd.f32 1.0, %v3563_v7 }
 0xbfb   :  { %855 = vperm.xlu1 %3526, %v4028_v5   ;;  %3564 = vrcp.f32 %v830_v8 }
 0xc05   :  { %v3565_v11 = vpop.eup %3564 }
 0xc06   :  { %v834_v22 = vmul.f32 %v3565_v11, %v739_v18 }
 0xc69   :  { %v837_v12 = vpop.permute.xlu1 %836 }
 0xc6a   :  { %v839_v13 = vmul.f32 %v3565_v11, %v837_v12 }
 0xc6c   :  { %841 = vrot.lane.b32.xlu0 %v839_v13, %s3729_s3 }
 0xc70   :  { %862 = vperm.xlu0 %3527, %v859_v14  }
 0xc7a   :  { %v4037_v34 = vpop.permute.xlu1 %855 }
 0xcde   :  { %v842_v26 = vpop.permute.xlu0 %841 }
 0xcdf   :  { %v844_v30 = vadd.f32 %v842_v26, %v834_v22 }
 0xce1   :  { %3566 = vtanh.f32 %v844_v30  ;;  %v867_v7 = vmul.f32 %v4037_v34, %v844_v30 }
 0xceb   :  { %v3567_v33 = vpop.eup %3566 }
 0xcec   :  { %847 = vrot.lane.b32.xlu1 %v3567_v33, %s3728_s21 }
 0xcef   :  { %v863_v35 = vpop.permute.xlu0 %862 }
 0xcf0   :  { %v865_v41 = vmul.f32 %v863_v35, %v4000_v46  ;;  %v868_v6 = vmul.f32 %v863_v35, %v739_v18 }
 0xcf2   :  { %v4065_v8 = vadd.f32 %v868_v6, %v867_v7 }
 0xd5e   :  { %v848_v36 = vpop.permute.xlu1 %847 }
 0xd5f   :  { %v850_v38 = vmul.f32 %v3565_v11, %v848_v36  ;;  %v228_v36 = vld [vmem:[%s4703_s5] sm:$0xff] }
 0xd61   :  { %v858_v42 = vmul.f32 %v4037_v34, %v850_v38  ;;  %v229_v38 = vld [vmem:[%s4703_s5 + $0x8] sm:$0xff] }
 0xd63   :  { %v4041_v23 = vadd.f32 %v865_v41, %v858_v42  ;;  %v4089_v41 = vpack.c.bf16 %v229_v38, %v228_v36  ;;  %v230_v42 = vld [vmem:[%s4703_s5 + $0x10] sm:$0xff] }
 0xd65   :  { %882 = vrot.lane.b32.xlu0 %v4041_v23, %s3729_s3 }
 0xdd7   :  { %v883_v31 = vpop.permute.xlu0 %882 }
 0xdd8   :  { %3214 = vmatmul.mubr.msk.f32.vlgmr.msra.gmra.mrb[8].mxu1 %vm62_vm1, %v883_v31  ;;  %v231_v31 = vld [vmem:[%s4703_s5 + $0x18] sm:$0xff] }
 0xdd9   :  { %3434 = vmatpush3.bf16.msra.mxu1 %v3809_v10  ;;  %3235 = vmatprep.mubr.msk.f32.mxu1 %vm3726_vm0, %v3725_v4  ;;  %v4057_v10 = vld [vmem:[%s4701_s1 + $0x28] sm:$0xff] }
 0xdda   :  { %3435 = vmatprep.subr.bf16.mxu1 %v3724_v3  ;;  %v989_v2 = vsub.f32 1.0, %v4057_v10 }
 0xddd   :  { %3437 = vmatpush3.bf16.msra.mxu1 %v3830_v19 }
 0xdde   :  { %3444 = vmatprep.subr.bf16.mxu1 %v3724_v3 }
 0xeab   :  { %v952_v43 = vpop.f32.mrb[8].mxu1 }
 0xeac   :  { %v956_v45 = vadd.f32 %v952_v43, %v184_v40  ;;  %v3215_v48 = vpop.f32.mrb[9].mxu1  ;;  %v4099_v43 = vpack.c.bf16 %v231_v31, %v230_v42 }
 0xeae   :  { %3568 = vtanh.f32 %v956_v45  ;;  %v2983_v60 = vmul.f32 -1.442695, %v956_v45  ;;  %v190_v45 = vadd.f32 %v4008_v52, %v3866_v28 }
 0xeb0   :  { %3570 = vpow2.f32 %v2983_v60 }
 0xeb8   :  { %v3569_v59 = vpop.eup %3568 }
 0xeb9   :  { %966 = vrot.lane.b32.xlu1 %v3569_v59, %s3728_s21  ;;  %v58_v59 = vsub.s32 1, %v3857_v25 }
 0xeba   :  { %v3571_v19 = vpop.eup %3570 }
 0xebb   :  { %v960_v61 = vadd.f32 1.0, %v3571_v19 }
 0xebd   :  { %985 = vperm.xlu1 %3526, %v4057_v10   ;;  %3572 = vrcp.f32 %v960_v61  ;;  %v4117_v61 = vrot.slane %v3863_v27, %v58_v59 }
 0xec7   :  { %v3573_v50 = vpop.eup %3572 }
 0xec8   :  { %v964_v11 = vmul.f32 %v3573_v50, %v4065_v8 }
 0xf2b   :  { %v967_v63 = vpop.permute.xlu1 %966 }
 0xf2c   :  { %v969_v1 = vmul.f32 %v3573_v50, %v967_v63 }
 0xf2e   :  { %971 = vrot.lane.b32.xlu0 %v969_v1, %s3729_s3 }
 0xf32   :  { %992 = vperm.xlu0 %3527, %v989_v2  }
 0xf3c   :  { %v4072_v16 = vpop.permute.xlu1 %985 }
 0xfa0   :  { %v972_v12 = vpop.permute.xlu0 %971 }
 0xfa1   :  { %v4068_v13 = vadd.f32 %v972_v12, %v964_v11 }
 0xfa3   :  { %3574 = vtanh.f32 %v4068_v13 }
 0xfad   :  { %v3575_v15 = vpop.eup %3574 }
 0xfae   :  { %977 = vrot.lane.b32.xlu1 %v3575_v15, %s3728_s21 }
 0xfb1   :  { %v4074_v22 = vpop.permute.xlu0 %992 }
 0xfb2   :  { %v995_v30 = vmul.f32 %v4074_v22, %v4041_v23 }
0x1020   :  { %v978_v26 = vpop.permute.xlu1 %977 }
0x1021   :  { %v980_v18 = vmul.f32 %v3573_v50, %v978_v26  ;;  %v198_v50 = vadd.f32 %v4014_v58, %v4117_v61 }
0x1023   :  { %v988_v33 = vmul.f32 %v4072_v16, %v980_v18 }
0x1025   :  { %v4079_v35 = vadd.f32 %v995_v30, %v988_v33  ;;  %v4127_v33 = vld [vmem:[%s4701_s1 + $0x30] sm:$0xff] }
0x1026   :  { %v1119_v31 = vsub.f32 1.0, %v4127_v33  ;;  %vm2608_vm8 = vcmp.eq.f32.partialorder %v4127_v33, 0.0 }
0x1027   :  { %1012 = vrot.lane.b32.xlu0 %v4079_v35, %s3729_s3 }
0x1099   :  { %v1013_v40 = vpop.permute.xlu0 %1012 }
0x109a   :  { %3225 = vmatmul.mubr.msk.f32.vlgmr.msra.gmra.mrb[18].mxu0 %vm62_vm1, %v1013_v40  ;;  %v4137_v40 = vld [vmem:[%s4701_s1 + $0x38] sm:$0xff] }
0x109b   :  { %3440 = vmatpush3.bf16.msra.mxu0 %v4089_v41  ;;  %3246 = vmatprep.mubr.msk.f32.mxu0 %vm3726_vm0, %v3725_v4  ;;  %vm2609_vm10 = vcmp.eq.f32.partialorder %v4137_v40, 0.0 }
0x109c   :  { %3441 = vmatprep.subr.bf16.mxu0 %v3724_v3 }
0x109f   :  { %3443 = vmatpush3.bf16.msra.mxu0 %v4099_v43 }
0x10a0   :  { %3450 = vmatprep.subr.bf16.mxu0 %v3724_v3 }
0x10a2   :  { %3247 = vmatmul.mubr.f32.vlgmr.msra.gmra.mrb[20].mxu0 %v3725_v4 }
0x10a3   :  { %3452 = vmatpush3.bf16.msra.mxu0 %v4089_v41  ;;  %3268 = vmatprep.mubr.msk.f32.mxu0 %vm3726_vm0, %v3725_v4 }
0x10a4   :  { %3453 = vmatprep.subr.bf16.mxu0 %v3724_v3 }
0x10a7   :  { %3455 = vmatpush3.bf16.msra.mxu0 %v4099_v43 }
0x10a8   :  { %3462 = vmatprep.subr.bf16.mxu0 %v3724_v3 }
0x116d   :  { %v1082_v48 = vpop.f32.mrb[18].mxu0 }
0x116e   :  { %v1086_v60 = vadd.f32 %v1082_v48, %v190_v45  ;;  %v3226_v19 = vpop.f32.mrb[19].mxu0  ;;  %v998_v45 = vmul.f32 %v4074_v22, %v4065_v8  ;;  %v997_v48 = vmul.f32 %v4072_v16, %v4068_v13 }
0x1170   :  { %3576 = vtanh.f32 %v1086_v60  ;;  %v2986_v25 = vmul.f32 -1.442695, %v1086_v60  ;;  %v4144_v59 = vadd.f32 %v998_v45, %v997_v48 }
0x1175   :  { %v1331_v63 = vpop.f32.mrb[20].mxu0 }
0x1176   :  { %v1335_v1 = vadd.f32 %v1331_v63, %v198_v50  ;;  %v3248_v6 = vpop.f32.mrb[21].mxu0 }
0x1178   :  { %3578 = vtanh.f32 %v1335_v1  ;;  %v2991_v11 = vmul.f32 -1.442695, %v1335_v1 }
0x1179   :  { %3580 = vpow2.f32 %v2986_v25 }
0x117a   :  { %v3577_v7 = vpop.eup %3576  ;;  %3582 = vpow2.f32 %v2991_v11 }
0x117b   :  { %1096 = vrot.lane.b32.xlu1 %v3577_v7, %s3728_s21 }
0x1182   :  { %v3579_v52 = vpop.eup %3578 }
0x1183   :  { %1345 = vrot.lane.b32.xlu0 %v3579_v52, %s3728_s21  ;;  %v3581_v12 = vpop.eup %3580  ;;  %v1367_v52 = vsub.f32 1.0, %v4137_v40 }
0x1184   :  { %v1090_v27 = vadd.f32 1.0, %v3581_v12  ;;  %v3583_v15 = vpop.eup %3582 }
0x1185   :  { %v1339_v26 = vadd.f32 1.0, %v3583_v15 }
0x1186   :  { %3584 = vrcp.f32 %v1090_v27 }
0x1187   :  { %3586 = vrcp.f32 %v1339_v26 }
0x1190   :  { %v3585_v58 = vpop.eup %3584 }
0x1191   :  { %v3587_v36 = vpop.eup %3586  ;;  %v1094_v60 = vmul.f32 %v3585_v58, %v4144_v59 }
0x1192   :  { %v1343_v63 = vmul.f32 0.0, %v3587_v36 }
0x11ed   :  { %v1097_v18 = vpop.permute.xlu1 %1096 }
0x11ee   :  { %v1099_v30 = vmul.f32 %v3585_v58, %v1097_v18 }
0x11f0   :  { %1101 = vrot.lane.b32.xlu1 %v1099_v30, %s3729_s3 }
0x11f4   :  { %1115 = vperm.xlu1 %3526, %v4127_v33  }
0x11f5   :  { %v1346_v38 = vpop.permute.xlu0 %1345 }
0x11f6   :  { %v1348_v42 = vmul.f32 %v3587_v36, %v1346_v38 }
0x11f8   :  { %1350 = vrot.lane.b32.xlu0 %v1348_v42, %s3729_s3 }
0x11fc   :  { %1122 = vperm.xlu0 %3527, %v1119_v31  }
0x1200   :  { %1363 = vperm.xlu0 %3527, %v4137_v40  }
0x1262   :  { %v1102_v19 = vpop.permute.xlu1 %1101 }
0x1263   :  { %v4147_v50 = vadd.f32 %v1102_v19, %v1094_v60 }
0x1265   :  { %3588 = vtanh.f32 %v4147_v50 }
0x126a   :  { %v1351_v1 = vpop.permute.xlu0 %1350 }
0x126b   :  { %v1353_v6 = vadd.f32 %v1351_v1, %v1343_v63  ;;  %v196_v63 = vadd.f32 %v4012_v57, %v3866_v28 }
0x126d   :  { %3590 = vtanh.f32 %v1353_v6 }
0x126f   :  { %v3589_v7 = vpop.eup %3588 }
0x1270   :  { %1107 = vrot.lane.b32.xlu1 %v3589_v7, %s3728_s21 }
0x1273   :  { %v4155_v13 = vpop.permute.xlu1 %1115 }
0x1274   :  { %1370 = vperm.xlu1 %3526, %v1367_v52  }
0x1277   :  { %v3591_v8 = vpop.eup %3590 }
0x1278   :  { %1356 = vrot.lane.b32.xlu0 %v3591_v8, %s3728_s21  ;;  %v192_v8 = vadd.f32 %v4010_v54, %v4117_v61 }
0x127b   :  { %v4157_v22 = vpop.permute.xlu0 %1122 }
0x127c   :  { %v1125_v12 = vmul.f32 %v4157_v22, %v4079_v35 }
0x127f   :  { %v4164_v26 = vpop.permute.xlu0 %1363 }
0x12e2   :  { %v1108_v25 = vpop.permute.xlu1 %1107 }
0x12e3   :  { %v1110_v11 = vmul.f32 %v3585_v58, %v1108_v25  ;;  %v1375_v58 = vmul.f32 %v4164_v26, %v1353_v6 }
0x12e5   :  { %v1118_v27 = vmul.f32 %v4155_v13, %v1110_v11 }
0x12e7   :  { %v4162_v15 = vadd.f32 %v1125_v12, %v1118_v27 }
0x12e9   :  { %1142 = vrot.lane.b32.xlu1 %v4162_v15, %s3729_s3 }
0x12ea   :  { %v1357_v18 = vpop.permute.xlu0 %1356 }
0x12eb   :  { %v1359_v30 = vmul.f32 %v3587_v36, %v1357_v18 }
0x12ed   :  { %v1366_v42 = vmul.f32 %v4164_v26, %v1359_v30 }
0x12f3   :  { %v1371_v38 = vpop.permute.xlu1 %1370 }
0x12f4   :  { %v1373_v45 = vmul.f32 0.0, %v1371_v38 }
0x12f6   :  { %v4170_v48 = vadd.f32 %v1373_v45, %v1366_v42  ;;  %v4172_v60 = vadd.f32 %v1375_v58, %v1373_v45 }
0x12f8   :  { %1386 = vrot.lane.b32.xlu0 %v4170_v48, %s3729_s3 }
0x135b   :  { %v1143_v19 = vpop.permute.xlu1 %1142 }
0x135c   :  { %3236 = vmatmul.mubr.msk.f32.vlgmr.msra.gmra.mrb[10].mxu1 %vm62_vm1, %v1143_v19 }
0x135d   :  { %3446 = vmatpush3.bf16.msra.mxu1 %v4089_v41  ;;  %3257 = vmatprep.mubr.msk.f32.mxu1 %vm3726_vm0, %v3725_v4 }
0x135e   :  { %3447 = vmatprep.subr.bf16.mxu1 %v3724_v3 }
0x1361   :  { %3449 = vmatpush3.bf16.msra.mxu1 %v4099_v43 }
0x1362   :  { %3456 = vmatprep.subr.bf16.mxu1 %v3724_v3 }
0x136a   :  { %v1387_v36 = vpop.permute.xlu0 %1386 }
0x136b   :  { %3258 = vmatmul.mubr.msk.f32.vlgmr.msra.gmra.mrb[12].mxu1 %vm62_vm1, %v1387_v36 }
0x136c   :  { %3458 = vmatpush3.bf16.msra.mxu1 %v4089_v41  ;;  %3279 = vmatprep.mubr.msk.f32.mxu1 %vm3726_vm0, %v3725_v4 }
0x136d   :  { %3459 = vmatprep.subr.bf16.mxu1 %v3724_v3 }
0x1370   :  { %3461 = vmatpush3.bf16.msra.mxu1 %v4099_v43 }
0x1371   :  { %3468 = vmatprep.subr.bf16.mxu1 %v3724_v3 }
0x142f   :  { %v1212_v1 = vpop.f32.mrb[10].mxu1 }
0x1430   :  { %v4192_v6 = vadd.f32 %v1212_v1, %v196_v63  ;;  %v3237_v7 = vpop.f32.mrb[11].mxu1 }
0x143e   :  { %v1456_v25 = vpop.f32.mrb[12].mxu1 }
0x143f   :  { %v1460_v11 = vadd.f32 %v1456_v25, %v192_v8  ;;  %v3259_v12 = vpop.f32.mrb[13].mxu1 }
0x1440   :  { %v186_v12 = vadd.f32 %v4006_v51, %v4117_v61 }
0x1441   :  { %3592 = vtanh.f32 %v1460_v11  ;;  %v2994_v18 = vmul.f32 -1.442695, %v1460_v11 }
0x1443   :  { %3594 = vpow2.f32 %v2994_v18 }
0x144b   :  { %v3593_v27 = vpop.eup %3592 }
0x144c   :  { %1470 = vrot.lane.b32.xlu1 %v3593_v27, %s3728_s21 }
0x144d   :  { %v3595_v30 = vpop.eup %3594 }
0x144e   :  { %v1464_v28 = vadd.f32 1.0, %v3595_v30 }
0x1450   :  { %1488 = vperm.xlu1 %3526, %v4127_v33   ;;  %3596 = vrcp.f32 %v1464_v28 }
0x145a   :  { %v3597_v57 = vpop.eup %3596 }
0x145b   :  { %v1468_v54 = vmul.f32 %v3597_v57, %v4172_v60 }
0x14be   :  { %v1471_v38 = vpop.permute.xlu1 %1470 }
0x14bf   :  { %v1473_v42 = vmul.f32 %v3597_v57, %v1471_v38 }
0x14c1   :  { %1475 = vrot.lane.b32.xlu0 %v1473_v42, %s3729_s3 }
0x14c5   :  { %1495 = vperm.xlu0 %3527, %v1119_v31  }
0x14cf   :  { %v4203_v36 = vpop.permute.xlu1 %1488 }
0x1533   :  { %v1476_v45 = vpop.permute.xlu0 %1475 }
0x1534   :  { %v1478_v58 = vadd.f32 %v1476_v45, %v1468_v54 }
0x1536   :  { %3598 = vtanh.f32 %v1478_v58 }
0x1540   :  { %v3599_v19 = vpop.eup %3598 }
0x1541   :  { %1481 = vrot.lane.b32.xlu1 %v3599_v19, %s3728_s21 }
0x1544   :  { %v1496_v63 = vpop.permute.xlu0 %1495 }
0x1545   :  { %v1498_v8 = vmul.f32 %v1496_v63, %v4170_v48  ;;  %v1501_v51 = vmul.f32 %v1496_v63, %v4172_v60  ;;  %v180_v63 = vadd.f32 %v4004_v49, %v4117_v61 }
0x15b3   :  { %v1482_v1 = vpop.permute.xlu1 %1481 }
0x15b4   :  { %v1484_v7 = vmul.f32 %v3597_v57, %v1482_v1  ;;  %v1500_v1 = vmul.f32 %v4203_v36, %v1478_v58 }
0x15b6   :  { %v1491_v25 = vmul.f32 %v4203_v36, %v1484_v7  ;;  %v1502_v7 = vadd.f32 %v1501_v51, %v1500_v1 }
0x15b8   :  { %v4207_v11 = vadd.f32 %v1498_v8, %v1491_v25 }
0x15ba   :  { %1511 = vrot.lane.b32.xlu0 %v4207_v11, %s3729_s3 }
0x162c   :  { %v1512_v31 = vpop.permute.xlu0 %1511 }
0x162d   :  { %3269 = vmatmul.mubr.msk.f32.vlgmr.msra.gmra.mrb[22].mxu0 %vm62_vm1, %v1512_v31 }
0x162e   :  { %3464 = vmatpush3.bf16.msra.mxu0 %v4089_v41  ;;  %3290 = vmatprep.mubr.msk.f32.mxu0 %vm3726_vm0, %v3725_v4 }
0x162f   :  { %3465 = vmatprep.subr.bf16.mxu0 %v3724_v3 }
0x1632   :  { %3467 = vmatpush3.bf16.msra.mxu0 %v4099_v43 }
0x1633   :  { %3474 = vmatprep.subr.bf16.mxu0 %v3724_v3 }
0x1700   :  { %v1581_v27 = vpop.f32.mrb[22].mxu0 }
0x1701   :  { %v1585_v18 = vadd.f32 %v1581_v27, %v186_v12  ;;  %v3270_v30 = vpop.f32.mrb[23].mxu0 }
0x1703   :  { %3600 = vtanh.f32 %v1585_v18  ;;  %v2997_v57 = vmul.f32 -1.442695, %v1585_v18 }
0x1705   :  { %3602 = vpow2.f32 %v2997_v57 }
0x170d   :  { %v3601_v28 = vpop.eup %3600 }
0x170e   :  { %1595 = vrot.lane.b32.xlu1 %v3601_v28, %s3728_s21 }
0x170f   :  { %v3603_v38 = vpop.eup %3602 }
0x1710   :  { %v1589_v42 = vadd.f32 1.0, %v3603_v38 }
0x1712   :  { %1613 = vperm.xlu1 %3526, %v4057_v10   ;;  %3604 = vrcp.f32 %v1589_v42 }
0x171c   :  { %v3605_v54 = vpop.eup %3604 }
0x171d   :  { %v1593_v8 = vmul.f32 %v3605_v54, %v1502_v7 }
0x1780   :  { %v1596_v45 = vpop.permute.xlu1 %1595 }
0x1781   :  { %v1598_v19 = vmul.f32 %v3605_v54, %v1596_v45 }
0x1783   :  { %1600 = vrot.lane.b32.xlu0 %v1598_v19, %s3729_s3 }
0x1787   :  { %1620 = vperm.xlu0 %3527, %v989_v2  }
0x1791   :  { %v4228_v27 = vpop.permute.xlu1 %1613 }
0x17f5   :  { %v1601_v25 = vpop.permute.xlu0 %1600 }
0x17f6   :  { %v1603_v31 = vadd.f32 %v1601_v25, %v1593_v8 }
0x17f8   :  { %3606 = vtanh.f32 %v1603_v31 }
0x1802   :  { %v3607_v12 = vpop.eup %3606 }
0x1803   :  { %1606 = vrot.lane.b32.xlu1 %v3607_v12, %s3728_s21  ;;  %v1625_v12 = vmul.f32 %v4228_v27, %v1603_v31  ;;  %v174_v31 = vadd.f32 %v3952_v0, %v4117_v61 }
0x1806   :  { %v1621_v18 = vpop.permute.xlu0 %1620 }
0x1807   :  { %v1623_v10 = vmul.f32 %v1621_v18, %v4207_v11  ;;  %v1626_v49 = vmul.f32 %v1621_v18, %v1502_v7 }
0x1875   :  { %v1607_v30 = vpop.permute.xlu1 %1606 }
0x1876   :  { %v1609_v28 = vmul.f32 %v3605_v54, %v1607_v30  ;;  %v1627_v30 = vadd.f32 %v1626_v49, %v1625_v12 }
0x1878   :  { %v1616_v2 = vmul.f32 %v4228_v27, %v1609_v28 }
0x187a   :  { %v4232_v60 = vadd.f32 %v1623_v10, %v1616_v2 }
0x187c   :  { %1636 = vrot.lane.b32.xlu0 %v4232_v60, %s3729_s3 }
0x18ee   :  { %v1637_v58 = vpop.permute.xlu0 %1636 }
0x18ef   :  { %3280 = vmatmul.mubr.msk.f32.vlgmr.msra.gmra.mrb[14].mxu1 %vm62_vm1, %v1637_v58 }
0x18f0   :  { %3470 = vmatpush3.bf16.msra.mxu1 %v4089_v41  ;;  %3301 = vmatprep.mubr.msk.f32.mxu1 %vm3726_vm0, %v3725_v4 }
0x18f1   :  { %3471 = vmatprep.subr.bf16.mxu1 %v3724_v3 }
0x18f4   :  { %3473 = vmatpush3.bf16.msra.mxu1 %v4099_v43 }
0x18f5   :  { %3480 = vmatprep.subr.bf16.mxu1 %v3724_v3 }
0x19c2   :  { %v1706_v57 = vpop.f32.mrb[14].mxu1 }
0x19c3   :  { %v1710_v38 = vadd.f32 %v1706_v57, %v180_v63  ;;  %v3281_v42 = vpop.f32.mrb[15].mxu1 }
0x19c5   :  { %3608 = vtanh.f32 %v1710_v38  ;;  %v3000_v45 = vmul.f32 -1.442695, %v1710_v38 }
0x19c7   :  { %3610 = vpow2.f32 %v3000_v45 }
0x19cf   :  { %v3609_v54 = vpop.eup %3608 }
0x19d0   :  { %1720 = vrot.lane.b32.xlu1 %v3609_v54, %s3728_s21 }
0x19d1   :  { %v3611_v19 = vpop.eup %3610 }
0x19d2   :  { %v1714_v51 = vadd.f32 1.0, %v3611_v19 }
0x19d4   :  { %1738 = vperm.xlu1 %3526, %v4028_v5   ;;  %3612 = vrcp.f32 %v1714_v51 }
0x19de   :  { %v3613_v1 = vpop.eup %3612 }
0x19df   :  { %v1718_v28 = vmul.f32 %v3613_v1, %v1627_v30 }
0x1a42   :  { %v1721_v8 = vpop.permute.xlu1 %1720 }
0x1a43   :  { %v1723_v25 = vmul.f32 %v3613_v1, %v1721_v8 }
0x1a45   :  { %1725 = vrot.lane.b32.xlu0 %v1723_v25, %s3729_s3 }
0x1a49   :  { %1745 = vperm.xlu0 %3527, %v859_v14  }
0x1a53   :  { %v4252_v63 = vpop.permute.xlu1 %1738 }
0x1ab7   :  { %v1726_v10 = vpop.permute.xlu0 %1725 }
0x1ab8   :  { %v1728_v2 = vadd.f32 %v1726_v10, %v1718_v28 }
0x1aba   :  { %3614 = vtanh.f32 %v1728_v2  ;;  %v1750_v10 = vmul.f32 %v4252_v63, %v1728_v2  ;;  %v168_v2 = vadd.f32 %v3916_v29, %v4117_v61 }
0x1ac4   :  { %v3615_v58 = vpop.eup %3614 }
0x1ac5   :  { %1731 = vrot.lane.b32.xlu1 %v3615_v58, %s3728_s21 }
0x1ac8   :  { %v1746_v57 = vpop.permute.xlu0 %1745 }
0x1ac9   :  { %v1748_v54 = vmul.f32 %v1746_v57, %v4232_v60  ;;  %v1751_v0 = vmul.f32 %v1746_v57, %v1627_v30 }
0x1acb   :  { %v1752_v58 = vadd.f32 %v1751_v0, %v1750_v10 }
0x1b37   :  { %v1732_v38 = vpop.permute.xlu1 %1731 }
0x1b38   :  { %v1734_v42 = vmul.f32 %v3613_v1, %v1732_v38 }
0x1b3a   :  { %v1741_v5 = vmul.f32 %v4252_v63, %v1734_v42 }
0x1b3c   :  { %v4256_v14 = vadd.f32 %v1748_v54, %v1741_v5 }
0x1b3e   :  { %1761 = vrot.lane.b32.xlu0 %v4256_v14, %s3729_s3 }
0x1bb0   :  { %v1762_v7 = vpop.permute.xlu0 %1761 }
0x1bb1   :  { %3291 = vmatmul.mubr.msk.f32.vlgmr.msra.gmra.mrb[24].mxu0 %vm62_vm1, %v1762_v7 }
0x1bb2   :  { %3476 = vmatpush3.bf16.msra.mxu0 %v4089_v41  ;;  %3312 = vmatprep.mubr.msk.f32.mxu0 %vm3726_vm0, %v3725_v4 }
0x1bb3   :  { %3477 = vmatprep.subr.bf16.mxu0 %v3724_v3 }
0x1bb6   :  { %3479 = vmatpush3.bf16.msra.mxu0 %v4099_v43 }
0x1c84   :  { %v1831_v18 = vpop.f32.mrb[24].mxu0 }
0x1c85   :  { %v1835_v45 = vadd.f32 %v1831_v18, %v174_v31  ;;  %v3292_v19 = vpop.f32.mrb[25].mxu0 }
0x1c87   :  { %3616 = vtanh.f32 %v1835_v45  ;;  %v3003_v1 = vmul.f32 -1.442695, %v1835_v45 }
0x1c89   :  { %3618 = vpow2.f32 %v3003_v1 }
0x1c91   :  { %v3617_v51 = vpop.eup %3616 }
0x1c92   :  { %1845 = vrot.lane.b32.xlu1 %v3617_v51, %s3728_s21 }
0x1c93   :  { %v3619_v8 = vpop.eup %3618 }
0x1c94   :  { %v1839_v25 = vadd.f32 1.0, %v3619_v8 }
0x1c96   :  { %1863 = vperm.xlu1 %3526, %v3966_v9   ;;  %3620 = vrcp.f32 %v1839_v25 }
0x1ca0   :  { %v3621_v49 = vpop.eup %3620 }
0x1ca1   :  { %v1843_v38 = vmul.f32 %v3621_v49, %v1752_v58 }
0x1d04   :  { %v1846_v12 = vpop.permute.xlu1 %1845 }
0x1d05   :  { %v1848_v28 = vmul.f32 %v3621_v49, %v1846_v12 }
0x1d07   :  { %1850 = vrot.lane.b32.xlu0 %v1848_v28, %s3729_s3 }
0x1d0b   :  { %1870 = vperm.xlu0 %3527, %v729_v17  }
0x1d15   :  { %v4275_v7 = vpop.permute.xlu1 %1863 }
0x1d79   :  { %v1851_v42 = vpop.permute.xlu0 %1850 }
0x1d7a   :  { %v1853_v54 = vadd.f32 %v1851_v42, %v1843_v38 }
0x1d7c   :  { %3622 = vtanh.f32 %v1853_v54  ;;  %v1875_v12 = vmul.f32 %v4275_v7, %v1853_v54  ;;  %v162_v54 = vadd.f32 %v3886_v55, %v4117_v61 }
0x1d86   :  { %v3623_v5 = vpop.eup %3622 }
0x1d87   :  { %1856 = vrot.lane.b32.xlu1 %v3623_v5, %s3728_s21 }
0x1d8a   :  { %v1871_v31 = vpop.permute.xlu0 %1870 }
0x1d8b   :  { %v1873_v19 = vmul.f32 %v1871_v31, %v4256_v14  ;;  %v1876_v29 = vmul.f32 %v1871_v31, %v1752_v58 }
0x1d8d   :  { %v1877_v28 = vadd.f32 %v1876_v29, %v1875_v12 }
0x1df9   :  { %v1857_v18 = vpop.permute.xlu1 %1856 }
0x1dfa   :  { %v1859_v45 = vmul.f32 %v3621_v49, %v1857_v18 }
0x1dfc   :  { %v1866_v9 = vmul.f32 %v4275_v7, %v1859_v45 }
0x1dfe   :  { %v4279_v17 = vadd.f32 %v1873_v19, %v1866_v9 }
0x1e00   :  { %1886 = vrot.lane.b32.xlu0 %v4279_v17, %s3729_s3 }
0x1e72   :  { %v1887_v30 = vpop.permute.xlu0 %1886 }
0x1e73   :  { %3302 = vmatmul.mubr.msk.f32.vlgmr.msra.gmra.mrb[16].mxu1 %vm62_vm1, %v1887_v30 }
0x1e74   :  { %3482 = vmatpush3.bf16.msra.mxu1 %v4089_v41  ;;  %3323 = vmatprep.mubr.msk.f32.mxu1 %vm3726_vm0, %v3725_v4  ;;  %vm2658_vm0 = vcmask 15360  }
0x1e75   :  { %3483 = vmatprep.subr.bf16.mxu1 %v3724_v3 }
0x1e78   :  { %3485 = vmatpush3.bf16.msra.mxu1 %v4099_v43 }
0x1f46   :  { %v1956_v57 = vpop.f32.mrb[16].mxu1 }
0x1f47   :  { %v1960_v51 = vadd.f32 %v1956_v57, %v168_v2  ;;  %v3303_v1 = vpop.f32.mrb[17].mxu1 }
0x1f49   :  { %3624 = vtanh.f32 %v1960_v51  ;;  %v3006_v41 = vmul.f32 -1.442695, %v1960_v51  ;;  %v4313_v51 = vld [vmem:[%s4701_s1 + $0x8] sm:$0xff] }
0x1f4a   :  { %vm2603_vm5 = vcmp.eq.f32.partialorder %v4313_v51, 0.0 }
0x1f4b   :  { %3626 = vpow2.f32 %v3006_v41 }
0x1f53   :  { %v3625_v8 = vpop.eup %3624 }
0x1f54   :  { %1970 = vrot.lane.b32.xlu1 %v3625_v8, %s3728_s21 }
0x1f55   :  { %v3627_v25 = vpop.eup %3626 }
0x1f56   :  { %v1964_v4 = vadd.f32 1.0, %v3627_v25 }
0x1f58   :  { %1988 = vperm.xlu1 %3526, %v3930_v37   ;;  %3628 = vrcp.f32 %v1964_v4 }
0x1f62   :  { %v3629_v3 = vpop.eup %3628 }
0x1f63   :  { %v1968_v0 = vmul.f32 %v3629_v3, %v1877_v28 }
0x1fc6   :  { %v1971_v49 = vpop.permute.xlu1 %1970 }
0x1fc7   :  { %v1973_v43 = vmul.f32 %v3629_v3, %v1971_v49 }
0x1fc9   :  { %1975 = vrot.lane.b32.xlu0 %v1973_v43, %s3729_s3 }
0x1fcd   :  { %1995 = vperm.xlu0 %3527, %v599_v44  }
0x1fd7   :  { %v4298_v5 = vpop.permute.xlu1 %1988 }
0x203b   :  { %v1976_v10 = vpop.permute.xlu0 %1975 }
0x203c   :  { %v1978_v38 = vadd.f32 %v1976_v10, %v1968_v0 }
0x203e   :  { %3630 = vtanh.f32 %v1978_v38  ;;  %v2000_v43 = vmul.f32 %v4298_v5, %v1978_v38 }
0x2048   :  { %v3631_v42 = vpop.eup %3630 }
0x2049   :  { %1981 = vrot.lane.b32.xlu1 %v3631_v42, %s3728_s21 }
0x204c   :  { %v1996_v18 = vpop.permute.xlu0 %1995 }
0x204d   :  { %v1998_v9 = vmul.f32 %v1996_v18, %v4279_v17  ;;  %v2001_v49 = vmul.f32 %v1996_v18, %v1877_v28 }
0x204f   :  { %v4319_v29 = vadd.f32 %v2001_v49, %v2000_v43 }
0x20bb   :  { %v1982_v45 = vpop.permute.xlu1 %1981 }
0x20bc   :  { %v1984_v19 = vmul.f32 %v3629_v3, %v1982_v45  ;;  %v2117_v3 = vsub.f32 1.0, %v4313_v51 }
0x20be   :  { %v1991_v37 = vmul.f32 %v4298_v5, %v1984_v19 }
0x20c0   :  { %v4302_v44 = vadd.f32 %v1998_v9, %v1991_v37 }
0x20c2   :  { %2011 = vrot.lane.b32.xlu0 %v4302_v44, %s3729_s3 }
0x2134   :  { %v2012_v58 = vpop.permute.xlu0 %2011 }
0x2135   :  { %3313 = vmatmul.mubr.msk.f32.vlgmr.msra.gmra.mrb[26].mxu0 %vm62_vm1, %v2012_v58 }
0x2208   :  { %v2081_v31 = vpop.f32.mrb[26].mxu0 }
0x2209   :  { %v2085_v30 = vadd.f32 %v2081_v31, %v162_v54  ;;  %v3314_v2 = vpop.f32.mrb[27].mxu0  ;;  %v2989_v54 = vmul.f32 -1.442695, %v4192_v6 }
0x220b   :  { %3632 = vtanh.f32 %v2085_v30  ;;  %v3009_v1 = vmul.f32 -1.442695, %v2085_v30 }
0x220d   :  { %3634 = vpow2.f32 %v3009_v1 }
0x2215   :  { %v3633_v57 = vpop.eup %3632 }
0x2216   :  { %2095 = vrot.lane.b32.xlu1 %v3633_v57, %s3728_s21 }
0x2217   :  { %v3635_v8 = vpop.eup %3634 }
0x2218   :  { %v2089_v41 = vadd.f32 1.0, %v3635_v8  ;;  %v4346_v8 = vld [vmem:[%s4701_s1] sm:$0xff] }
0x2219   :  { %vm2602_vm3 = vcmp.eq.f32.partialorder %v4346_v8, 0.0 }
0x221a   :  { %2113 = vperm.xlu1 %3526, %v4313_v51   ;;  %3636 = vrcp.f32 %v2089_v41 }
0x2224   :  { %v3637_v55 = vpop.eup %3636 }
0x2225   :  { %v2093_v12 = vmul.f32 %v3637_v55, %v4319_v29 }
0x2288   :  { %v2096_v25 = vpop.permute.xlu1 %2095 }
0x2289   :  { %v2098_v4 = vmul.f32 %v3637_v55, %v2096_v25  ;;  %v1127_v25 = vmul.f32 %v4155_v13, %v4147_v50  ;;  %v740_v50 = vmul.f32 %v4000_v46, %v3996_v39  ;;  %v156_v39 = vadd.f32 %v3869_v32, %v4117_v61 }
0x228b   :  { %2100 = vrot.lane.b32.xlu0 %v2098_v4, %s3729_s3 }
0x228f   :  { %2120 = vperm.xlu0 %3527, %v2117_v3  }
0x2299   :  { %v4326_v45 = vpop.permute.xlu1 %2113 }
0x22fd   :  { %v2101_v0 = vpop.permute.xlu0 %2100 }
0x22fe   :  { %v4322_v10 = vadd.f32 %v2101_v0, %v2093_v12  ;;  %v480_v0 = vmul.f32 %v3912_v24, %v3908_v20  ;;  %v1000_v20 = vmul.f32 %v4079_v35, %v4072_v16  ;;  %v1628_v24 = vmul.f32 %v4232_v60, %v4228_v27 }
0x2300   :  { %3638 = vtanh.f32 %v4322_v10 }
0x2301   :  { %3640 = vtanh.f32 %v4192_v6  ;;  %v2242_v6 = vsub.f32 1.0, %v4346_v8 }
0x2302   :  { %3642 = vpow2.f32 %v2989_v54 }
0x230a   :  { %v3639_v42 = vpop.eup %3638 }
0x230b   :  { %2106 = vrot.lane.b32.xlu1 %v3639_v42, %s3728_s21  ;;  %v3641_v58 = vpop.eup %3640 }
0x230c   :  { %v3643_v31 = vpop.eup %3642 }
0x230d   :  { %v1220_v30 = vadd.f32 1.0, %v3643_v31 }
0x230e   :  { %v4329_v19 = vpop.permute.xlu0 %2120 }
0x230f   :  { %v2123_v18 = vmul.f32 %v4329_v19, %v4302_v44  ;;  %3644 = vrcp.f32 %v1220_v30 }
0x2319   :  { %v4341_v57 = vpop.eup %3644 }
0x237d   :  { %v2107_v28 = vpop.permute.xlu1 %2106 }
0x237e   :  { %v2109_v38 = vmul.f32 %v3637_v55, %v2107_v28  ;;  %v1128_v55 = vmul.f32 %v4157_v22, %v4144_v59  ;;  %v1878_v22 = vmul.f32 %v4279_v17, %v4275_v7 }
0x2380   :  { %v2116_v9 = vmul.f32 %v4326_v45, %v2109_v38  ;;  %v1129_v4 = vadd.f32 %v1128_v55, %v1127_v25 }
0x2382   :  { %v4334_v37 = vadd.f32 %v2123_v18, %v2116_v9  ;;  %v1224_v3 = vmul.f32 %v4341_v57, %v1129_v4 }
0x2384   :  { %2136 = vrot.lane.b32.xlu0 %v4334_v37, %s3729_s3  ;;  %v2128_v59 = vmul.f32 %v4334_v37, %v4326_v45 }
0x2388   :  { %1226 = vrot.lane.b32.xlu0 %v3641_v58, %s3728_s21 }
0x23f6   :  { %v2137_v2 = vpop.permute.xlu0 %2136 }
0x23f7   :  { %3324 = vmatmul.mubr.msk.f32.vlgmr.msra.gmra.mrb[18].mxu1 %vm62_vm1, %v2137_v2 }
0x23fa   :  { %v1227_v1 = vpop.permute.xlu0 %1226 }
0x23fb   :  { %v1229_v41 = vmul.f32 %v4341_v57, %v1227_v1  ;;  %v2126_v1 = vmul.f32 %v4329_v19, %v4319_v29  ;;  %v610_v29 = vmul.f32 %v3948_v62, %v3944_v56  ;;  %v2266_v56 = vld [vmem:[%s4704_s6 + $0x10] sm:$0xff] }
0x23fd   :  { %1231 = vrot.lane.b32.xlu0 %v1229_v41, %s3729_s3  ;;  %v2125_v41 = vmul.f32 %v4326_v45, %v4322_v10  ;;  %v2003_v10 = vmul.f32 %v4302_v44, %v4298_v5  ;;  %v870_v45 = vmul.f32 %v4041_v23, %v4037_v34  ;;  %v2268_v23 = vld [vmem:[%s4704_s6 + $0x20] sm:$0xff]  ;;  %v2269_v5 = vld [vmem:[%s4704_s6 + $0x28] sm:$0xff] }
0x23fe   :  { %v3494_v44 = vpack.c.bf16 %v2269_v5, %v2268_v23 }
0x2401   :  { %2245 = vperm.xlu0 %3527, %v2242_v6   ;;  %v2127_v6 = vadd.f32 %v2126_v1, %v2125_v41 }
0x2405   :  { %1245 = vperm.xlu0 %3527, %v4137_v40  }
0x246f   :  { %v1232_v49 = vpop.permute.xlu0 %1231 }
0x2470   :  { %v1234_v43 = vadd.f32 %v1232_v49, %v1224_v3  ;;  %v351_v49 = vmul.f32 %v3882_v53, %v3879_v47  ;;  %v2264_v47 = vld [vmem:[%s4704_s6] sm:$0xff]  ;;  %v2265_v53 = vld [vmem:[%s4704_s6 + $0x8] sm:$0xff] }
0x2471   :  { %v3486_v62 = vpack.c.bf16 %v2265_v53, %v2264_v47  ;;  %v2469_v53 = vld [vmem:[%s4705_s8 + $0x20] sm:$0xff] }
0x2472   :  { %3646 = vtanh.f32 %v1234_v43  ;;  %v2270_v43 = vld [vmem:[%s4704_s6 + $0x30] sm:$0xff] }
0x2473   :  { %3487 = vmatprep.subr.bf16.mxu0 %v3486_v62 }
0x2474   :  { %3489 = vmatpush3.bf16.msra.mxu0 %v3486_v62 }
0x247c   :  { %v3647_v12 = vpop.eup %3646 }
0x247d   :  { %1237 = vrot.lane.b32.xlu0 %v3647_v12, %s3728_s21  ;;  %v2271_v12 = vld [vmem:[%s4704_s6 + $0x38] sm:$0xff] }
0x2480   :  { %v4379_v17 = vpop.permute.xlu0 %2245 }
0x2481   :  { %482 = vrot.lane.b32.xlu0 %v480_v0, %s3729_s3  ;;  %v3498_v0 = vpack.c.bf16 %v2271_v12, %v2270_v43 }
0x2484   :  { %v4381_v16 = vpop.permute.xlu0 %1245 }
0x2485   :  { %2130 = vrot.lane.b32.xlu0 %v2128_v59, %s3728_s21 }
0x2489   :  { %742 = vrot.lane.b32.xlu0 %v740_v50, %s3729_s3 }
0x248d   :  { %1880 = vrot.lane.b32.xlu0 %v1878_v22, %s3728_s21  ;;  %v2248_v22 = vmul.f32 %v4379_v17, %v4334_v37 }
0x2491   :  { %1002 = vrot.lane.b32.xlu0 %v1000_v20, %s3729_s3 }
0x2495   :  { %1630 = vrot.lane.b32.xlu0 %v1628_v24, %s3728_s21 }
0x24ca   :  { %v2206_v46 = vpop.f32.mrb[18].mxu1 }
0x24cb   :  { %v2210_v42 = vadd.f32 %v2206_v46, %v156_v39  ;;  %v3325_v28 = vpop.f32.mrb[19].mxu1  ;;  %v1753_v46 = vmul.f32 %v4256_v14, %v4252_v63 }
0x24cc   :  { %v1130_v28 = vmul.f32 %v4162_v15, %v4155_v13 }
0x24cd   :  { %3648 = vtanh.f32 %v2210_v42  ;;  %v3012_v9 = vmul.f32 -1.442695, %v2210_v42 }
0x24cf   :  { %3650 = vpow2.f32 %v3012_v9  ;;  %v2616_v9 = vsel %vm2608_vm8, 1, %v3727_v21 }
0x24d7   :  { %v3649_v7 = vpop.eup %3648 }
0x24d8   :  { %2220 = vrot.lane.b32.xlu1 %v3649_v7, %s3728_s21 }
0x24d9   :  { %v3651_v58 = vpop.eup %3650 }
0x24da   :  { %v2214_v54 = vadd.f32 1.0, %v3651_v58 }
0x24dc   :  { %3652 = vrcp.f32 %v2214_v54  ;;  %v2617_v54 = vsel %vm2609_vm10, 1, %v3727_v21 }
0x24e6   :  { %v3653_v31 = vpop.eup %3652 }
0x24e7   :  { %v2218_v55 = vmul.f32 %v3653_v31, %v2127_v6 }
0x24ef   :  { %v4383_v35 = vpop.permute.xlu0 %1237 }
0x24f0   :  { %v1240_v42 = vmul.f32 %v4341_v57, %v4383_v35  ;;  %v3722_v57 = vld [vmem:[%s4701_s1 + $0x20] sm:$0xff]  ;;  %v3723_v35 = vld [vmem:[%s4701_s1 + $0x28] sm:$0xff] }
0x24f1   :  { %vm2606_vm6 = vcmp.eq.f32.partialorder %v3722_v57, 0.0  ;;  %vm2607_vm9 = vcmp.eq.f32.partialorder %v3723_v35, 0.0 }
0x24f2   :  { %v1248_v37 = vmul.f32 %v4381_v16, %v1240_v42  ;;  %v2615_v58 = vsel %vm2607_vm9, 1, %v3727_v21 }
0x24f3   :  { %v483_v38 = vpop.permute.xlu0 %482 }
0x24f4   :  { %486 = vst.msk [vmem:[#allocation3 + $0x8] sm:$0xff] %vm62_vm1, %v483_v38  ;;  %v1503_v38 = vmul.f32 %v4207_v11, %v4203_v36  ;;  %v218_v36 = vld [vmem:[%s4701_s1 + $0x10] sm:$0xff] }
0x24f5   :  { %vm2604_vm4 = vcmp.eq.f32.partialorder %v218_v36, 0.0 }
0x24f7   :  { %v2131_v27 = vpop.permute.xlu0 %2130 }
0x24f8   :  { %2133 = vst.msk [vmem:[#allocation3 + $0x8] sm:$0xff] %vm1382_vm2, %v2131_v27 }
0x24fb   :  { %v743_v32 = vpop.permute.xlu0 %742 }
0x24fc   :  { %746 = vst.msk [vmem:[#allocation3 + $0x18] sm:$0xff] %vm62_vm1, %v743_v32  ;;  %v2612_v32 = vsel %vm2604_vm4, 1, %v3727_v21 }
0x24ff   :  { %v1881_v61 = vpop.permute.xlu0 %1880 }
0x2500   :  { %1883 = vst.msk [vmem:[#allocation3 + $0x18] sm:$0xff] %vm1382_vm2, %v1881_v61  ;;  %v2611_v61 = vsel %vm2603_vm5, 1, %v3727_v21 }
0x2503   :  { %v1003_v60 = vpop.permute.xlu0 %1002 }
0x2504   :  { %1006 = vst.msk [vmem:[#allocation3 + $0x28] sm:$0xff] %vm62_vm1, %v1003_v60  ;;  %v2614_v60 = vsel %vm2606_vm6, 1, %v3727_v21 }
0x2507   :  { %v1631_v18 = vpop.permute.xlu0 %1630 }
0x2508   :  { %1633 = vst.msk [vmem:[#allocation3 + $0x28] sm:$0xff] %vm1382_vm2, %v1631_v18 }
0x250f   :  { %v2261_v6 = vld [vmem:[#allocation3 + $0x28] sm:$0xff] }
0x254a   :  { %v2221_v30 = vpop.permute.xlu1 %2220 }
0x254b   :  { %v2223_v2 = vmul.f32 %v3653_v31, %v2221_v30  ;;  %v2257_v30 = vld [vmem:[#allocation3 + $0x8] sm:$0xff] }
0x254d   :  { %2225 = vrot.lane.b32.xlu1 %v2223_v2, %s3729_s3  ;;  %v2259_v2 = vld [vmem:[#allocation3 + $0x18] sm:$0xff] }
0x2551   :  { %2238 = vperm.xlu1 %3526, %v4346_v8  }
0x25bf   :  { %v2226_v25 = vpop.permute.xlu1 %2225 }
0x25c0   :  { %v2228_v4 = vadd.f32 %v2226_v25, %v2218_v55 }
0x25c2   :  { %3654 = vtanh.f32 %v2228_v4 }
0x25cc   :  { %v3655_v3 = vpop.eup %3654 }
0x25cd   :  { %2231 = vrot.lane.b32.xlu1 %v3655_v3, %s3728_s21  ;;  %v2465_v3 = vld [vmem:[%s4705_s8] sm:$0xff] }
0x25d0   :  { %v2239_v19 = vpop.permute.xlu1 %2238 }
0x25d1   :  { %1252 = vperm.xlu1 %3526, %v1367_v52   ;;  %v2267_v52 = vld [vmem:[%s4704_s6 + $0x18] sm:$0xff] }
0x25d2   :  { %v3490_v34 = vpack.c.bf16 %v2267_v52, %v2266_v56  ;;  %v2470_v56 = vld [vmem:[%s4705_s8 + $0x28] sm:$0xff]  ;;  %v2471_v52 = vld [vmem:[%s4705_s8 + $0x30] sm:$0xff] }
0x25d3   :  { %v3510_v62 = vpack.c.bf16 %v2470_v56, %v2469_v53 }
0x25d4   :  { %3491 = vmatprep.subr.bf16.mxu0 %v3490_v34 }
0x25d5   :  { %353 = vrot.lane.b32.xlu1 %v351_v49, %s3729_s3  ;;  %3493 = vmatpush3.bf16.msra.mxu0 %v3490_v34  ;;  %v2466_v49 = vld [vmem:[%s4705_s8 + $0x8] sm:$0xff]  ;;  %v2472_v34 = vld [vmem:[%s4705_s8 + $0x38] sm:$0xff] }
0x25d6   :  { %3495 = vmatprep.subr.bf16.mxu0 %v3494_v44  ;;  %v3514_v23 = vpack.c.bf16 %v2472_v34, %v2471_v52 }
0x25d9   :  { %612 = vrot.lane.b32.xlu1 %v610_v29, %s3729_s3  ;;  %3497 = vmatpush3.bf16.msra.mxu0 %v3494_v44  ;;  %v3502_v29 = vpack.c.bf16 %v2466_v49, %v2465_v3 }
0x25da   :  { %3499 = vmatprep.subr.bf16.mxu0 %v3498_v0 }
0x25db   :  { %3503 = vmatprep.subr.bf16.mxu1 %v3502_v29 }
0x25dc   :  { %3505 = vmatpush3.bf16.msra.mxu1 %v3502_v29 }
0x25dd   :  { %2005 = vrot.lane.b32.xlu1 %v2003_v10, %s3728_s21  ;;  %3501 = vmatpush3.bf16.msra.mxu0 %v3498_v0  ;;  %v2467_v10 = vld [vmem:[%s4705_s8 + $0x10] sm:$0xff] }
0x25e1   :  { %872 = vrot.lane.b32.xlu1 %v870_v45, %s3729_s3  ;;  %v2468_v45 = vld [vmem:[%s4705_s8 + $0x18] sm:$0xff] }
0x25e2   :  { %v3506_v47 = vpack.c.bf16 %v2468_v45, %v2467_v10 }
0x25e4   :  { %3507 = vmatprep.subr.bf16.mxu1 %v3506_v47 }
0x25e5   :  { %3509 = vmatpush3.bf16.msra.mxu1 %v3506_v47 }
0x25e6   :  { %3511 = vmatprep.subr.bf16.mxu1 %v3510_v62 }
0x25e9   :  { %3513 = vmatpush3.bf16.msra.mxu1 %v3510_v62 }
0x25ea   :  { %3515 = vmatprep.subr.bf16.mxu1 %v3514_v23 }
0x25ed   :  { %3517 = vmatpush3.bf16.msra.mxu1 %v3514_v23 }
0x263f   :  { %v2232_v59 = vpop.permute.xlu1 %2231 }
0x2640   :  { %v2234_v50 = vmul.f32 %v3653_v31, %v2232_v59 }
0x2642   :  { %v2241_v20 = vmul.f32 %v2239_v19, %v2234_v50 }
0x2644   :  { %v2249_v24 = vadd.f32 %v2248_v22, %v2241_v20  ;;  %v3013_v22 = vld [vmem:[%s4706_s7] ss:$0 sm:$0xff]  ;;  %s3730_s7 = smov 1  }
0x2646   :  { %v2250_v39 = vmul.f32 %v2249_v24, %v2239_v19 }
0x2648   :  { %2252 = vrot.lane.b32.xlu1 %v2250_v39, %s3728_s21 }
0x264c   :  { %1755 = vrot.lane.b32.xlu1 %v1753_v46, %s3728_s21 }
0x2650   :  { %v1253_v7 = vpop.permute.xlu1 %1252  ;;  %1132 = vrot.lane.b32.xlu1 %v1130_v28, %s3729_s3 }
0x2651   :  { %v1255_v17 = vmul.f32 %v1253_v7, %v4162_v15  ;;  %v1377_v15 = vmul.f32 %v4170_v48, %v4164_v26  ;;  %v219_v26 = vld [vmem:[%s4701_s1 + $0x18] sm:$0xff]  ;;  %v2610_v48 = vsel %vm2602_vm3, 1, %v3727_v21 }
0x2652   :  { %vm2605_vm7 = vcmp.eq.f32.partialorder %v219_v26, 0.0 }
0x2653   :  { %v1256_v27 = vadd.f32 %v1255_v17, %v1248_v37  ;;  %v2613_v18 = vsel %vm2605_vm7, 1, %v3727_v21 }
0x2654   :  { %1505 = vrot.lane.b32.xlu1 %v1503_v38, %s3728_s21  ;;  %v354_v63 = vpop.permute.xlu1 %353 }
0x2655   :  { %v1257_v14 = vmul.f32 %v1256_v27, %v4381_v16  ;;  %356 = vst.msk [vmem:[#allocation3] sm:$0xff] %vm62_vm1, %v354_v63 }
0x2657   :  { %1259 = vrot.lane.b32.xlu0 %v1257_v14, %s3729_s3 }
0x2658   :  { %2419 = vperm.xlu1 %3526, %v4346_v8   ;;  %v613_v13 = vpop.permute.xlu1 %612 }
0x2659   :  { %616 = vst.msk [vmem:[#allocation3 + $0x10] sm:$0xff] %vm62_vm1, %v613_v13 }
0x265b   :  { %1379 = vrot.lane.b32.xlu0 %v1377_v15, %s3728_s21 }
0x265c   :  { %2429 = vperm.xlu1 %3526, %v218_v36   ;;  %v2006_v11 = vpop.permute.xlu1 %2005 }
0x265d   :  { %2008 = vst.msk [vmem:[#allocation3 + $0x10] sm:$0xff] %vm1382_vm2, %v2006_v11 }
0x265f   :  { %2424 = vperm.xlu0 %3527, %v4313_v51  }
0x2660   :  { %2439 = vperm.xlu1 %3526, %v3722_v57   ;;  %v873_v16 = vpop.permute.xlu1 %872 }
0x2661   :  { %876 = vst.msk [vmem:[#allocation3 + $0x20] sm:$0xff] %vm62_vm1, %v873_v16 }
0x2663   :  { %2434 = vperm.xlu0 %3527, %v219_v26  }
0x2664   :  { %2449 = vperm.xlu1 %3526, %v4127_v33  }
0x2667   :  { %2444 = vperm.xlu0 %3527, %v3723_v35  }
0x2668   :  { %2619 = vperm.xlu1 %3526, %v2610_v48  }
0x266b   :  { %2454 = vperm.xlu0 %3527, %v4137_v40  }
0x266c   :  { %2625 = vperm.xlu1 %3526, %v2612_v32  }
0x266f   :  { %2622 = vperm.xlu0 %3527, %v2611_v61  }
0x2670   :  { %2631 = vperm.xlu1 %3526, %v2614_v60  }
0x2673   :  { %2628 = vperm.xlu0 %3527, %v2613_v18  }
0x2674   :  { %2637 = vperm.xlu1 %3526, %v2616_v9  }
0x2677   :  { %2634 = vperm.xlu0 %3527, %v2615_v58  }
0x2678   :  { %2778 = vrot.lane.b32.xlu1 %v4346_v8, %s3728_s21 }
0x267b   :  { %2640 = vperm.xlu0 %3527, %v2617_v54  }
0x267c   :  { %2782 = vrot.lane.b32.xlu1 %v218_v36, %s3728_s21 }
0x267f   :  { %2780 = vrot.lane.b32.xlu0 %v4313_v51, %s3728_s21 }
0x2680   :  { %2786 = vrot.lane.b32.xlu1 %v3722_v57, %s3728_s21 }
0x2683   :  { %2784 = vrot.lane.b32.xlu0 %v219_v26, %s3728_s21 }
0x2684   :  { %2790 = vrot.lane.b32.xlu1 %v4127_v33, %s3728_s21  ;;  %v2258_v33 = vld [vmem:[#allocation3 + $0x10] sm:$0xff] }
0x2687   :  { %2788 = vrot.lane.b32.xlu0 %v3723_v35, %s3728_s21 }
0x268b   :  { %2792 = vrot.lane.b32.xlu0 %v4137_v40, %s3728_s21 }
0x26ba   :  { %v2253_v21 = vpop.permute.xlu1 %2252 }
0x26bb   :  { %2255 = vst.msk [vmem:[#allocation3] sm:$0xff] %vm1382_vm2, %v2253_v21 }
0x26be   :  { %v1756_v8 = vpop.permute.xlu1 %1755 }
0x26bf   :  { %1758 = vst.msk [vmem:[#allocation3 + $0x20] sm:$0xff] %vm1382_vm2, %v1756_v8 }
0x26c2   :  { %v1133_v51 = vpop.permute.xlu1 %1132  ;;  %v2256_v31 = vld [vmem:[#allocation3] sm:$0xff] }
0x26c3   :  { %1136 = vst.msk [vmem:[#allocation3 + $0x30] sm:$0xff] %vm62_vm1, %v1133_v51  ;;  %3342 = vmatprep.mubr.msk.f32.mxu0 %vm2279_vm11, %v2256_v31 }
0x26c4   :  { %3343 = vmatmul.mubr.msk.f32.vlgmr.msra.gmra.mrb[28].mxu0 %vm2279_vm11, %v2257_v30 }
0x26c5   :  { %3345 = vmatprep.mubr.msk.f32.mxu0 %vm2279_vm11, %v2258_v33 }
0x26c6   :  { %v1506_v40 = vpop.permute.xlu1 %1505  ;;  %v2260_v1 = vld [vmem:[#allocation3 + $0x20] sm:$0xff] }
0x26c7   :  { %1508 = vst.msk [vmem:[#allocation3 + $0x30] sm:$0xff] %vm1382_vm2, %v1506_v40 }
0x26c8   :  { %3346 = vmatmul.mubr.msk.f32.gmra.mrb[30].mxu0 %vm2279_vm11, %v2259_v2 }
0x26c9   :  { %v1260_v41 = vpop.permute.xlu0 %1259  ;;  %3348 = vmatprep.mubr.msk.f32.mxu0 %vm2279_vm11, %v2260_v1 }
0x26ca   :  { %1263 = vst.msk [vmem:[#allocation3 + $0x38] sm:$0xff] %vm62_vm1, %v1260_v41 }
0x26cc   :  { %3349 = vmatmul.mubr.msk.f32.gmra.mrb[32].mxu0 %vm2279_vm11, %v2261_v6 }
0x26cd   :  { %v1380_v55 = vpop.permute.xlu0 %1379 }
0x26ce   :  { %1383 = vst.msk [vmem:[#allocation3 + $0x38] sm:$0xff] %vm1382_vm2, %v1380_v55  ;;  %v2262_v25 = vld [vmem:[#allocation3 + $0x30] sm:$0xff] }
0x26cf   :  { %3351 = vmatprep.mubr.msk.f32.mxu0 %vm2279_vm11, %v2262_v25 }
0x26d5   :  { %v2263_v4 = vld [vmem:[#allocation3 + $0x38] sm:$0xff] }
0x26d6   :  { %3352 = vmatmul.mubr.msk.f32.gmra.mrb[34].mxu0 %vm2279_vm11, %v2263_v4 }
0x26d7   :  { %v4541_v44 = vpop.permute.xlu1 %2419 }
0x26db   :  { %v4545_v43 = vpop.permute.xlu1 %2429 }
0x26de   :  { %v4539_v5 = vpop.permute.xlu0 %2424 }
0x26df   :  { %v4549_v0 = vpop.permute.xlu1 %2439 }
0x26e2   :  { %v4543_v19 = vpop.permute.xlu0 %2434 }
0x26e3   :  { %v4553_v50 = vpop.permute.xlu1 %2449 }
0x26e6   :  { %v4547_v12 = vpop.permute.xlu0 %2444 }
0x26e7   :  { %v4560_v39 = vpop.permute.xlu1 %2619 }
0x26e8   :  { %vm2642_vm13 = vcmp.eq.s32.totalorder %v4560_v39, 1 }
0x26ea   :  { %v4551_v59 = vpop.permute.xlu0 %2454 }
0x26eb   :  { %v4564_v13 = vpop.permute.xlu1 %2625 }
0x26ec   :  { %vm2644_vm15 = vcmp.eq.s32.totalorder %v4564_v13, 1 }
0x26ee   :  { %v4558_v20 = vpop.permute.xlu0 %2622 }
0x26ef   :  { %v4568_v60 = vpop.permute.xlu1 %2631  ;;  %vm2643_vm12 = vcmp.eq.s32.totalorder %v4558_v20, 1 }
0x26f0   :  { %vm2646_vm2 = vcmp.eq.s32.totalorder %v4568_v60, 1 }
0x26f2   :  { %v4562_v63 = vpop.permute.xlu0 %2628 }
0x26f3   :  { %v4576_v1 = vpop.permute.xlu1 %2637  ;;  %vm2645_vm14 = vcmp.eq.s32.totalorder %v4562_v63, 1 }
0x26f4   :  { %vm2648_vm4 = vcmp.eq.s32.totalorder %v4576_v1, 1 }
0x26f6   :  { %v4566_v35 = vpop.permute.xlu0 %2634 }
0x26f7   :  { %v2779_v52 = vpop.permute.xlu1 %2778  ;;  %vm2647_vm1 = vcmp.eq.s32.totalorder %v4566_v35, 1 }
0x26fa   :  { %v4573_v33 = vpop.permute.xlu0 %2640 }
0x26fb   :  { %vm2649_vm3 = vcmp.eq.s32.totalorder %v4573_v33, 1 }
0x26fe   :  { %v2781_v53 = vpop.permute.xlu0 %2780 }
0x2797   :  { %v3344_v24 = vpop.f32.mrb[28].mxu0 }
0x2798   :  { %v2376_v46 = vadd.f32 %v3344_v24, %v3013_v22  ;;  %v2370_v42 = vpop.f32.mrb[29].mxu0 }
0x2799   :  { %v2371_v28 = vadd.f32 %v3013_v22, %v2370_v42 }
0x279a   :  { %3656 = vtanh.f32 %v2376_v46  ;;  %v3031_v7 = vmul.f32 -1.442695, %v2376_v46 }
0x279b   :  { %3658 = vtanh.f32 %v2371_v28  ;;  %v3030_v37 = vmul.f32 -1.442695, %v2371_v28  ;;  %v3347_v17 = vpop.f32.mrb[30].mxu0  ;;  %v2785_v28 = vpop.permute.xlu0 %2784 }
0x279c   :  { %3660 = vpow2.f32 %v3031_v7  ;;  %v2386_v38 = vadd.f32 %v3347_v17, %v3013_v22  ;;  %v2380_v27 = vpop.f32.mrb[31].mxu0  ;;  %v2783_v17 = vpop.permute.xlu1 %2782 }
0x279d   :  { %3662 = vpow2.f32 %v3030_v37  ;;  %v2381_v14 = vadd.f32 %v3013_v22, %v2380_v27 }
0x279e   :  { %3664 = vtanh.f32 %v2386_v38  ;;  %v3033_v15 = vmul.f32 -1.442695, %v2386_v38 }
0x279f   :  { %3666 = vtanh.f32 %v2381_v14  ;;  %v3032_v36 = vmul.f32 -1.442695, %v2381_v14  ;;  %v3350_v11 = vpop.f32.mrb[32].mxu0 }
0x27a0   :  { %3668 = vpow2.f32 %v3033_v15  ;;  %v2396_v57 = vadd.f32 %v3350_v11, %v3013_v22  ;;  %v2390_v16 = vpop.f32.mrb[33].mxu0 }
0x27a1   :  { %3670 = vpow2.f32 %v3032_v36  ;;  %v2391_v26 = vadd.f32 %v3013_v22, %v2390_v16  ;;  %v2789_v16 = vpop.permute.xlu0 %2788 }
0x27a2   :  { %3672 = vtanh.f32 %v2396_v57  ;;  %v3035_v48 = vmul.f32 -1.442695, %v2396_v57 }
0x27a3   :  { %3674 = vtanh.f32 %v2391_v26  ;;  %v3034_v32 = vmul.f32 -1.442695, %v2391_v26 }
0x27a4   :  { %v3657_v61 = vpop.eup %3656  ;;  %3676 = vpow2.f32 %v3035_v48 }
0x27a5   :  { %v3659_v18 = vpop.eup %3658  ;;  %3678 = vpow2.f32 %v3034_v32  ;;  %v2458_v8 = vmul.f32 %v3657_v61, %v4539_v5  ;;  %v2787_v32 = vpop.permute.xlu1 %2786 }
0x27a6   :  { %v3661_v9 = vpop.eup %3660  ;;  %v2457_v58 = vmul.f32 %v3659_v18, %v4541_v44 }
0x27a7   :  { %v3663_v54 = vpop.eup %3662  ;;  %v2755_v21 = vadd.f32 1.0, %v3661_v9 }
0x27a8   :  { %v3665_v51 = vpop.eup %3664  ;;  %v2754_v31 = vadd.f32 1.0, %v3663_v54  ;;  %3370 = vmatprep.mubr.msk.f32.mxu1 %vm2279_vm11, %v2457_v58 }
0x27a9   :  { %v3667_v30 = vpop.eup %3666  ;;  %3680 = vrcp.f32 %v2755_v21  ;;  %v3353_v40 = vpop.f32.mrb[34].mxu0  ;;  %3371 = vmatmul.mubr.msk.f32.vlgmr.msra.gmra.mrb[20].mxu1 %vm2279_vm11, %v2458_v8  ;;  %v2460_v49 = vmul.f32 %v3665_v51, %v4543_v19 }
0x27aa   :  { %v3669_v2 = vpop.eup %3668  ;;  %3682 = vrcp.f32 %v2754_v31  ;;  %v2406_v41 = vadd.f32 %v3353_v40, %v3013_v22  ;;  %v2400_v6 = vpop.f32.mrb[35].mxu0  ;;  %v2459_v55 = vmul.f32 %v3667_v30, %v4545_v43 }
0x27ab   :  { %v3671_v25 = vpop.eup %3670  ;;  %v2757_v4 = vadd.f32 1.0, %v3669_v2  ;;  %v2401_v3 = vadd.f32 %v3013_v22, %v2400_v6  ;;  %v2793_v31 = vpop.permute.xlu0 %2792 }
0x27ac   :  { %v3673_v29 = vpop.eup %3672  ;;  %v2756_v10 = vadd.f32 1.0, %v3671_v25  ;;  %3684 = vtanh.f32 %v2406_v41  ;;  %v3037_v45 = vmul.f32 -1.442695, %v2406_v41  ;;  %3373 = vmatprep.mubr.msk.f32.mxu1 %vm2279_vm11, %v2459_v55  ;;  %v2791_v2 = vpop.permute.xlu1 %2790 }
0x27ad   :  { %v3675_v47 = vpop.eup %3674  ;;  %3686 = vrcp.f32 %v2757_v4  ;;  %3374 = vmatmul.mubr.msk.f32.gmra.mrb[22].mxu1 %vm2279_vm11, %v2460_v49  ;;  %v3036_v22 = vmul.f32 -1.442695, %v2401_v3  ;;  %v2462_v24 = vmul.f32 %v3673_v29, %v4547_v12 }
0x27ae   :  { %v3677_v56 = vpop.eup %3676  ;;  %3688 = vrcp.f32 %v2756_v10  ;;  %v2461_v62 = vmul.f32 %v3675_v47, %v4549_v0 }
0x27af   :  { %v3679_v34 = vpop.eup %3678  ;;  %v2759_v23 = vadd.f32 1.0, %v3677_v56  ;;  %3690 = vpow2.f32 %v3037_v45 }
0x27b0   :  { %v2758_v46 = vadd.f32 1.0, %v3679_v34  ;;  %3692 = vtanh.f32 %v2401_v3  ;;  %3376 = vmatprep.mubr.msk.f32.mxu1 %vm2279_vm11, %v2461_v62 }
0x27b1   :  { %3694 = vrcp.f32 %v2759_v23  ;;  %3377 = vmatmul.mubr.msk.f32.gmra.mrb[24].mxu1 %vm2279_vm11, %v2462_v24 }
0x27b2   :  { %3696 = vrcp.f32 %v2758_v46 }
0x27b3   :  { %v3681_v42 = vpop.eup %3680  ;;  %3698 = vpow2.f32 %v3036_v22 }
0x27b4   :  { %v3683_v7 = vpop.eup %3682  ;;  %v2803_v37 = vmul.f32 %v3681_v42, %v2781_v53 }
0x27b5   :  { %v2802_v38 = vmul.f32 %v3683_v7, %v2779_v52 }
0x27b6   :  { %v3685_v27 = vpop.eup %3684  ;;  %2820 = vrot.lane.b32.xlu0 %v2803_v37, %s3728_s21 }
0x27b7   :  { %v3687_v14 = vpop.eup %3686  ;;  %2818 = vrot.lane.b32.xlu1 %v2802_v38, %s3728_s21  ;;  %v2464_v54 = vmul.f32 %v3685_v27, %v4551_v59 }
0x27b8   :  { %v3689_v15 = vpop.eup %3688  ;;  %v2805_v36 = vmul.f32 %v3687_v14, %v2785_v28 }
0x27b9   :  { %v3691_v11 = vpop.eup %3690  ;;  %v2804_v57 = vmul.f32 %v3689_v15, %v2783_v17 }
0x27ba   :  { %v3693_v26 = vpop.eup %3692  ;;  %v2761_v48 = vadd.f32 1.0, %v3691_v11  ;;  %2824 = vrot.lane.b32.xlu0 %v2805_v36, %s3728_s21 }
0x27bb   :  { %v3695_v61 = vpop.eup %3694  ;;  %v2463_v18 = vmul.f32 %v3693_v26, %v4553_v50  ;;  %2822 = vrot.lane.b32.xlu1 %v2804_v57, %s3728_s21 }
0x27bc   :  { %v3697_v9 = vpop.eup %3696  ;;  %3700 = vrcp.f32 %v2761_v48  ;;  %v2807_v58 = vmul.f32 %v3695_v61, %v2789_v16 }
0x27bd   :  { %v3699_v21 = vpop.eup %3698  ;;  %3379 = vmatprep.mubr.msk.f32.mxu1 %vm2279_vm11, %v2463_v18  ;;  %v2806_v8 = vmul.f32 %v3697_v9, %v2787_v32 }
0x27be   :  { %v2760_v51 = vadd.f32 1.0, %v3699_v21  ;;  %3380 = vmatmul.mubr.msk.f32.gmra.mrb[26].mxu1 %vm2279_vm11, %v2464_v54  ;;  %2828 = vrot.lane.b32.xlu0 %v2807_v58, %s3728_s21 }
0x27bf   :  { %2826 = vrot.lane.b32.xlu1 %v2806_v8, %s3728_s21 }
0x27c0   :  { %3702 = vrcp.f32 %v2760_v51 }
0x27c6   :  { %v3701_v30 = vpop.eup %3700 }
0x27c7   :  { %v2809_v40 = vmul.f32 %v3701_v30, %v2793_v31 }
0x27c9   :  { %2832 = vrot.lane.b32.xlu0 %v2809_v40, %s3728_s21 }
0x27ca   :  { %v3703_v41 = vpop.eup %3702 }
0x27cb   :  { %v2808_v6 = vmul.f32 %v3703_v41, %v2791_v2 }
0x27cd   :  { %2830 = vrot.lane.b32.xlu1 %v2808_v6, %s3728_s21 }
0x287c   :  { %v3372_v55 = vpop.f32.mrb[20].mxu1 }
0x287d   :  { %v2651_v25 = vsel %vm2643_vm12, -1e+30, %v3372_v55  ;;  %v2563_v4 = vpop.f32.mrb[21].mxu1 }
0x287e   :  { %v2650_v3 = vsel %vm2642_vm13, -1e+30, %v2563_v4  ;;  %v2660_v39 = vsel %vm2658_vm0, %v2651_v25, -inf }
0x287f   :  { %v2659_v63 = vsel %vm2658_vm0, %v2650_v3, -inf }
0x2880   :  { %v3375_v49 = vpop.f32.mrb[22].mxu1 }
0x2881   :  { %v2653_v29 = vsel %vm2645_vm14, -1e+30, %v3375_v49  ;;  %v2573_v10 = vpop.f32.mrb[23].mxu1 }
0x2882   :  { %v2652_v45 = vsel %vm2644_vm15, -1e+30, %v2573_v10  ;;  %v2662_v24 = vsel %vm2658_vm0, %v2653_v29, -inf }
0x2883   :  { %v2661_v28 = vsel %vm2658_vm0, %v2652_v45, -inf }
0x2884   :  { %v3378_v47 = vpop.f32.mrb[24].mxu1 }
0x2885   :  { %v2655_v20 = vsel %vm2647_vm1, -1e+30, %v3378_v47  ;;  %v2583_v53 = vpop.f32.mrb[25].mxu1 }
0x2886   :  { %v2665_v56 = vsel %vm2658_vm0, %v2655_v20, -inf  ;;  %v2654_v62 = vsel %vm2646_vm2, -1e+30, %v2583_v53 }
0x2887   :  { %v2666_v52 = vmax.f32 %v2660_v39, %v2665_v56  ;;  %v2663_v13 = vsel %vm2658_vm0, %v2654_v62, -inf }
0x2888   :  { %v2664_v34 = vmax.f32 %v2659_v63, %v2663_v13 }
0x288a   :  { %v2671_v23 = vmax.f32 %v2664_v34, %v2666_v52 }
0x2891   :  { %v3381_v35 = vpop.f32.mrb[26].mxu1 }
0x2892   :  { %v2657_v60 = vsel %vm2649_vm3, -1e+30, %v3381_v35  ;;  %v2593_v22 = vpop.f32.mrb[27].mxu1 }
0x2893   :  { %v2669_v46 = vsel %vm2658_vm0, %v2657_v60, -inf  ;;  %v2656_v42 = vsel %vm2648_vm4, -1e+30, %v2593_v22 }
0x2894   :  { %v2670_v7 = vmax.f32 %v2662_v24, %v2669_v46  ;;  %v2667_v37 = vsel %vm2658_vm0, %v2656_v42, -inf }
0x2895   :  { %v2668_v17 = vmax.f32 %v2661_v28, %v2667_v37 }
0x2897   :  { %v2672_v38 = vmax.f32 %v2668_v17, %v2670_v7 }
0x2899   :  { %v2673_v27 = vmax.f32 %v2671_v23, %v2672_v38 }
0x289b   :  { %v2674_v14 = vsub.f32 %v2650_v3, %v2673_v27  ;;  %v2675_v33 = vsub.f32 %v2651_v25, %v2673_v27  ;;  %v2676_v15 = vsub.f32 %v2652_v45, %v2673_v27  ;;  %v2677_v36 = vsub.f32 %v2653_v29, %v2673_v27 }
0x289c   :  { %v2678_v1 = vsub.f32 %v2654_v62, %v2673_v27  ;;  %v2679_v11 = vsub.f32 %v2655_v20, %v2673_v27  ;;  %v2680_v57 = vsub.f32 %v2656_v42, %v2673_v27  ;;  %v2681_v16 = vsub.f32 %v2657_v60, %v2673_v27 }
0x289d   :  { %v2682_v26 = vmul.f32 1.442695, %v2674_v14  ;;  %v2684_v48 = vmul.f32 1.442695, %v2675_v33  ;;  %v2686_v32 = vmul.f32 1.442695, %v2676_v15 }
0x289e   :  { %v2688_v61 = vmul.f32 1.442695, %v2677_v36  ;;  %v2690_v18 = vmul.f32 1.442695, %v2678_v1  ;;  %v2692_v9 = vmul.f32 1.442695, %v2679_v11 }
0x289f   :  { %3704 = vpow2.f32 %v2682_v26  ;;  %v2694_v58 = vmul.f32 1.442695, %v2680_v57  ;;  %v2696_v54 = vmul.f32 1.442695, %v2681_v16  ;;  %v3731_v16 = vmov 8  }
0x28a0   :  { %3706 = vpow2.f32 %v2684_v48 }
0x28a1   :  { %3708 = vpow2.f32 %v2686_v32 }
0x28a2   :  { %3710 = vpow2.f32 %v2688_v61 }
0x28a3   :  { %3712 = vpow2.f32 %v2690_v18 }
0x28a4   :  { %3714 = vpow2.f32 %v2692_v9 }
0x28a5   :  { %3716 = vpow2.f32 %v2694_v58 }
0x28a6   :  { %3718 = vpow2.f32 %v2696_v54 }
0x28a9   :  { %v3705_v21 = vpop.eup %3704 }
0x28aa   :  { %v3707_v8 = vpop.eup %3706  ;;  %v2698_v51 = vsel %vm2658_vm0, %v3705_v21, 0.0 }
0x28ab   :  { %v3709_v31 = vpop.eup %3708  ;;  %v2699_v30 = vsel %vm2658_vm0, %v3707_v8, 0.0 }
0x28ac   :  { %v3711_v40 = vpop.eup %3710  ;;  %v2700_v2 = vadd.f32 %v2699_v30, %v2698_v51  ;;  %v2701_v41 = vsel %vm2658_vm0, %v3709_v31, 0.0 }
0x28ad   :  { %v3713_v6 = vpop.eup %3712  ;;  %v2703_v25 = vsel %vm2658_vm0, %v3711_v40, 0.0 }
0x28ae   :  { %v2702_v55 = vadd.f32 %v2701_v41, %v2700_v2  ;;  %v3715_v4 = vpop.eup %3714  ;;  %v2705_v49 = vsel %vm2658_vm0, %v3713_v6, 0.0 }
0x28af   :  { %v3717_v29 = vpop.eup %3716  ;;  %v2707_v45 = vsel %vm2658_vm0, %v3715_v4, 0.0 }
0x28b0   :  { %v2704_v3 = vadd.f32 %v2703_v25, %v2702_v55  ;;  %v3719_v47 = vpop.eup %3718  ;;  %v2709_v53 = vsel %vm2658_vm0, %v3717_v29, 0.0 }
0x28b1   :  { %v2711_v56 = vsel %vm2658_vm0, %v3719_v47, 0.0 }
0x28b2   :  { %v2706_v10 = vadd.f32 %v2705_v49, %v2704_v3 }
0x28b4   :  { %v2708_v20 = vadd.f32 %v2707_v45, %v2706_v10  ;;  %v2821_v10 = vpop.permute.xlu0 %2820  ;;  %v2819_v45 = vpop.permute.xlu1 %2818 }
0x28b6   :  { %v2710_v39 = vadd.f32 %v2709_v53, %v2708_v20 }
0x28b8   :  { %v2712_v62 = vadd.f32 %v2711_v56, %v2710_v39  ;;  %v2823_v20 = vpop.permute.xlu1 %2822 }
0x28ba   :  { %3720 = vrcp.f32 %v2712_v62 }
0x28bc   :  { %v2827_v39 = vpop.permute.xlu1 %2826 }
0x28c0   :  { %v2831_v62 = vpop.permute.xlu1 %2830 }
0x28c4   :  { %v3721_v63 = vpop.eup %3720 }
0x28c5   :  { %v2715_v52 = vmul.f32 %v3721_v63, %v3707_v8  ;;  %v2714_v13 = vmul.f32 %v3721_v63, %v3705_v21  ;;  %v2717_v34 = vmul.f32 %v3721_v63, %v3711_v40  ;;  %v2716_v23 = vmul.f32 %v3721_v63, %v3709_v31 }
0x28c6   :  { %v2719_v35 = vmul.f32 %v3721_v63, %v3715_v4  ;;  %v2718_v60 = vmul.f32 %v3721_v63, %v3713_v6  ;;  %v2721_v22 = vmul.f32 %v3721_v63, %v3719_v47  ;;  %v2720_v24 = vmul.f32 %v3721_v63, %v3717_v29  ;;  %v2825_v47 = vpop.permute.xlu0 %2824 }
0x28c7   :  { %v2723_v46 = vmul.f32 %v2715_v52, %v4539_v5  ;;  %v2722_v42 = vmul.f32 %v2714_v13, %v4541_v44  ;;  %v2725_v28 = vmul.f32 %v2717_v34, %v4543_v19  ;;  %v2724_v7 = vmul.f32 %v2716_v23, %v4545_v43 }
0x28c8   :  { %v2727_v37 = vmul.f32 %v2719_v35, %v4547_v12  ;;  %v2726_v17 = vmul.f32 %v2718_v60, %v4549_v0  ;;  %v2729_v38 = vmul.f32 %v2721_v22, %v4551_v59  ;;  %v2728_v27 = vmul.f32 %v2720_v24, %v4553_v50 }
0x28c9   :  { %2852 = vrot.lane.b32.xlu0 %v2723_v46, %s3730_s7  ;;  %v2893_v14 = vsel %vm2658_vm0, %v2723_v46, -inf  ;;  %v2892_v5 = vsel %vm2658_vm0, %v2722_v42, -inf  ;;  %2850 = vrot.lane.b32.xlu1 %v2722_v42, %s3730_s7  ;;  %v2895_v44 = vsel %vm2658_vm0, %v2725_v28, -inf  ;;  %v2894_v19 = vsel %vm2658_vm0, %v2724_v7, -inf }
0x28ca   :  { %v2898_v43 = vsel %vm2658_vm0, %v2727_v37, -inf  ;;  %v2896_v12 = vsel %vm2658_vm0, %v2726_v17, -inf  ;;  %v2902_v0 = vsel %vm2658_vm0, %v2729_v38, -inf  ;;  %v2900_v59 = vsel %vm2658_vm0, %v2728_v27, -inf  ;;  %v2829_v53 = vpop.permute.xlu0 %2828 }
0x28cb   :  { %v2899_v50 = vmax.f32 %v2893_v14, %v2898_v43  ;;  %v2897_v33 = vmax.f32 %v2892_v5, %v2896_v12  ;;  %v2903_v15 = vmax.f32 %v2895_v44, %v2902_v0  ;;  %v2901_v36 = vmax.f32 %v2894_v19, %v2900_v59 }
0x28cd   :  { %2856 = vrot.lane.b32.xlu0 %v2725_v28, %s3730_s7  ;;  %2854 = vrot.lane.b32.xlu1 %v2724_v7, %s3730_s7  ;;  %v2904_v1 = vmax.f32 %v2897_v33, %v2899_v50  ;;  %v2905_v11 = vmax.f32 %v2901_v36, %v2903_v15 }
0x28ce   :  { %v2833_v56 = vpop.permute.xlu0 %2832 }
0x28cf   :  { %v2906_v57 = vmax.f32 %v2904_v1, %v2905_v11 }
0x28d1   :  { %2860 = vrot.lane.b32.xlu0 %v2727_v37, %s3730_s7  ;;  %2858 = vrot.lane.b32.xlu1 %v2726_v17, %s3730_s7  ;;  %vm2907_vm5 = vcmp.eq.f32.partialorder %v2722_v42, %v2906_v57  ;;  %vm2908_vm6 = vcmp.eq.f32.partialorder %v2723_v46, %v2906_v57  ;;  %vm2909_vm7 = vcmp.eq.f32.partialorder %v2724_v7, %v2906_v57 }
0x28d2   :  { %vm2910_vm8 = vcmp.eq.f32.partialorder %v2725_v28, %v2906_v57  ;;  %vm2911_vm9 = vcmp.eq.f32.partialorder %v2726_v17, %v2906_v57  ;;  %vm2912_vm10 = vcmp.eq.f32.partialorder %v2727_v37, %v2906_v57  ;;  %vm2913_vm11 = vcmp.eq.f32.partialorder %v2728_v27, %v2906_v57 }
0x28d3   :  { %vm2914_vm12 = vcmp.eq.f32.partialorder %v2729_v38, %v2906_v57  ;;  %v2915_v26 = vsel %vm2907_vm5, 0, %v3731_v16  ;;  %v2916_v48 = vsel %vm2908_vm6, 1, %v3731_v16  ;;  %v2917_v32 = vsel %vm2909_vm7, 2, %v3731_v16 }
0x28d4   :  { %v2918_v61 = vsel %vm2910_vm8, 3, %v3731_v16  ;;  %v2919_v18 = vsel %vm2911_vm9, 4, %v3731_v16  ;;  %v2920_v9 = vsel %vm2912_vm10, 5, %v3731_v16  ;;  %v2921_v58 = vsel %vm2913_vm11, 6, %v3731_v16 }
0x28d5   :  { %2864 = vrot.lane.b32.xlu0 %v2729_v38, %s3730_s7  ;;  %v2922_v54 = vsel %vm2914_vm12, 7, %v3731_v16  ;;  %v2923_v21 = vsel %vm2658_vm0, %v2915_v26, 2147483647  ;;  %v2924_v8 = vsel %vm2658_vm0, %v2916_v48, 2147483647  ;;  %2862 = vrot.lane.b32.xlu1 %v2728_v27, %s3730_s7  ;;  %vm2874_vm5 = vcmask 7168  }
0x28d6   :  { %v2925_v51 = vsel %vm2658_vm0, %v2917_v32, 2147483647  ;;  %v2926_v31 = vsel %vm2658_vm0, %v2918_v61, 2147483647  ;;  %v2927_v30 = vsel %vm2658_vm0, %v2919_v18, 2147483647 }
0x28d7   :  { %vm2928_vm13 = vcmp.lt.s32.totalorder %v2923_v21, %v2927_v30  ;;  %v2930_v40 = vsel %vm2658_vm0, %v2920_v9, 2147483647  ;;  %v2933_v2 = vsel %vm2658_vm0, %v2921_v58, 2147483647  ;;  %v2936_v41 = vsel %vm2658_vm0, %v2922_v54, 2147483647 }
0x28d8   :  { %v2929_v6 = vsel %vm2928_vm13, %v2923_v21, %v2927_v30  ;;  %vm2931_vm14 = vcmp.lt.s32.totalorder %v2924_v8, %v2930_v40  ;;  %vm2934_vm15 = vcmp.lt.s32.totalorder %v2925_v51, %v2933_v2  ;;  %vm2937_vm1 = vcmp.lt.s32.totalorder %v2926_v31, %v2936_v41 }
0x28d9   :  { %v2932_v55 = vsel %vm2931_vm14, %v2924_v8, %v2930_v40  ;;  %v2935_v25 = vsel %vm2934_vm15, %v2925_v51, %v2933_v2  ;;  %v2938_v4 = vsel %vm2937_vm1, %v2926_v31, %v2936_v41  ;;  %vm2883_vm6 = vcmask 23552  }
0x28da   :  { %vm2939_vm2 = vcmp.lt.s32.totalorder %v2929_v6, %v2932_v55  ;;  %vm2941_vm3 = vcmp.lt.s32.totalorder %v2935_v25, %v2938_v4 }
0x28db   :  { %v2940_v3 = vsel %vm2939_vm2, %v2929_v6, %v2932_v55  ;;  %v2942_v49 = vsel %vm2941_vm3, %v2935_v25, %v2938_v4 }
0x28dc   :  { %vm2943_vm4 = vcmp.lt.s32.totalorder %v2940_v3, %v2942_v49 }
0x28dd   :  { %v2944_v29 = vsel %vm2943_vm4, %v2940_v3, %v2942_v49 }
0x28de   :  { %2945 = vst.msk [vmem:[%s4707_s10] sm:$0xff] %vm2658_vm0, %v2944_v29 }
0x293b   :  { %v2853_v63 = vpop.permute.xlu0 %2852  ;;  %v2851_v52 = vpop.permute.xlu1 %2850 }
0x293c   :  { %v2876_v13 = vsel %vm2874_vm5, %v2821_v10, %v2853_v63  ;;  %v2875_v34 = vsel %vm2874_vm5, %v2819_v45, %v2851_v52 }
0x293d   :  { %2885 = vst.msk [vmem:[%s4708_s9 + $0x8] sm:$0xff] %vm2883_vm6, %v2876_v13  ;;  %2884 = vst.msk [vmem:[%s4708_s9] sm:$0xff] %vm2883_vm6, %v2875_v34 }
0x293f   :  { %v2857_v23 = vpop.permute.xlu0 %2856  ;;  %v2855_v35 = vpop.permute.xlu1 %2854 }
0x2940   :  { %v2878_v60 = vsel %vm2874_vm5, %v2825_v47, %v2857_v23  ;;  %v2877_v22 = vsel %vm2874_vm5, %v2823_v20, %v2855_v35 }
0x2941   :  { %2887 = vst.msk [vmem:[%s4708_s9 + $0x18] sm:$0xff] %vm2883_vm6, %v2878_v60  ;;  %2886 = vst.msk [vmem:[%s4708_s9 + $0x10] sm:$0xff] %vm2883_vm6, %v2877_v22 }
0x2943   :  { %v2861_v24 = vpop.permute.xlu0 %2860  ;;  %v2859_v46 = vpop.permute.xlu1 %2858 }
0x2944   :  { %v2880_v42 = vsel %vm2874_vm5, %v2829_v53, %v2861_v24  ;;  %v2879_v28 = vsel %vm2874_vm5, %v2827_v39, %v2859_v46 }
0x2945   :  { %2889 = vst.msk [vmem:[%s4708_s9 + $0x28] sm:$0xff] %vm2883_vm6, %v2880_v42  ;;  %2888 = vst.msk [vmem:[%s4708_s9 + $0x20] sm:$0xff] %vm2883_vm6, %v2879_v28 }
0x2947   :  { %v2865_v7 = vpop.permute.xlu0 %2864  ;;  %v2863_v37 = vpop.permute.xlu1 %2862 }
0x2948   :  { %v2882_v17 = vsel %vm2874_vm5, %v2833_v56, %v2865_v7  ;;  %v2881_v38 = vsel %vm2874_vm5, %v2831_v62, %v2863_v37 }
0x2949   :  { %2891 = vst.msk [vmem:[%s4708_s9 + $0x38] sm:$0xff] %vm2883_vm6, %v2882_v17  ;;  %2890 = vst.msk [vmem:[%s4708_s9 + $0x30] sm:$0xff] %vm2883_vm6, %v2881_v38 }

</bundles_post_ra>
